<compile_context>
chip_gen: v6e
topology: v6e:2x2x1
jax: 0.10.0
libtpu: 0.0.40
codegen_flags: <defaults>
</compile_context>

<pallas_src>
import functools

import jax
import jax.numpy as jnp
from jax import lax
from jax.experimental import pallas as pl
from jax.experimental.pallas import tpu as pltpu


def _hamburger_kernel(x_ref, w_in_ref, b_in_ref, w_out_ref, b_out_ref,
                      bases_ref, o_ref, *, steps, eps):
    """One batch element of the Hamburger forward pass.

    x_ref     : (1, D, N) f32   input feature map (flattened spatial, lane-dense N)
    w_in_ref  : (D, D)    bf16  ham_in 1x1 conv weight
    b_in_ref  : (D, 1)    f32   ham_in 1x1 conv bias
    w_out_ref : (D, D)    bf16  ham_out 1x1 conv weight
    b_out_ref : (D, 1)    f32   ham_out 1x1 conv bias
    bases_ref : (1, R, D) f32   random-init, L2-normalized (over D) NMF bases,
                                stored transposed vs. the PyTorch (D, R) layout
    o_ref     : (1, D, N) f32   output

    The NMF coefficient matrix is stored as (R, N) (transposed vs. PyTorch).
    """
    f32, bf16 = jnp.float32, jnp.bfloat16

    def mm(a, b):
        # Standard (M,K)@(K,N) MXU matmul, f32 accumulation.
        return jnp.dot(a, b, preferred_element_type=f32)

    def mm_bt(a, b):
        # a @ b.T (contract both operands' last dim); rhs is always a small
        # (R, *) / (D, R)-class operand here, never the big (D, N) tensors.
        return lax.dot_general(a, b, (((1,), (1,)), ((), ())),
                               preferred_element_type=f32)

    def rcp(v):
        return pl.reciprocal(v, approx=True)

    # --- ham_in: 1x1 conv (channel matmul) + bias, ReLU (f32 epilogue) -------
    y = mm(w_in_ref[...], x_ref[0].astype(bf16)) + b_in_ref[...]   # (D, N) f32
    y = jnp.maximum(y, 0.0)
    y_bf = y.astype(bf16)                     # MXU operand for the coef numerators
    yT_bf = y.T.astype(bf16)                  # loop-invariant; keeps the bases-
                                              # update matmul in standard form

    # --- NMF2D (Matrix_Decomposition_2D_Base.forward with S=1, inv_t=1) ------
    bases = bases_ref[0]                                     # (R, D) f32
    # Logits in (R, N) layout; they double as iteration-1's numerator.
    num = mm(bases.astype(bf16), y_bf)                       # (R, N)

    # softmax over R (axis 0); exact divide for the normalization (accuracy).
    e = jnp.exp(num - jnp.max(num, axis=0, keepdims=True))
    coef = e / jnp.sum(e, axis=0, keepdims=True)             # (R, N) f32

    # Multiplicative-Update iterations (statically unrolled; the live set is
    # small in the (R, N)/(R, D) layouts).
    for _ in range(steps):
        bases_bf = bases.astype(bf16)
        # coef update:  coef *= (bases^T y) / (bases^T bases coef + eps)
        btb = mm_bt(bases_bf, bases_bf)                      # (R, R)
        den = mm(btb.astype(bf16), coef.astype(bf16))        # (R, N)
        coef = coef * num * rcp(den + eps)
        coef_bf = coef.astype(bf16)
        # bases update: bases *= (y coef^T)^T / (coef coef^T bases + eps)
        num2 = mm(coef_bf, yT_bf)                            # (R, D)
        ctc = mm_bt(coef_bf, coef_bf)                        # (R, R)
        den2 = mm(ctc.astype(bf16), bases_bf)                # (R, D)
        bases = bases * num2 * rcp(den2 + eps)
        # numerator with the fresh bases; reused by the next iteration /
        # compute_coef (saves one (R,D)@(D,N) matmul per iteration).
        num = mm(bases.astype(bf16), y_bf)                   # (R, N)

    # compute_coef: one final coefficient refinement (reuses `num`).
    bases_bf = bases.astype(bf16)
    btb = mm_bt(bases_bf, bases_bf)
    den = mm(btb.astype(bf16), coef.astype(bf16))
    coef = coef * num * rcp(den + eps)

    # --- reconstruction fused with ham_out (norm_cfg=None -> no norm) --------
    # enjoy = w_out @ (bases^T @ coef) + b_out == (w_out @ bases^T) @ coef + b_out
    wb = mm_bt(w_out_ref[...], bases_bf)                     # (D, R), tiny
    enjoy = mm(wb.astype(bf16), coef.astype(bf16)) + b_out_ref[...]   # (D, N)

    # --- residual + ReLU (x re-read from VMEM, not held across the MU loop) --
    o_ref[0] = jnp.maximum(x_ref[0] + enjoy, 0.0)


def _cost_estimate(B, C, N, R, steps):
    """Advisory cost for XLA scheduling (post ham_out-fusion, bf16 MXU plan)."""
    conv_in = 2 * C * C * N
    per_iter = (2 * C * R * R          # btb
                + 2 * R * R * N        # den
                + 2 * C * R * N        # num2
                + 2 * R * R * N        # ctc
                + 2 * C * R * R        # den2
                + 2 * C * R * N)       # num for the next iteration
    nmf = 2 * C * R * N + steps * per_iter + (2 * C * R * R + 2 * R * R * N)
    fused_out = 2 * C * C * R + 2 * C * R * N
    flops = B * (conv_in + nmf + fused_out)
    transcendentals = B * (R * N + N                     # softmax exp + divide
                           + steps * (R * N + R * C)     # MU approx reciprocals
                           + R * N)                      # compute_coef reciprocal
    bytes_accessed = (4 * (2 * B * C * N + B * R * C + 2 * C)   # f32 x/out/bases/bias
                      + 2 * (2 * C * C))                        # bf16 weights
    return pl.CostEstimate(flops=flops, transcendentals=transcendentals,
                           bytes_accessed=bytes_accessed)


def _pallas_hamburger(x, w_in_bf, b_in, w_out_bf, b_out, bases_t, *, steps, eps,
                      single_buffer_weights):
    B, C, N = x.shape
    R = bases_t.shape[1]
    kernel = functools.partial(_hamburger_kernel, steps=steps, eps=eps)

    # Grid-invariant weights/biases: request single buffering (saves VMEM, which
    # matters most on v7x's 64 MiB budget at production sizes).
    wkw = {"pipeline_mode": pl.Buffered(1)} if single_buffer_weights else {}
    const2 = lambda b: (0, 0)
    weight_spec = pl.BlockSpec((C, C), const2, **wkw)
    bias_spec = pl.BlockSpec((C, 1), const2, **wkw)

    return pl.pallas_call(
        kernel,
        out_shape=jax.ShapeDtypeStruct((B, C, N), jnp.float32),
        grid_spec=pltpu.PrefetchScalarGridSpec(
            num_scalar_prefetch=0,
            grid=(B,),
            in_specs=[
                pl.BlockSpec((1, C, N), lambda b: (b, 0, 0)),   # x
                weight_spec,                                    # w_in  (bf16)
                bias_spec,                                      # b_in
                weight_spec,                                    # w_out (bf16)
                bias_spec,                                      # b_out
                pl.BlockSpec((1, R, C), lambda b: (b, 0, 0)),   # bases (R, D)
            ],
            out_specs=pl.BlockSpec((1, C, N), lambda b: (b, 0, 0)),
        ),
        compiler_params=pltpu.CompilerParams(
            dimension_semantics=("parallel",)),
        cost_estimate=_cost_estimate(B, C, N, R, steps),
    )(x, w_in_bf, b_in, w_out_bf, b_out, bases_t)


def hamburger_forward(x_nchw, params, bases, *, steps=6, eps=1e-6):
    """Pallas-backed Hamburger forward.

    x_nchw: (B, C, H, W) f32; bases: (B, C, R) f32 (PyTorch _build_bases layout).
    """
    B, C, H, W = x_nchw.shape
    N = H * W
    x = x_nchw.reshape(B, C, N)
    bases_t = jnp.transpose(bases, (0, 2, 1))                 # (B, R, C)
    w_in_bf = params["w_in"].astype(jnp.bfloat16)
    w_out_bf = params["w_out"].astype(jnp.bfloat16)
    args = (x, w_in_bf, params["b_in"], w_out_bf, params["b_out"], bases_t)

    try:
        out = _pallas_hamburger(*args, steps=steps, eps=eps,
                                single_buffer_weights=True)
    except Exception:
        # Fallback for jax builds where BlockSpec.pipeline_mode single-buffering
        # is unsupported; only costs extra VMEM for the invariant weight buffers.
        out = _pallas_hamburger(*args, steps=steps, eps=eps,
                                single_buffer_weights=False)
    return out.reshape(B, C, H, W)


def _reference_forward(x_nchw, params, bases, *, steps=6, eps=1e-6):
    """Pure-JAX f32 reference mirroring the PyTorch module, for validation."""
    B, C, H, W = x_nchw.shape
    N = H * W
    x = x_nchw.reshape(B, C, N)
    y = jnp.einsum("oc,bcn->bon", params["w_in"], x) + params["b_in"][None]
    y = jnp.maximum(y, 0.0)

    b = bases
    s = jnp.einsum("bdn,bdr->bnr", y, b)
    coef = jax.nn.softmax(s, axis=-1)
    for _ in range(steps):
        num = jnp.einsum("bdn,bdr->bnr", y, b)
        den = jnp.einsum("bnr,brq->bnq", coef, jnp.einsum("bdr,bdq->brq", b, b))
        coef = coef * num / (den + eps)
        num2 = jnp.einsum("bdn,bnr->bdr", y, coef)
        den2 = jnp.einsum("bdr,brq->bdq", b, jnp.einsum("bnr,bnq->brq", coef, coef))
        b = b * num2 / (den2 + eps)
    num = jnp.einsum("bdn,bdr->bnr", y, b)
    den = jnp.einsum("bnr,brq->bnq", coef, jnp.einsum("bdr,bdq->brq", b, b))
    coef = coef * num / (den + eps)
    ham = jnp.einsum("bdr,bnr->bdn", b, coef)

    enjoy = jnp.einsum("oc,bcn->bon", params["w_out"], ham) + params["b_out"][None]
    out = jnp.maximum(x + enjoy, 0.0)
    return out.reshape(B, C, H, W)


if __name__ == "__main__":
    key = jax.random.PRNGKey(0)
    B, C, H, W = 2, 64, 16, 16      # ham_channels = 64 (scaled-down), spatial 16x16
    R = 16                          # MD_R (scaled-down latent dim)
    STEPS = 6                       # train_steps (PyTorch modules default to training)

    k_x, k_wi, k_bi, k_wo, k_bo, k_bs = jax.random.split(key, 6)
    x = jax.random.normal(k_x, (B, C, H, W), jnp.float32)

    params = {
        "w_in": 0.05 * jax.random.normal(k_wi, (C, C), jnp.float32),
        "b_in": 0.05 * jax.random.normal(k_bi, (C, 1), jnp.float32),
        "w_out": 0.05 * jax.random.normal(k_wo, (C, C), jnp.float32),
        "b_out": 0.05 * jax.random.normal(k_bo, (C, 1), jnp.float32),
    }

    # _build_bases: torch.rand((B*S, D, R)) then F.normalize(dim=1) (L2 over D).
    bases = jax.random.uniform(k_bs, (B, C, R), jnp.float32)
    bases = bases / jnp.maximum(
        jnp.sqrt(jnp.sum(bases * bases, axis=1, keepdims=True)), 1e-12)

    out = hamburger_forward(x, params, bases, steps=STEPS)
    out = jax.block_until_ready(out)

    ref = _reference_forward(x, params, bases, steps=STEPS)
    assert out.shape == (B, C, H, W)
    # bf16 MXU operands + approx EUP reciprocals across 6 MU iterations drift at
    # the ~1e-2 level vs. the exact-f32 reference; tolerance leaves margin while
    # still catching any layout/transpose/fusion bug (those give O(1) errors).
    max_err = jnp.max(jnp.abs(out - ref))
    assert jnp.allclose(out, ref, atol=5e-2, rtol=5e-2), (
        f"mismatch vs JAX reference, max abs err = {max_err}")

    print("KERNEL_OK")
</pallas_src>

<mosaic_0001>
module attributes {stable_mosaic.version = 11 : i64} {
  func.func @_hamburger_kernel(%arg0: i32, %arg1: memref<1x64x256xf32, #tpu.memory_space<vmem>>, %arg2: memref<64x64xbf16, #tpu.memory_space<vmem>>, %arg3: memref<64x1xf32, #tpu.memory_space<vmem>>, %arg4: memref<64x64xbf16, #tpu.memory_space<vmem>>, %arg5: memref<64x1xf32, #tpu.memory_space<vmem>>, %arg6: memref<1x16x64xf32, #tpu.memory_space<vmem>>, %arg7: memref<1x64x256xf32, #tpu.memory_space<vmem>>) attributes {dimension_semantics = [#tpu.dimension_semantics<parallel>], iteration_bounds = array<i64: 2>, scalar_prefetch = 0 : i64, scratch_operands = 0 : i64, tpu.core_type = #tpu.core_type<tc>, window_params = [{transform_indices = @transform_0, window_bounds = array<i64: 1, 64, 256>}, {pipeline_mode = #tpu.pipeline_mode<synchronous>, transform_indices = @transform_1, window_bounds = array<i64: 64, 64>}, {pipeline_mode = #tpu.pipeline_mode<synchronous>, transform_indices = @transform_2, window_bounds = array<i64: 64, 1>}, {pipeline_mode = #tpu.pipeline_mode<synchronous>, transform_indices = @transform_3, window_bounds = array<i64: 64, 64>}, {pipeline_mode = #tpu.pipeline_mode<synchronous>, transform_indices = @transform_4, window_bounds = array<i64: 64, 1>}, {transform_indices = @transform_5, window_bounds = array<i64: 1, 16, 64>}, {transform_indices = @transform_6, window_bounds = array<i64: 1, 64, 256>}]} {
    %c0 = arith.constant 0 : index
    %c0_0 = arith.constant 0 : index
    %0 = vector.load %arg2[%c0, %c0_0] : memref<64x64xbf16, #tpu.memory_space<vmem>>, vector<64x64xbf16>
    %c0_1 = arith.constant 0 : index
    %c0_2 = arith.constant 0 : index
    %c0_3 = arith.constant 0 : index
    %1 = vector.load %arg1[%c0_1, %c0_2, %c0_3] : memref<1x64x256xf32, #tpu.memory_space<vmem>>, vector<1x64x256xf32>
    %2 = vector.shape_cast %1 : vector<1x64x256xf32> to vector<64x256xf32>
    %3 = arith.truncf %2 : vector<64x256xf32> to vector<64x256xbf16>
    %cst = arith.constant dense<0.000000e+00> : vector<64x256xf32>
    %4 = tpu.matmul %0, %3, %cst {dimension_numbers = #tpu.dot_dimension_numbers<[1], [0], [0], [1], [0, 0, 1, 1], [], []>} : vector<64x64xbf16>, vector<64x256xbf16>, vector<64x256xf32> -> vector<64x256xf32>
    %c0_4 = arith.constant 0 : index
    %c0_5 = arith.constant 0 : index
    %5 = vector.load %arg3[%c0_4, %c0_5] : memref<64x1xf32, #tpu.memory_space<vmem>>, vector<64x1xf32>
    %6 = vector.broadcast %5 : vector<64x1xf32> to vector<64x256xf32>
    %7 = arith.addf %4, %6 : vector<64x256xf32>
    %cst_6 = arith.constant 0.000000e+00 : f32
    %8 = vector.broadcast %cst_6 : f32 to vector<64x256xf32>
    %9 = arith.maximumf %7, %8 : vector<64x256xf32>
    %10 = arith.truncf %9 : vector<64x256xf32> to vector<64x256xbf16>
    %11 = tpu.transpose %9, [1, 0] : vector<64x256xf32> -> vector<256x64xf32>
    %12 = arith.truncf %11 : vector<256x64xf32> to vector<256x64xbf16>
    %c0_7 = arith.constant 0 : index
    %c0_8 = arith.constant 0 : index
    %c0_9 = arith.constant 0 : index
    %13 = vector.load %arg6[%c0_7, %c0_8, %c0_9] : memref<1x16x64xf32, #tpu.memory_space<vmem>>, vector<1x16x64xf32>
    %14 = vector.shape_cast %13 : vector<1x16x64xf32> to vector<16x64xf32>
    %15 = arith.truncf %14 : vector<16x64xf32> to vector<16x64xbf16>
    %cst_10 = arith.constant dense<0.000000e+00> : vector<16x256xf32>
    %16 = tpu.matmul %15, %10, %cst_10 {dimension_numbers = #tpu.dot_dimension_numbers<[1], [0], [0], [1], [0, 0, 1, 1], [], []>} : vector<16x64xbf16>, vector<64x256xbf16>, vector<16x256xf32> -> vector<16x256xf32>
    %cst_11 = arith.constant dense<0xFF800000> : vector<256xf32>
    %17 = vector.multi_reduction <maximumf>, %16, %cst_11 [0] : vector<16x256xf32> to vector<256xf32>
    %18 = vector.shape_cast %17 : vector<256xf32> to vector<1x256xf32>
    %19 = vector.broadcast %18 : vector<1x256xf32> to vector<16x256xf32>
    %20 = arith.subf %16, %19 : vector<16x256xf32>
    %21 = math.exp %20 : vector<16x256xf32>
    %cst_12 = arith.constant dense<0.000000e+00> : vector<256xf32>
    %22 = vector.multi_reduction <add>, %21, %cst_12 [0] : vector<16x256xf32> to vector<256xf32>
    %23 = vector.shape_cast %22 : vector<256xf32> to vector<1x256xf32>
    %24 = vector.broadcast %23 : vector<1x256xf32> to vector<16x256xf32>
    %25 = arith.divf %21, %24 : vector<16x256xf32>
    %26 = arith.truncf %14 : vector<16x64xf32> to vector<16x64xbf16>
    %cst_13 = arith.constant dense<0.000000e+00> : vector<16x16xf32>
    %27 = tpu.matmul %26, %26, %cst_13 {dimension_numbers = #tpu.dot_dimension_numbers<[1], [1], [0], [0], [0, 0, 1, 0], [], []>} : vector<16x64xbf16>, vector<16x64xbf16>, vector<16x16xf32> -> vector<16x16xf32>
    %28 = arith.truncf %27 : vector<16x16xf32> to vector<16x16xbf16>
    %29 = arith.truncf %25 : vector<16x256xf32> to vector<16x256xbf16>
    %cst_14 = arith.constant dense<0.000000e+00> : vector<16x256xf32>
    %30 = tpu.matmul %28, %29, %cst_14 {dimension_numbers = #tpu.dot_dimension_numbers<[1], [0], [0], [1], [0, 0, 1, 1], [], []>} : vector<16x16xbf16>, vector<16x256xbf16>, vector<16x256xf32> -> vector<16x256xf32>
    %31 = arith.mulf %25, %16 : vector<16x256xf32>
    %cst_15 = arith.constant 9.99999997E-7 : f32
    %32 = vector.broadcast %cst_15 : f32 to vector<16x256xf32>
    %33 = arith.addf %30, %32 : vector<16x256xf32>
    %34 = tpu.reciprocal %33 {approx = true} : vector<16x256xf32> -> vector<16x256xf32>
    %35 = arith.mulf %31, %34 : vector<16x256xf32>
    %36 = arith.truncf %35 : vector<16x256xf32> to vector<16x256xbf16>
    %cst_16 = arith.constant dense<0.000000e+00> : vector<16x64xf32>
    %37 = tpu.matmul %36, %12, %cst_16 {dimension_numbers = #tpu.dot_dimension_numbers<[1], [0], [0], [1], [0, 0, 1, 1], [], []>} : vector<16x256xbf16>, vector<256x64xbf16>, vector<16x64xf32> -> vector<16x64xf32>
    %cst_17 = arith.constant dense<0.000000e+00> : vector<16x16xf32>
    %38 = tpu.matmul %36, %36, %cst_17 {dimension_numbers = #tpu.dot_dimension_numbers<[1], [1], [0], [0], [0, 0, 1, 0], [], []>} : vector<16x256xbf16>, vector<16x256xbf16>, vector<16x16xf32> -> vector<16x16xf32>
    %39 = arith.truncf %38 : vector<16x16xf32> to vector<16x16xbf16>
    %cst_18 = arith.constant dense<0.000000e+00> : vector<16x64xf32>
    %40 = tpu.matmul %39, %26, %cst_18 {dimension_numbers = #tpu.dot_dimension_numbers<[1], [0], [0], [1], [0, 0, 1, 1], [], []>} : vector<16x16xbf16>, vector<16x64xbf16>, vector<16x64xf32> -> vector<16x64xf32>
    %41 = arith.mulf %14, %37 : vector<16x64xf32>
    %cst_19 = arith.constant 9.99999997E-7 : f32
    %42 = vector.broadcast %cst_19 : f32 to vector<16x64xf32>
    %43 = arith.addf %40, %42 : vector<16x64xf32>
    %44 = tpu.reciprocal %43 {approx = true} : vector<16x64xf32> -> vector<16x64xf32>
    %45 = arith.mulf %41, %44 : vector<16x64xf32>
    %46 = arith.truncf %45 : vector<16x64xf32> to vector<16x64xbf16>
    %cst_20 = arith.constant dense<0.000000e+00> : vector<16x256xf32>
    %47 = tpu.matmul %46, %10, %cst_20 {dimension_numbers = #tpu.dot_dimension_numbers<[1], [0], [0], [1], [0, 0, 1, 1], [], []>} : vector<16x64xbf16>, vector<64x256xbf16>, vector<16x256xf32> -> vector<16x256xf32>
    %48 = arith.truncf %45 : vector<16x64xf32> to vector<16x64xbf16>
    %cst_21 = arith.constant dense<0.000000e+00> : vector<16x16xf32>
    %49 = tpu.matmul %48, %48, %cst_21 {dimension_numbers = #tpu.dot_dimension_numbers<[1], [1], [0], [0], [0, 0, 1, 0], [], []>} : vector<16x64xbf16>, vector<16x64xbf16>, vector<16x16xf32> -> vector<16x16xf32>
    %50 = arith.truncf %49 : vector<16x16xf32> to vector<16x16xbf16>
    %51 = arith.truncf %35 : vector<16x256xf32> to vector<16x256xbf16>
    %cst_22 = arith.constant dense<0.000000e+00> : vector<16x256xf32>
    %52 = tpu.matmul %50, %51, %cst_22 {dimension_numbers = #tpu.dot_dimension_numbers<[1], [0], [0], [1], [0, 0, 1, 1], [], []>} : vector<16x16xbf16>, vector<16x256xbf16>, vector<16x256xf32> -> vector<16x256xf32>
    %53 = arith.mulf %35, %47 : vector<16x256xf32>
    %cst_23 = arith.constant 9.99999997E-7 : f32
    %54 = vector.broadcast %cst_23 : f32 to vector<16x256xf32>
    %55 = arith.addf %52, %54 : vector<16x256xf32>
    %56 = tpu.reciprocal %55 {approx = true} : vector<16x256xf32> -> vector<16x256xf32>
    %57 = arith.mulf %53, %56 : vector<16x256xf32>
    %58 = arith.truncf %57 : vector<16x256xf32> to vector<16x256xbf16>
    %cst_24 = arith.constant dense<0.000000e+00> : vector<16x64xf32>
    %59 = tpu.matmul %58, %12, %cst_24 {dimension_numbers = #tpu.dot_dimension_numbers<[1], [0], [0], [1], [0, 0, 1, 1], [], []>} : vector<16x256xbf16>, vector<256x64xbf16>, vector<16x64xf32> -> vector<16x64xf32>
    %cst_25 = arith.constant dense<0.000000e+00> : vector<16x16xf32>
    %60 = tpu.matmul %58, %58, %cst_25 {dimension_numbers = #tpu.dot_dimension_numbers<[1], [1], [0], [0], [0, 0, 1, 0], [], []>} : vector<16x256xbf16>, vector<16x256xbf16>, vector<16x16xf32> -> vector<16x16xf32>
    %61 = arith.truncf %60 : vector<16x16xf32> to vector<16x16xbf16>
    %cst_26 = arith.constant dense<0.000000e+00> : vector<16x64xf32>
    %62 = tpu.matmul %61, %48, %cst_26 {dimension_numbers = #tpu.dot_dimension_numbers<[1], [0], [0], [1], [0, 0, 1, 1], [], []>} : vector<16x16xbf16>, vector<16x64xbf16>, vector<16x64xf32> -> vector<16x64xf32>
    %63 = arith.mulf %45, %59 : vector<16x64xf32>
    %cst_27 = arith.constant 9.99999997E-7 : f32
    %64 = vector.broadcast %cst_27 : f32 to vector<16x64xf32>
    %65 = arith.addf %62, %64 : vector<16x64xf32>
    %66 = tpu.reciprocal %65 {approx = true} : vector<16x64xf32> -> vector<16x64xf32>
    %67 = arith.mulf %63, %66 : vector<16x64xf32>
    %68 = arith.truncf %67 : vector<16x64xf32> to vector<16x64xbf16>
    %cst_28 = arith.constant dense<0.000000e+00> : vector<16x256xf32>
    %69 = tpu.matmul %68, %10, %cst_28 {dimension_numbers = #tpu.dot_dimension_numbers<[1], [0], [0], [1], [0, 0, 1, 1], [], []>} : vector<16x64xbf16>, vector<64x256xbf16>, vector<16x256xf32> -> vector<16x256xf32>
    %70 = arith.truncf %67 : vector<16x64xf32> to vector<16x64xbf16>
    %cst_29 = arith.constant dense<0.000000e+00> : vector<16x16xf32>
    %71 = tpu.matmul %70, %70, %cst_29 {dimension_numbers = #tpu.dot_dimension_numbers<[1], [1], [0], [0], [0, 0, 1, 0], [], []>} : vector<16x64xbf16>, vector<16x64xbf16>, vector<16x16xf32> -> vector<16x16xf32>
    %72 = arith.truncf %71 : vector<16x16xf32> to vector<16x16xbf16>
    %73 = arith.truncf %57 : vector<16x256xf32> to vector<16x256xbf16>
    %cst_30 = arith.constant dense<0.000000e+00> : vector<16x256xf32>
    %74 = tpu.matmul %72, %73, %cst_30 {dimension_numbers = #tpu.dot_dimension_numbers<[1], [0], [0], [1], [0, 0, 1, 1], [], []>} : vector<16x16xbf16>, vector<16x256xbf16>, vector<16x256xf32> -> vector<16x256xf32>
    %75 = arith.mulf %57, %69 : vector<16x256xf32>
    %cst_31 = arith.constant 9.99999997E-7 : f32
    %76 = vector.broadcast %cst_31 : f32 to vector<16x256xf32>
    %77 = arith.addf %74, %76 : vector<16x256xf32>
    %78 = tpu.reciprocal %77 {approx = true} : vector<16x256xf32> -> vector<16x256xf32>
    %79 = arith.mulf %75, %78 : vector<16x256xf32>
    %80 = arith.truncf %79 : vector<16x256xf32> to vector<16x256xbf16>
    %cst_32 = arith.constant dense<0.000000e+00> : vector<16x64xf32>
    %81 = tpu.matmul %80, %12, %cst_32 {dimension_numbers = #tpu.dot_dimension_numbers<[1], [0], [0], [1], [0, 0, 1, 1], [], []>} : vector<16x256xbf16>, vector<256x64xbf16>, vector<16x64xf32> -> vector<16x64xf32>
    %cst_33 = arith.constant dense<0.000000e+00> : vector<16x16xf32>
    %82 = tpu.matmul %80, %80, %cst_33 {dimension_numbers = #tpu.dot_dimension_numbers<[1], [1], [0], [0], [0, 0, 1, 0], [], []>} : vector<16x256xbf16>, vector<16x256xbf16>, vector<16x16xf32> -> vector<16x16xf32>
    %83 = arith.truncf %82 : vector<16x16xf32> to vector<16x16xbf16>
    %cst_34 = arith.constant dense<0.000000e+00> : vector<16x64xf32>
    %84 = tpu.matmul %83, %70, %cst_34 {dimension_numbers = #tpu.dot_dimension_numbers<[1], [0], [0], [1], [0, 0, 1, 1], [], []>} : vector<16x16xbf16>, vector<16x64xbf16>, vector<16x64xf32> -> vector<16x64xf32>
    %85 = arith.mulf %67, %81 : vector<16x64xf32>
    %cst_35 = arith.constant 9.99999997E-7 : f32
    %86 = vector.broadcast %cst_35 : f32 to vector<16x64xf32>
    %87 = arith.addf %84, %86 : vector<16x64xf32>
    %88 = tpu.reciprocal %87 {approx = true} : vector<16x64xf32> -> vector<16x64xf32>
    %89 = arith.mulf %85, %88 : vector<16x64xf32>
    %90 = arith.truncf %89 : vector<16x64xf32> to vector<16x64xbf16>
    %cst_36 = arith.constant dense<0.000000e+00> : vector<16x256xf32>
    %91 = tpu.matmul %90, %10, %cst_36 {dimension_numbers = #tpu.dot_dimension_numbers<[1], [0], [0], [1], [0, 0, 1, 1], [], []>} : vector<16x64xbf16>, vector<64x256xbf16>, vector<16x256xf32> -> vector<16x256xf32>
    %92 = arith.truncf %89 : vector<16x64xf32> to vector<16x64xbf16>
    %cst_37 = arith.constant dense<0.000000e+00> : vector<16x16xf32>
    %93 = tpu.matmul %92, %92, %cst_37 {dimension_numbers = #tpu.dot_dimension_numbers<[1], [1], [0], [0], [0, 0, 1, 0], [], []>} : vector<16x64xbf16>, vector<16x64xbf16>, vector<16x16xf32> -> vector<16x16xf32>
    %94 = arith.truncf %93 : vector<16x16xf32> to vector<16x16xbf16>
    %95 = arith.truncf %79 : vector<16x256xf32> to vector<16x256xbf16>
    %cst_38 = arith.constant dense<0.000000e+00> : vector<16x256xf32>
    %96 = tpu.matmul %94, %95, %cst_38 {dimension_numbers = #tpu.dot_dimension_numbers<[1], [0], [0], [1], [0, 0, 1, 1], [], []>} : vector<16x16xbf16>, vector<16x256xbf16>, vector<16x256xf32> -> vector<16x256xf32>
    %97 = arith.mulf %79, %91 : vector<16x256xf32>
    %cst_39 = arith.constant 9.99999997E-7 : f32
    %98 = vector.broadcast %cst_39 : f32 to vector<16x256xf32>
    %99 = arith.addf %96, %98 : vector<16x256xf32>
    %100 = tpu.reciprocal %99 {approx = true} : vector<16x256xf32> -> vector<16x256xf32>
    %101 = arith.mulf %97, %100 : vector<16x256xf32>
    %102 = arith.truncf %101 : vector<16x256xf32> to vector<16x256xbf16>
    %cst_40 = arith.constant dense<0.000000e+00> : vector<16x64xf32>
    %103 = tpu.matmul %102, %12, %cst_40 {dimension_numbers = #tpu.dot_dimension_numbers<[1], [0], [0], [1], [0, 0, 1, 1], [], []>} : vector<16x256xbf16>, vector<256x64xbf16>, vector<16x64xf32> -> vector<16x64xf32>
    %cst_41 = arith.constant dense<0.000000e+00> : vector<16x16xf32>
    %104 = tpu.matmul %102, %102, %cst_41 {dimension_numbers = #tpu.dot_dimension_numbers<[1], [1], [0], [0], [0, 0, 1, 0], [], []>} : vector<16x256xbf16>, vector<16x256xbf16>, vector<16x16xf32> -> vector<16x16xf32>
    %105 = arith.truncf %104 : vector<16x16xf32> to vector<16x16xbf16>
    %cst_42 = arith.constant dense<0.000000e+00> : vector<16x64xf32>
    %106 = tpu.matmul %105, %92, %cst_42 {dimension_numbers = #tpu.dot_dimension_numbers<[1], [0], [0], [1], [0, 0, 1, 1], [], []>} : vector<16x16xbf16>, vector<16x64xbf16>, vector<16x64xf32> -> vector<16x64xf32>
    %107 = arith.mulf %89, %103 : vector<16x64xf32>
    %cst_43 = arith.constant 9.99999997E-7 : f32
    %108 = vector.broadcast %cst_43 : f32 to vector<16x64xf32>
    %109 = arith.addf %106, %108 : vector<16x64xf32>
    %110 = tpu.reciprocal %109 {approx = true} : vector<16x64xf32> -> vector<16x64xf32>
    %111 = arith.mulf %107, %110 : vector<16x64xf32>
    %112 = arith.truncf %111 : vector<16x64xf32> to vector<16x64xbf16>
    %cst_44 = arith.constant dense<0.000000e+00> : vector<16x256xf32>
    %113 = tpu.matmul %112, %10, %cst_44 {dimension_numbers = #tpu.dot_dimension_numbers<[1], [0], [0], [1], [0, 0, 1, 1], [], []>} : vector<16x64xbf16>, vector<64x256xbf16>, vector<16x256xf32> -> vector<16x256xf32>
    %114 = arith.truncf %111 : vector<16x64xf32> to vector<16x64xbf16>
    %cst_45 = arith.constant dense<0.000000e+00> : vector<16x16xf32>
    %115 = tpu.matmul %114, %114, %cst_45 {dimension_numbers = #tpu.dot_dimension_numbers<[1], [1], [0], [0], [0, 0, 1, 0], [], []>} : vector<16x64xbf16>, vector<16x64xbf16>, vector<16x16xf32> -> vector<16x16xf32>
    %116 = arith.truncf %115 : vector<16x16xf32> to vector<16x16xbf16>
    %117 = arith.truncf %101 : vector<16x256xf32> to vector<16x256xbf16>
    %cst_46 = arith.constant dense<0.000000e+00> : vector<16x256xf32>
    %118 = tpu.matmul %116, %117, %cst_46 {dimension_numbers = #tpu.dot_dimension_numbers<[1], [0], [0], [1], [0, 0, 1, 1], [], []>} : vector<16x16xbf16>, vector<16x256xbf16>, vector<16x256xf32> -> vector<16x256xf32>
    %119 = arith.mulf %101, %113 : vector<16x256xf32>
    %cst_47 = arith.constant 9.99999997E-7 : f32
    %120 = vector.broadcast %cst_47 : f32 to vector<16x256xf32>
    %121 = arith.addf %118, %120 : vector<16x256xf32>
    %122 = tpu.reciprocal %121 {approx = true} : vector<16x256xf32> -> vector<16x256xf32>
    %123 = arith.mulf %119, %122 : vector<16x256xf32>
    %124 = arith.truncf %123 : vector<16x256xf32> to vector<16x256xbf16>
    %cst_48 = arith.constant dense<0.000000e+00> : vector<16x64xf32>
    %125 = tpu.matmul %124, %12, %cst_48 {dimension_numbers = #tpu.dot_dimension_numbers<[1], [0], [0], [1], [0, 0, 1, 1], [], []>} : vector<16x256xbf16>, vector<256x64xbf16>, vector<16x64xf32> -> vector<16x64xf32>
    %cst_49 = arith.constant dense<0.000000e+00> : vector<16x16xf32>
    %126 = tpu.matmul %124, %124, %cst_49 {dimension_numbers = #tpu.dot_dimension_numbers<[1], [1], [0], [0], [0, 0, 1, 0], [], []>} : vector<16x256xbf16>, vector<16x256xbf16>, vector<16x16xf32> -> vector<16x16xf32>
    %127 = arith.truncf %126 : vector<16x16xf32> to vector<16x16xbf16>
    %cst_50 = arith.constant dense<0.000000e+00> : vector<16x64xf32>
    %128 = tpu.matmul %127, %114, %cst_50 {dimension_numbers = #tpu.dot_dimension_numbers<[1], [0], [0], [1], [0, 0, 1, 1], [], []>} : vector<16x16xbf16>, vector<16x64xbf16>, vector<16x64xf32> -> vector<16x64xf32>
    %129 = arith.mulf %111, %125 : vector<16x64xf32>
    %cst_51 = arith.constant 9.99999997E-7 : f32
    %130 = vector.broadcast %cst_51 : f32 to vector<16x64xf32>
    %131 = arith.addf %128, %130 : vector<16x64xf32>
    %132 = tpu.reciprocal %131 {approx = true} : vector<16x64xf32> -> vector<16x64xf32>
    %133 = arith.mulf %129, %132 : vector<16x64xf32>
    %134 = arith.truncf %133 : vector<16x64xf32> to vector<16x64xbf16>
    %cst_52 = arith.constant dense<0.000000e+00> : vector<16x256xf32>
    %135 = tpu.matmul %134, %10, %cst_52 {dimension_numbers = #tpu.dot_dimension_numbers<[1], [0], [0], [1], [0, 0, 1, 1], [], []>} : vector<16x64xbf16>, vector<64x256xbf16>, vector<16x256xf32> -> vector<16x256xf32>
    %136 = arith.truncf %133 : vector<16x64xf32> to vector<16x64xbf16>
    %cst_53 = arith.constant dense<0.000000e+00> : vector<16x16xf32>
    %137 = tpu.matmul %136, %136, %cst_53 {dimension_numbers = #tpu.dot_dimension_numbers<[1], [1], [0], [0], [0, 0, 1, 0], [], []>} : vector<16x64xbf16>, vector<16x64xbf16>, vector<16x16xf32> -> vector<16x16xf32>
    %138 = arith.truncf %137 : vector<16x16xf32> to vector<16x16xbf16>
    %139 = arith.truncf %123 : vector<16x256xf32> to vector<16x256xbf16>
    %cst_54 = arith.constant dense<0.000000e+00> : vector<16x256xf32>
    %140 = tpu.matmul %138, %139, %cst_54 {dimension_numbers = #tpu.dot_dimension_numbers<[1], [0], [0], [1], [0, 0, 1, 1], [], []>} : vector<16x16xbf16>, vector<16x256xbf16>, vector<16x256xf32> -> vector<16x256xf32>
    %141 = arith.mulf %123, %135 : vector<16x256xf32>
    %cst_55 = arith.constant 9.99999997E-7 : f32
    %142 = vector.broadcast %cst_55 : f32 to vector<16x256xf32>
    %143 = arith.addf %140, %142 : vector<16x256xf32>
    %144 = tpu.reciprocal %143 {approx = true} : vector<16x256xf32> -> vector<16x256xf32>
    %145 = arith.mulf %141, %144 : vector<16x256xf32>
    %146 = arith.truncf %145 : vector<16x256xf32> to vector<16x256xbf16>
    %cst_56 = arith.constant dense<0.000000e+00> : vector<16x64xf32>
    %147 = tpu.matmul %146, %12, %cst_56 {dimension_numbers = #tpu.dot_dimension_numbers<[1], [0], [0], [1], [0, 0, 1, 1], [], []>} : vector<16x256xbf16>, vector<256x64xbf16>, vector<16x64xf32> -> vector<16x64xf32>
    %cst_57 = arith.constant dense<0.000000e+00> : vector<16x16xf32>
    %148 = tpu.matmul %146, %146, %cst_57 {dimension_numbers = #tpu.dot_dimension_numbers<[1], [1], [0], [0], [0, 0, 1, 0], [], []>} : vector<16x256xbf16>, vector<16x256xbf16>, vector<16x16xf32> -> vector<16x16xf32>
    %149 = arith.truncf %148 : vector<16x16xf32> to vector<16x16xbf16>
    %cst_58 = arith.constant dense<0.000000e+00> : vector<16x64xf32>
    %150 = tpu.matmul %149, %136, %cst_58 {dimension_numbers = #tpu.dot_dimension_numbers<[1], [0], [0], [1], [0, 0, 1, 1], [], []>} : vector<16x16xbf16>, vector<16x64xbf16>, vector<16x64xf32> -> vector<16x64xf32>
    %151 = arith.mulf %133, %147 : vector<16x64xf32>
    %cst_59 = arith.constant 9.99999997E-7 : f32
    %152 = vector.broadcast %cst_59 : f32 to vector<16x64xf32>
    %153 = arith.addf %150, %152 : vector<16x64xf32>
    %154 = tpu.reciprocal %153 {approx = true} : vector<16x64xf32> -> vector<16x64xf32>
    %155 = arith.mulf %151, %154 : vector<16x64xf32>
    %156 = arith.truncf %155 : vector<16x64xf32> to vector<16x64xbf16>
    %cst_60 = arith.constant dense<0.000000e+00> : vector<16x256xf32>
    %157 = tpu.matmul %156, %10, %cst_60 {dimension_numbers = #tpu.dot_dimension_numbers<[1], [0], [0], [1], [0, 0, 1, 1], [], []>} : vector<16x64xbf16>, vector<64x256xbf16>, vector<16x256xf32> -> vector<16x256xf32>
    %158 = arith.truncf %155 : vector<16x64xf32> to vector<16x64xbf16>
    %cst_61 = arith.constant dense<0.000000e+00> : vector<16x16xf32>
    %159 = tpu.matmul %158, %158, %cst_61 {dimension_numbers = #tpu.dot_dimension_numbers<[1], [1], [0], [0], [0, 0, 1, 0], [], []>} : vector<16x64xbf16>, vector<16x64xbf16>, vector<16x16xf32> -> vector<16x16xf32>
    %160 = arith.truncf %159 : vector<16x16xf32> to vector<16x16xbf16>
    %161 = arith.truncf %145 : vector<16x256xf32> to vector<16x256xbf16>
    %cst_62 = arith.constant dense<0.000000e+00> : vector<16x256xf32>
    %162 = tpu.matmul %160, %161, %cst_62 {dimension_numbers = #tpu.dot_dimension_numbers<[1], [0], [0], [1], [0, 0, 1, 1], [], []>} : vector<16x16xbf16>, vector<16x256xbf16>, vector<16x256xf32> -> vector<16x256xf32>
    %163 = arith.mulf %145, %157 : vector<16x256xf32>
    %cst_63 = arith.constant 9.99999997E-7 : f32
    %164 = vector.broadcast %cst_63 : f32 to vector<16x256xf32>
    %165 = arith.addf %162, %164 : vector<16x256xf32>
    %166 = tpu.reciprocal %165 {approx = true} : vector<16x256xf32> -> vector<16x256xf32>
    %167 = arith.mulf %163, %166 : vector<16x256xf32>
    %c0_64 = arith.constant 0 : index
    %c0_65 = arith.constant 0 : index
    %168 = vector.load %arg4[%c0_64, %c0_65] : memref<64x64xbf16, #tpu.memory_space<vmem>>, vector<64x64xbf16>
    %cst_66 = arith.constant dense<0.000000e+00> : vector<64x16xf32>
    %169 = tpu.matmul %168, %158, %cst_66 {dimension_numbers = #tpu.dot_dimension_numbers<[1], [1], [0], [0], [0, 0, 1, 0], [], []>} : vector<64x64xbf16>, vector<16x64xbf16>, vector<64x16xf32> -> vector<64x16xf32>
    %170 = arith.truncf %169 : vector<64x16xf32> to vector<64x16xbf16>
    %171 = arith.truncf %167 : vector<16x256xf32> to vector<16x256xbf16>
    %cst_67 = arith.constant dense<0.000000e+00> : vector<64x256xf32>
    %172 = tpu.matmul %170, %171, %cst_67 {dimension_numbers = #tpu.dot_dimension_numbers<[1], [0], [0], [1], [0, 0, 1, 1], [], []>} : vector<64x16xbf16>, vector<16x256xbf16>, vector<64x256xf32> -> vector<64x256xf32>
    %c0_68 = arith.constant 0 : index
    %c0_69 = arith.constant 0 : index
    %173 = vector.load %arg5[%c0_68, %c0_69] : memref<64x1xf32, #tpu.memory_space<vmem>>, vector<64x1xf32>
    %174 = vector.broadcast %173 : vector<64x1xf32> to vector<64x256xf32>
    %175 = arith.addf %172, %174 : vector<64x256xf32>
    %c0_70 = arith.constant 0 : index
    %c0_71 = arith.constant 0 : index
    %c0_72 = arith.constant 0 : index
    %176 = vector.load %arg1[%c0_70, %c0_71, %c0_72] : memref<1x64x256xf32, #tpu.memory_space<vmem>>, vector<1x64x256xf32>
    %177 = vector.shape_cast %176 : vector<1x64x256xf32> to vector<64x256xf32>
    %178 = arith.addf %177, %175 : vector<64x256xf32>
    %cst_73 = arith.constant 0.000000e+00 : f32
    %179 = vector.broadcast %cst_73 : f32 to vector<64x256xf32>
    %180 = arith.maximumf %178, %179 : vector<64x256xf32>
    %c0_74 = arith.constant 0 : index
    %c0_75 = arith.constant 0 : index
    %c0_76 = arith.constant 0 : index
    %181 = vector.load %arg7[%c0_74, %c0_75, %c0_76] : memref<1x64x256xf32, #tpu.memory_space<vmem>>, vector<1x64x256xf32>
    %182 = vector.shape_cast %181 : vector<1x64x256xf32> to vector<64x256xf32>
    %183 = vector.shape_cast %180 : vector<64x256xf32> to vector<1x64x256xf32>
    tpu.vector_store %arg7[%c0_74, %c0_75, %c0_76], %183 {strides = array<i32>} : memref<1x64x256xf32, #tpu.memory_space<vmem>>, vector<1x64x256xf32>,
    return
  }
  func.func @transform_0(%arg0: i32) -> (i32, i32, i32) {
    %c0_i32 = arith.constant 0 : i32
    %c0_i32_0 = arith.constant 0 : i32
    %c0_i32_1 = arith.constant 0 : i32
    return %arg0, %c0_i32, %c0_i32_0 : i32, i32, i32
  }
  func.func @transform_1(%arg0: i32) -> (i32, i32) {
    %c0_i32 = arith.constant 0 : i32
    %c0_i32_0 = arith.constant 0 : i32
    %c0_i32_1 = arith.constant 0 : i32
    return %c0_i32, %c0_i32_0 : i32, i32
  }
  func.func @transform_2(%arg0: i32) -> (i32, i32) {
    %c0_i32 = arith.constant 0 : i32
    %c0_i32_0 = arith.constant 0 : i32
    %c0_i32_1 = arith.constant 0 : i32
    return %c0_i32, %c0_i32_0 : i32, i32
  }
  func.func @transform_3(%arg0: i32) -> (i32, i32) {
    %c0_i32 = arith.constant 0 : i32
    %c0_i32_0 = arith.constant 0 : i32
    %c0_i32_1 = arith.constant 0 : i32
    return %c0_i32, %c0_i32_0 : i32, i32
  }
  func.func @transform_4(%arg0: i32) -> (i32, i32) {
    %c0_i32 = arith.constant 0 : i32
    %c0_i32_0 = arith.constant 0 : i32
    %c0_i32_1 = arith.constant 0 : i32
    return %c0_i32, %c0_i32_0 : i32, i32
  }
  func.func @transform_5(%arg0: i32) -> (i32, i32, i32) {
    %c0_i32 = arith.constant 0 : i32
    %c0_i32_0 = arith.constant 0 : i32
    %c0_i32_1 = arith.constant 0 : i32
    return %arg0, %c0_i32, %c0_i32_0 : i32, i32, i32
  }
  func.func @transform_6(%arg0: i32) -> (i32, i32, i32) {
    %c0_i32 = arith.constant 0 : i32
    %c0_i32_0 = arith.constant 0 : i32
    %c0_i32_1 = arith.constant 0 : i32
    return %arg0, %c0_i32, %c0_i32_0 : i32, i32, i32
  }
}

module attributes {stable_mosaic.version = 11 : i64} {
  func.func @_hamburger_kernel(%arg0: i32, %arg1: memref<1x64x256xf32, #tpu.memory_space<vmem>>, %arg2: memref<64x64xbf16, #tpu.memory_space<vmem>>, %arg3: memref<64x1xf32, #tpu.memory_space<vmem>>, %arg4: memref<64x64xbf16, #tpu.memory_space<vmem>>, %arg5: memref<64x1xf32, #tpu.memory_space<vmem>>, %arg6: memref<1x16x64xf32, #tpu.memory_space<vmem>>, %arg7: memref<1x64x256xf32, #tpu.memory_space<vmem>>) attributes {dimension_semantics = [#tpu.dimension_semantics<parallel>], iteration_bounds = array<i64: 2>, scalar_prefetch = 0 : i64, scratch_operands = 0 : i64, tpu.core_type = #tpu.core_type<tc>, window_params = [{transform_indices = @transform_0, window_bounds = array<i64: 1, 64, 256>}, {pipeline_mode = #tpu.pipeline_mode<synchronous>, transform_indices = @transform_1, window_bounds = array<i64: 64, 64>}, {pipeline_mode = #tpu.pipeline_mode<synchronous>, transform_indices = @transform_2, window_bounds = array<i64: 64, 1>}, {pipeline_mode = #tpu.pipeline_mode<synchronous>, transform_indices = @transform_3, window_bounds = array<i64: 64, 64>}, {pipeline_mode = #tpu.pipeline_mode<synchronous>, transform_indices = @transform_4, window_bounds = array<i64: 64, 1>}, {transform_indices = @transform_5, window_bounds = array<i64: 1, 16, 64>}, {transform_indices = @transform_6, window_bounds = array<i64: 1, 64, 256>}]} {
    %c0 = arith.constant 0 : index
    %c0_0 = arith.constant 0 : index
    %0 = vector.load %arg2[%c0, %c0_0] : memref<64x64xbf16, #tpu.memory_space<vmem>>, vector<64x64xbf16>
    %c0_1 = arith.constant 0 : index
    %c0_2 = arith.constant 0 : index
    %c0_3 = arith.constant 0 : index
    %1 = vector.load %arg1[%c0_1, %c0_2, %c0_3] : memref<1x64x256xf32, #tpu.memory_space<vmem>>, vector<1x64x256xf32>
    %2 = vector.shape_cast %1 : vector<1x64x256xf32> to vector<64x256xf32>
    %3 = arith.truncf %2 : vector<64x256xf32> to vector<64x256xbf16>
    %cst = arith.constant dense<0.000000e+00> : vector<64x256xf32>
    %4 = tpu.matmul %0, %3, %cst {dimension_numbers = #tpu.dot_dimension_numbers<[1], [0], [0], [1], [0, 0, 1, 1], [], []>} : vector<64x64xbf16>, vector<64x256xbf16>, vector<64x256xf32> -> vector<64x256xf32>
    %c0_4 = arith.constant 0 : index
    %c0_5 = arith.constant 0 : index
    %5 = vector.load %arg3[%c0_4, %c0_5] : memref<64x1xf32, #tpu.memory_space<vmem>>, vector<64x1xf32>
    %6 = vector.broadcast %5 : vector<64x1xf32> to vector<64x256xf32>
    %7 = arith.addf %4, %6 : vector<64x256xf32>
    %cst_6 = arith.constant 0.000000e+00 : f32
    %8 = vector.broadcast %cst_6 : f32 to vector<64x256xf32>
    %9 = arith.maximumf %7, %8 : vector<64x256xf32>
    %10 = arith.truncf %9 : vector<64x256xf32> to vector<64x256xbf16>
    %11 = tpu.transpose %9, [1, 0] : vector<64x256xf32> -> vector<256x64xf32>
    %12 = arith.truncf %11 : vector<256x64xf32> to vector<256x64xbf16>
    %c0_7 = arith.constant 0 : index
    %c0_8 = arith.constant 0 : index
    %c0_9 = arith.constant 0 : index
    %13 = vector.load %arg6[%c0_7, %c0_8, %c0_9] : memref<1x16x64xf32, #tpu.memory_space<vmem>>, vector<1x16x64xf32>
    %14 = vector.shape_cast %13 : vector<1x16x64xf32> to vector<16x64xf32>
    %15 = arith.truncf %14 : vector<16x64xf32> to vector<16x64xbf16>
    %cst_10 = arith.constant dense<0.000000e+00> : vector<16x256xf32>
    %16 = tpu.matmul %15, %10, %cst_10 {dimension_numbers = #tpu.dot_dimension_numbers<[1], [0], [0], [1], [0, 0, 1, 1], [], []>} : vector<16x64xbf16>, vector<64x256xbf16>, vector<16x256xf32> -> vector<16x256xf32>
    %cst_11 = arith.constant dense<0xFF800000> : vector<256xf32>
    %17 = vector.multi_reduction <maximumf>, %16, %cst_11 [0] : vector<16x256xf32> to vector<256xf32>
    %18 = vector.shape_cast %17 : vector<256xf32> to vector<1x256xf32>
    %19 = vector.broadcast %18 : vector<1x256xf32> to vector<16x256xf32>
    %20 = arith.subf %16, %19 : vector<16x256xf32>
    %21 = math.exp %20 : vector<16x256xf32>
    %cst_12 = arith.constant dense<0.000000e+00> : vector<256xf32>
    %22 = vector.multi_reduction <add>, %21, %cst_12 [0] : vector<16x256xf32> to vector<256xf32>
    %23 = vector.shape_cast %22 : vector<256xf32> to vector<1x256xf32>
    %24 = vector.broadcast %23 : vector<1x256xf32> to vector<16x256xf32>
    %25 = arith.divf %21, %24 : vector<16x256xf32>
    %26 = arith.truncf %14 : vector<16x64xf32> to vector<16x64xbf16>
    %cst_13 = arith.constant dense<0.000000e+00> : vector<16x16xf32>
    %27 = tpu.matmul %26, %26, %cst_13 {dimension_numbers = #tpu.dot_dimension_numbers<[1], [1], [0], [0], [0, 0, 1, 0], [], []>} : vector<16x64xbf16>, vector<16x64xbf16>, vector<16x16xf32> -> vector<16x16xf32>
    %28 = arith.truncf %27 : vector<16x16xf32> to vector<16x16xbf16>
    %29 = arith.truncf %25 : vector<16x256xf32> to vector<16x256xbf16>
    %cst_14 = arith.constant dense<0.000000e+00> : vector<16x256xf32>
    %30 = tpu.matmul %28, %29, %cst_14 {dimension_numbers = #tpu.dot_dimension_numbers<[1], [0], [0], [1], [0, 0, 1, 1], [], []>} : vector<16x16xbf16>, vector<16x256xbf16>, vector<16x256xf32> -> vector<16x256xf32>
    %31 = arith.mulf %25, %16 : vector<16x256xf32>
    %cst_15 = arith.constant 9.99999997E-7 : f32
    %32 = vector.broadcast %cst_15 : f32 to vector<16x256xf32>
    %33 = arith.addf %30, %32 : vector<16x256xf32>
    %34 = tpu.reciprocal %33 {approx = true} : vector<16x256xf32> -> vector<16x256xf32>
    %35 = arith.mulf %31, %34 : vector<16x256xf32>
    %36 = arith.truncf %35 : vector<16x256xf32> to vector<16x256xbf16>
    %cst_16 = arith.constant dense<0.000000e+00> : vector<16x64xf32>
    %37 = tpu.matmul %36, %12, %cst_16 {dimension_numbers = #tpu.dot_dimension_numbers<[1], [0], [0], [1], [0, 0, 1, 1], [], []>} : vector<16x256xbf16>, vector<256x64xbf16>, vector<16x64xf32> -> vector<16x64xf32>
    %cst_17 = arith.constant dense<0.000000e+00> : vector<16x16xf32>
    %38 = tpu.matmul %36, %36, %cst_17 {dimension_numbers = #tpu.dot_dimension_numbers<[1], [1], [0], [0], [0, 0, 1, 0], [], []>} : vector<16x256xbf16>, vector<16x256xbf16>, vector<16x16xf32> -> vector<16x16xf32>
    %39 = arith.truncf %38 : vector<16x16xf32> to vector<16x16xbf16>
    %cst_18 = arith.constant dense<0.000000e+00> : vector<16x64xf32>
    %40 = tpu.matmul %39, %26, %cst_18 {dimension_numbers = #tpu.dot_dimension_numbers<[1], [0], [0], [1], [0, 0, 1, 1], [], []>} : vector<16x16xbf16>, vector<16x64xbf16>, vector<16x64xf32> -> vector<16x64xf32>
    %41 = arith.mulf %14, %37 : vector<16x64xf32>
    %cst_19 = arith.constant 9.99999997E-7 : f32
    %42 = vector.broadcast %cst_19 : f32 to vector<16x64xf32>
    %43 = arith.addf %40, %42 : vector<16x64xf32>
    %44 = tpu.reciprocal %43 {approx = true} : vector<16x64xf32> -> vector<16x64xf32>
    %45 = arith.mulf %41, %44 : vector<16x64xf32>
    %46 = arith.truncf %45 : vector<16x64xf32> to vector<16x64xbf16>
    %cst_20 = arith.constant dense<0.000000e+00> : vector<16x256xf32>
    %47 = tpu.matmul %46, %10, %cst_20 {dimension_numbers = #tpu.dot_dimension_numbers<[1], [0], [0], [1], [0, 0, 1, 1], [], []>} : vector<16x64xbf16>, vector<64x256xbf16>, vector<16x256xf32> -> vector<16x256xf32>
    %48 = arith.truncf %45 : vector<16x64xf32> to vector<16x64xbf16>
    %cst_21 = arith.constant dense<0.000000e+00> : vector<16x16xf32>
    %49 = tpu.matmul %48, %48, %cst_21 {dimension_numbers = #tpu.dot_dimension_numbers<[1], [1], [0], [0], [0, 0, 1, 0], [], []>} : vector<16x64xbf16>, vector<16x64xbf16>, vector<16x16xf32> -> vector<16x16xf32>
    %50 = arith.truncf %49 : vector<16x16xf32> to vector<16x16xbf16>
    %51 = arith.truncf %35 : vector<16x256xf32> to vector<16x256xbf16>
    %cst_22 = arith.constant dense<0.000000e+00> : vector<16x256xf32>
    %52 = tpu.matmul %50, %51, %cst_22 {dimension_numbers = #tpu.dot_dimension_numbers<[1], [0], [0], [1], [0, 0, 1, 1], [], []>} : vector<16x16xbf16>, vector<16x256xbf16>, vector<16x256xf32> -> vector<16x256xf32>
    %53 = arith.mulf %35, %47 : vector<16x256xf32>
    %cst_23 = arith.constant 9.99999997E-7 : f32
    %54 = vector.broadcast %cst_23 : f32 to vector<16x256xf32>
    %55 = arith.addf %52, %54 : vector<16x256xf32>
    %56 = tpu.reciprocal %55 {approx = true} : vector<16x256xf32> -> vector<16x256xf32>
    %57 = arith.mulf %53, %56 : vector<16x256xf32>
    %58 = arith.truncf %57 : vector<16x256xf32> to vector<16x256xbf16>
    %cst_24 = arith.constant dense<0.000000e+00> : vector<16x64xf32>
    %59 = tpu.matmul %58, %12, %cst_24 {dimension_numbers = #tpu.dot_dimension_numbers<[1], [0], [0], [1], [0, 0, 1, 1], [], []>} : vector<16x256xbf16>, vector<256x64xbf16>, vector<16x64xf32> -> vector<16x64xf32>
    %cst_25 = arith.constant dense<0.000000e+00> : vector<16x16xf32>
    %60 = tpu.matmul %58, %58, %cst_25 {dimension_numbers = #tpu.dot_dimension_numbers<[1], [1], [0], [0], [0, 0, 1, 0], [], []>} : vector<16x256xbf16>, vector<16x256xbf16>, vector<16x16xf32> -> vector<16x16xf32>
    %61 = arith.truncf %60 : vector<16x16xf32> to vector<16x16xbf16>
    %cst_26 = arith.constant dense<0.000000e+00> : vector<16x64xf32>
    %62 = tpu.matmul %61, %48, %cst_26 {dimension_numbers = #tpu.dot_dimension_numbers<[1], [0], [0], [1], [0, 0, 1, 1], [], []>} : vector<16x16xbf16>, vector<16x64xbf16>, vector<16x64xf32> -> vector<16x64xf32>
    %63 = arith.mulf %45, %59 : vector<16x64xf32>
    %cst_27 = arith.constant 9.99999997E-7 : f32
    %64 = vector.broadcast %cst_27 : f32 to vector<16x64xf32>
    %65 = arith.addf %62, %64 : vector<16x64xf32>
    %66 = tpu.reciprocal %65 {approx = true} : vector<16x64xf32> -> vector<16x64xf32>
    %67 = arith.mulf %63, %66 : vector<16x64xf32>
    %68 = arith.truncf %67 : vector<16x64xf32> to vector<16x64xbf16>
    %cst_28 = arith.constant dense<0.000000e+00> : vector<16x256xf32>
    %69 = tpu.matmul %68, %10, %cst_28 {dimension_numbers = #tpu.dot_dimension_numbers<[1], [0], [0], [1], [0, 0, 1, 1], [], []>} : vector<16x64xbf16>, vector<64x256xbf16>, vector<16x256xf32> -> vector<16x256xf32>
    %70 = arith.truncf %67 : vector<16x64xf32> to vector<16x64xbf16>
    %cst_29 = arith.constant dense<0.000000e+00> : vector<16x16xf32>
    %71 = tpu.matmul %70, %70, %cst_29 {dimension_numbers = #tpu.dot_dimension_numbers<[1], [1], [0], [0], [0, 0, 1, 0], [], []>} : vector<16x64xbf16>, vector<16x64xbf16>, vector<16x16xf32> -> vector<16x16xf32>
    %72 = arith.truncf %71 : vector<16x16xf32> to vector<16x16xbf16>
    %73 = arith.truncf %57 : vector<16x256xf32> to vector<16x256xbf16>
    %cst_30 = arith.constant dense<0.000000e+00> : vector<16x256xf32>
    %74 = tpu.matmul %72, %73, %cst_30 {dimension_numbers = #tpu.dot_dimension_numbers<[1], [0], [0], [1], [0, 0, 1, 1], [], []>} : vector<16x16xbf16>, vector<16x256xbf16>, vector<16x256xf32> -> vector<16x256xf32>
    %75 = arith.mulf %57, %69 : vector<16x256xf32>
    %cst_31 = arith.constant 9.99999997E-7 : f32
    %76 = vector.broadcast %cst_31 : f32 to vector<16x256xf32>
    %77 = arith.addf %74, %76 : vector<16x256xf32>
    %78 = tpu.reciprocal %77 {approx = true} : vector<16x256xf32> -> vector<16x256xf32>
    %79 = arith.mulf %75, %78 : vector<16x256xf32>
    %80 = arith.truncf %79 : vector<16x256xf32> to vector<16x256xbf16>
    %cst_32 = arith.constant dense<0.000000e+00> : vector<16x64xf32>
    %81 = tpu.matmul %80, %12, %cst_32 {dimension_numbers = #tpu.dot_dimension_numbers<[1], [0], [0], [1], [0, 0, 1, 1], [], []>} : vector<16x256xbf16>, vector<256x64xbf16>, vector<16x64xf32> -> vector<16x64xf32>
    %cst_33 = arith.constant dense<0.000000e+00> : vector<16x16xf32>
    %82 = tpu.matmul %80, %80, %cst_33 {dimension_numbers = #tpu.dot_dimension_numbers<[1], [1], [0], [0], [0, 0, 1, 0], [], []>} : vector<16x256xbf16>, vector<16x256xbf16>, vector<16x16xf32> -> vector<16x16xf32>
    %83 = arith.truncf %82 : vector<16x16xf32> to vector<16x16xbf16>
    %cst_34 = arith.constant dense<0.000000e+00> : vector<16x64xf32>
    %84 = tpu.matmul %83, %70, %cst_34 {dimension_numbers = #tpu.dot_dimension_numbers<[1], [0], [0], [1], [0, 0, 1, 1], [], []>} : vector<16x16xbf16>, vector<16x64xbf16>, vector<16x64xf32> -> vector<16x64xf32>
    %85 = arith.mulf %67, %81 : vector<16x64xf32>
    %cst_35 = arith.constant 9.99999997E-7 : f32
    %86 = vector.broadcast %cst_35 : f32 to vector<16x64xf32>
    %87 = arith.addf %84, %86 : vector<16x64xf32>
    %88 = tpu.reciprocal %87 {approx = true} : vector<16x64xf32> -> vector<16x64xf32>
    %89 = arith.mulf %85, %88 : vector<16x64xf32>
    %90 = arith.truncf %89 : vector<16x64xf32> to vector<16x64xbf16>
    %cst_36 = arith.constant dense<0.000000e+00> : vector<16x256xf32>
    %91 = tpu.matmul %90, %10, %cst_36 {dimension_numbers = #tpu.dot_dimension_numbers<[1], [0], [0], [1], [0, 0, 1, 1], [], []>} : vector<16x64xbf16>, vector<64x256xbf16>, vector<16x256xf32> -> vector<16x256xf32>
    %92 = arith.truncf %89 : vector<16x64xf32> to vector<16x64xbf16>
    %cst_37 = arith.constant dense<0.000000e+00> : vector<16x16xf32>
    %93 = tpu.matmul %92, %92, %cst_37 {dimension_numbers = #tpu.dot_dimension_numbers<[1], [1], [0], [0], [0, 0, 1, 0], [], []>} : vector<16x64xbf16>, vector<16x64xbf16>, vector<16x16xf32> -> vector<16x16xf32>
    %94 = arith.truncf %93 : vector<16x16xf32> to vector<16x16xbf16>
    %95 = arith.truncf %79 : vector<16x256xf32> to vector<16x256xbf16>
    %cst_38 = arith.constant dense<0.000000e+00> : vector<16x256xf32>
    %96 = tpu.matmul %94, %95, %cst_38 {dimension_numbers = #tpu.dot_dimension_numbers<[1], [0], [0], [1], [0, 0, 1, 1], [], []>} : vector<16x16xbf16>, vector<16x256xbf16>, vector<16x256xf32> -> vector<16x256xf32>
    %97 = arith.mulf %79, %91 : vector<16x256xf32>
    %cst_39 = arith.constant 9.99999997E-7 : f32
    %98 = vector.broadcast %cst_39 : f32 to vector<16x256xf32>
    %99 = arith.addf %96, %98 : vector<16x256xf32>
    %100 = tpu.reciprocal %99 {approx = true} : vector<16x256xf32> -> vector<16x256xf32>
    %101 = arith.mulf %97, %100 : vector<16x256xf32>
    %102 = arith.truncf %101 : vector<16x256xf32> to vector<16x256xbf16>
    %cst_40 = arith.constant dense<0.000000e+00> : vector<16x64xf32>
    %103 = tpu.matmul %102, %12, %cst_40 {dimension_numbers = #tpu.dot_dimension_numbers<[1], [0], [0], [1], [0, 0, 1, 1], [], []>} : vector<16x256xbf16>, vector<256x64xbf16>, vector<16x64xf32> -> vector<16x64xf32>
    %cst_41 = arith.constant dense<0.000000e+00> : vector<16x16xf32>
    %104 = tpu.matmul %102, %102, %cst_41 {dimension_numbers = #tpu.dot_dimension_numbers<[1], [1], [0], [0], [0, 0, 1, 0], [], []>} : vector<16x256xbf16>, vector<16x256xbf16>, vector<16x16xf32> -> vector<16x16xf32>
    %105 = arith.truncf %104 : vector<16x16xf32> to vector<16x16xbf16>
    %cst_42 = arith.constant dense<0.000000e+00> : vector<16x64xf32>
    %106 = tpu.matmul %105, %92, %cst_42 {dimension_numbers = #tpu.dot_dimension_numbers<[1], [0], [0], [1], [0, 0, 1, 1], [], []>} : vector<16x16xbf16>, vector<16x64xbf16>, vector<16x64xf32> -> vector<16x64xf32>
    %107 = arith.mulf %89, %103 : vector<16x64xf32>
    %cst_43 = arith.constant 9.99999997E-7 : f32
    %108 = vector.broadcast %cst_43 : f32 to vector<16x64xf32>
    %109 = arith.addf %106, %108 : vector<16x64xf32>
    %110 = tpu.reciprocal %109 {approx = true} : vector<16x64xf32> -> vector<16x64xf32>
    %111 = arith.mulf %107, %110 : vector<16x64xf32>
    %112 = arith.truncf %111 : vector<16x64xf32> to vector<16x64xbf16>
    %cst_44 = arith.constant dense<0.000000e+00> : vector<16x256xf32>
    %113 = tpu.matmul %112, %10, %cst_44 {dimension_numbers = #tpu.dot_dimension_numbers<[1], [0], [0], [1], [0, 0, 1, 1], [], []>} : vector<16x64xbf16>, vector<64x256xbf16>, vector<16x256xf32> -> vector<16x256xf32>
    %114 = arith.truncf %111 : vector<16x64xf32> to vector<16x64xbf16>
    %cst_45 = arith.constant dense<0.000000e+00> : vector<16x16xf32>
    %115 = tpu.matmul %114, %114, %cst_45 {dimension_numbers = #tpu.dot_dimension_numbers<[1], [1], [0], [0], [0, 0, 1, 0], [], []>} : vector<16x64xbf16>, vector<16x64xbf16>, vector<16x16xf32> -> vector<16x16xf32>
    %116 = arith.truncf %115 : vector<16x16xf32> to vector<16x16xbf16>
    %117 = arith.truncf %101 : vector<16x256xf32> to vector<16x256xbf16>
    %cst_46 = arith.constant dense<0.000000e+00> : vector<16x256xf32>
    %118 = tpu.matmul %116, %117, %cst_46 {dimension_numbers = #tpu.dot_dimension_numbers<[1], [0], [0], [1], [0, 0, 1, 1], [], []>} : vector<16x16xbf16>, vector<16x256xbf16>, vector<16x256xf32> -> vector<16x256xf32>
    %119 = arith.mulf %101, %113 : vector<16x256xf32>
    %cst_47 = arith.constant 9.99999997E-7 : f32
    %120 = vector.broadcast %cst_47 : f32 to vector<16x256xf32>
    %121 = arith.addf %118, %120 : vector<16x256xf32>
    %122 = tpu.reciprocal %121 {approx = true} : vector<16x256xf32> -> vector<16x256xf32>
    %123 = arith.mulf %119, %122 : vector<16x256xf32>
    %124 = arith.truncf %123 : vector<16x256xf32> to vector<16x256xbf16>
    %cst_48 = arith.constant dense<0.000000e+00> : vector<16x64xf32>
    %125 = tpu.matmul %124, %12, %cst_48 {dimension_numbers = #tpu.dot_dimension_numbers<[1], [0], [0], [1], [0, 0, 1, 1], [], []>} : vector<16x256xbf16>, vector<256x64xbf16>, vector<16x64xf32> -> vector<16x64xf32>
    %cst_49 = arith.constant dense<0.000000e+00> : vector<16x16xf32>
    %126 = tpu.matmul %124, %124, %cst_49 {dimension_numbers = #tpu.dot_dimension_numbers<[1], [1], [0], [0], [0, 0, 1, 0], [], []>} : vector<16x256xbf16>, vector<16x256xbf16>, vector<16x16xf32> -> vector<16x16xf32>
    %127 = arith.truncf %126 : vector<16x16xf32> to vector<16x16xbf16>
    %cst_50 = arith.constant dense<0.000000e+00> : vector<16x64xf32>
    %128 = tpu.matmul %127, %114, %cst_50 {dimension_numbers = #tpu.dot_dimension_numbers<[1], [0], [0], [1], [0, 0, 1, 1], [], []>} : vector<16x16xbf16>, vector<16x64xbf16>, vector<16x64xf32> -> vector<16x64xf32>
    %129 = arith.mulf %111, %125 : vector<16x64xf32>
    %cst_51 = arith.constant 9.99999997E-7 : f32
    %130 = vector.broadcast %cst_51 : f32 to vector<16x64xf32>
    %131 = arith.addf %128, %130 : vector<16x64xf32>
    %132 = tpu.reciprocal %131 {approx = true} : vector<16x64xf32> -> vector<16x64xf32>
    %133 = arith.mulf %129, %132 : vector<16x64xf32>
    %134 = arith.truncf %133 : vector<16x64xf32> to vector<16x64xbf16>
    %cst_52 = arith.constant dense<0.000000e+00> : vector<16x256xf32>
    %135 = tpu.matmul %134, %10, %cst_52 {dimension_numbers = #tpu.dot_dimension_numbers<[1], [0], [0], [1], [0, 0, 1, 1], [], []>} : vector<16x64xbf16>, vector<64x256xbf16>, vector<16x256xf32> -> vector<16x256xf32>
    %136 = arith.truncf %133 : vector<16x64xf32> to vector<16x64xbf16>
    %cst_53 = arith.constant dense<0.000000e+00> : vector<16x16xf32>
    %137 = tpu.matmul %136, %136, %cst_53 {dimension_numbers = #tpu.dot_dimension_numbers<[1], [1], [0], [0], [0, 0, 1, 0], [], []>} : vector<16x64xbf16>, vector<16x64xbf16>, vector<16x16xf32> -> vector<16x16xf32>
    %138 = arith.truncf %137 : vector<16x16xf32> to vector<16x16xbf16>
    %139 = arith.truncf %123 : vector<16x256xf32> to vector<16x256xbf16>
    %cst_54 = arith.constant dense<0.000000e+00> : vector<16x256xf32>
    %140 = tpu.matmul %138, %139, %cst_54 {dimension_numbers = #tpu.dot_dimension_numbers<[1], [0], [0], [1], [0, 0, 1, 1], [], []>} : vector<16x16xbf16>, vector<16x256xbf16>, vector<16x256xf32> -> vector<16x256xf32>
    %141 = arith.mulf %123, %135 : vector<16x256xf32>
    %cst_55 = arith.constant 9.99999997E-7 : f32
    %142 = vector.broadcast %cst_55 : f32 to vector<16x256xf32>
    %143 = arith.addf %140, %142 : vector<16x256xf32>
    %144 = tpu.reciprocal %143 {approx = true} : vector<16x256xf32> -> vector<16x256xf32>
    %145 = arith.mulf %141, %144 : vector<16x256xf32>
    %146 = arith.truncf %145 : vector<16x256xf32> to vector<16x256xbf16>
    %cst_56 = arith.constant dense<0.000000e+00> : vector<16x64xf32>
    %147 = tpu.matmul %146, %12, %cst_56 {dimension_numbers = #tpu.dot_dimension_numbers<[1], [0], [0], [1], [0, 0, 1, 1], [], []>} : vector<16x256xbf16>, vector<256x64xbf16>, vector<16x64xf32> -> vector<16x64xf32>
    %cst_57 = arith.constant dense<0.000000e+00> : vector<16x16xf32>
    %148 = tpu.matmul %146, %146, %cst_57 {dimension_numbers = #tpu.dot_dimension_numbers<[1], [1], [0], [0], [0, 0, 1, 0], [], []>} : vector<16x256xbf16>, vector<16x256xbf16>, vector<16x16xf32> -> vector<16x16xf32>
    %149 = arith.truncf %148 : vector<16x16xf32> to vector<16x16xbf16>
    %cst_58 = arith.constant dense<0.000000e+00> : vector<16x64xf32>
    %150 = tpu.matmul %149, %136, %cst_58 {dimension_numbers = #tpu.dot_dimension_numbers<[1], [0], [0], [1], [0, 0, 1, 1], [], []>} : vector<16x16xbf16>, vector<16x64xbf16>, vector<16x64xf32> -> vector<16x64xf32>
    %151 = arith.mulf %133, %147 : vector<16x64xf32>
    %cst_59 = arith.constant 9.99999997E-7 : f32
    %152 = vector.broadcast %cst_59 : f32 to vector<16x64xf32>
    %153 = arith.addf %150, %152 : vector<16x64xf32>
    %154 = tpu.reciprocal %153 {approx = true} : vector<16x64xf32> -> vector<16x64xf32>
    %155 = arith.mulf %151, %154 : vector<16x64xf32>
    %156 = arith.truncf %155 : vector<16x64xf32> to vector<16x64xbf16>
    %cst_60 = arith.constant dense<0.000000e+00> : vector<16x256xf32>
    %157 = tpu.matmul %156, %10, %cst_60 {dimension_numbers = #tpu.dot_dimension_numbers<[1], [0], [0], [1], [0, 0, 1, 1], [], []>} : vector<16x64xbf16>, vector<64x256xbf16>, vector<16x256xf32> -> vector<16x256xf32>
    %158 = arith.truncf %155 : vector<16x64xf32> to vector<16x64xbf16>
    %cst_61 = arith.constant dense<0.000000e+00> : vector<16x16xf32>
    %159 = tpu.matmul %158, %158, %cst_61 {dimension_numbers = #tpu.dot_dimension_numbers<[1], [1], [0], [0], [0, 0, 1, 0], [], []>} : vector<16x64xbf16>, vector<16x64xbf16>, vector<16x16xf32> -> vector<16x16xf32>
    %160 = arith.truncf %159 : vector<16x16xf32> to vector<16x16xbf16>
    %161 = arith.truncf %145 : vector<16x256xf32> to vector<16x256xbf16>
    %cst_62 = arith.constant dense<0.000000e+00> : vector<16x256xf32>
    %162 = tpu.matmul %160, %161, %cst_62 {dimension_numbers = #tpu.dot_dimension_numbers<[1], [0], [0], [1], [0, 0, 1, 1], [], []>} : vector<16x16xbf16>, vector<16x256xbf16>, vector<16x256xf32> -> vector<16x256xf32>
    %163 = arith.mulf %145, %157 : vector<16x256xf32>
    %cst_63 = arith.constant 9.99999997E-7 : f32
    %164 = vector.broadcast %cst_63 : f32 to vector<16x256xf32>
    %165 = arith.addf %162, %164 : vector<16x256xf32>
    %166 = tpu.reciprocal %165 {approx = true} : vector<16x256xf32> -> vector<16x256xf32>
    %167 = arith.mulf %163, %166 : vector<16x256xf32>
    %c0_64 = arith.constant 0 : index
    %c0_65 = arith.constant 0 : index
    %168 = vector.load %arg4[%c0_64, %c0_65] : memref<64x64xbf16, #tpu.memory_space<vmem>>, vector<64x64xbf16>
    %cst_66 = arith.constant dense<0.000000e+00> : vector<64x16xf32>
    %169 = tpu.matmul %168, %158, %cst_66 {dimension_numbers = #tpu.dot_dimension_numbers<[1], [1], [0], [0], [0, 0, 1, 0], [], []>} : vector<64x64xbf16>, vector<16x64xbf16>, vector<64x16xf32> -> vector<64x16xf32>
    %170 = arith.truncf %169 : vector<64x16xf32> to vector<64x16xbf16>
    %171 = arith.truncf %167 : vector<16x256xf32> to vector<16x256xbf16>
    %cst_67 = arith.constant dense<0.000000e+00> : vector<64x256xf32>
    %172 = tpu.matmul %170, %171, %cst_67 {dimension_numbers = #tpu.dot_dimension_numbers<[1], [0], [0], [1], [0, 0, 1, 1], [], []>} : vector<64x16xbf16>, vector<16x256xbf16>, vector<64x256xf32> -> vector<64x256xf32>
    %c0_68 = arith.constant 0 : index
    %c0_69 = arith.constant 0 : index
    %173 = vector.load %arg5[%c0_68, %c0_69] : memref<64x1xf32, #tpu.memory_space<vmem>>, vector<64x1xf32>
    %174 = vector.broadcast %173 : vector<64x1xf32> to vector<64x256xf32>
    %175 = arith.addf %172, %174 : vector<64x256xf32>
    %c0_70 = arith.constant 0 : index
    %c0_71 = arith.constant 0 : index
    %c0_72 = arith.constant 0 : index
    %176 = vector.load %arg1[%c0_70, %c0_71, %c0_72] : memref<1x64x256xf32, #tpu.memory_space<vmem>>, vector<1x64x256xf32>
    %177 = vector.shape_cast %176 : vector<1x64x256xf32> to vector<64x256xf32>
    %178 = arith.addf %177, %175 : vector<64x256xf32>
    %cst_73 = arith.constant 0.000000e+00 : f32
    %179 = vector.broadcast %cst_73 : f32 to vector<64x256xf32>
    %180 = arith.maximumf %178, %179 : vector<64x256xf32>
    %c0_74 = arith.constant 0 : index
    %c0_75 = arith.constant 0 : index
    %c0_76 = arith.constant 0 : index
    %181 = vector.load %arg7[%c0_74, %c0_75, %c0_76] : memref<1x64x256xf32, #tpu.memory_space<vmem>>, vector<1x64x256xf32>
    %182 = vector.shape_cast %181 : vector<1x64x256xf32> to vector<64x256xf32>
    %183 = vector.shape_cast %180 : vector<64x256xf32> to vector<1x64x256xf32>
    tpu.vector_store %arg7[%c0_74, %c0_75, %c0_76], %183 {strides = array<i32>} : memref<1x64x256xf32, #tpu.memory_space<vmem>>, vector<1x64x256xf32>,
    return
  }
  func.func @transform_0(%arg0: i32) -> (i32, i32, i32) {
    %c0_i32 = arith.constant 0 : i32
    %c0_i32_0 = arith.constant 0 : i32
    %c0_i32_1 = arith.constant 0 : i32
    return %arg0, %c0_i32, %c0_i32_0 : i32, i32, i32
  }
  func.func @transform_1(%arg0: i32) -> (i32, i32) {
    %c0_i32 = arith.constant 0 : i32
    %c0_i32_0 = arith.constant 0 : i32
    %c0_i32_1 = arith.constant 0 : i32
    return %c0_i32, %c0_i32_0 : i32, i32
  }
  func.func @transform_2(%arg0: i32) -> (i32, i32) {
    %c0_i32 = arith.constant 0 : i32
    %c0_i32_0 = arith.constant 0 : i32
    %c0_i32_1 = arith.constant 0 : i32
    return %c0_i32, %c0_i32_0 : i32, i32
  }
  func.func @transform_3(%arg0: i32) -> (i32, i32) {
    %c0_i32 = arith.constant 0 : i32
    %c0_i32_0 = arith.constant 0 : i32
    %c0_i32_1 = arith.constant 0 : i32
    return %c0_i32, %c0_i32_0 : i32, i32
  }
  func.func @transform_4(%arg0: i32) -> (i32, i32) {
    %c0_i32 = arith.constant 0 : i32
    %c0_i32_0 = arith.constant 0 : i32
    %c0_i32_1 = arith.constant 0 : i32
    return %c0_i32, %c0_i32_0 : i32, i32
  }
  func.func @transform_5(%arg0: i32) -> (i32, i32, i32) {
    %c0_i32 = arith.constant 0 : i32
    %c0_i32_0 = arith.constant 0 : i32
    %c0_i32_1 = arith.constant 0 : i32
    return %arg0, %c0_i32, %c0_i32_0 : i32, i32, i32
  }
  func.func @transform_6(%arg0: i32) -> (i32, i32, i32) {
    %c0_i32 = arith.constant 0 : i32
    %c0_i32_0 = arith.constant 0 : i32
    %c0_i32_1 = arith.constant 0 : i32
    return %arg0, %c0_i32, %c0_i32_0 : i32, i32, i32
  }
}

</mosaic_0001>

<bundles_post_ra>
// kernel: tpu_custom_call.1
= control target key start
LH: loop header
LB: loop body
LE: loop exit
PB: predicated region body
PF: predicated region fallthrough
CT: control target
= control target key end

     0   :  { %11 = vsyncpa [#allocation3], 0  ;;  %s4448_s0 = inlined_call_operand.hbm [shape: f32[2,64,256], index: 0, kind: input, shape index: {}]   ;;  %s4449_s1 = inlined_call_operand.vmem [shape: bf16[64,64], index: 1, kind: input, shape index: {}]   ;;  %s4450_s2 = inlined_call_operand.vmem [shape: f32[64,1], index: 2, kind: input, shape index: {}]   ;;  %s4451_s3 = inlined_call_operand.vmem [shape: bf16[64,64], index: 3, kind: input, shape index: {}]   ;;  %s4452_s4 = inlined_call_operand.vmem [shape: f32[64,1], index: 4, kind: input, shape index: {}]   ;;  %s4453_s5 = inlined_call_operand.vmem [shape: f32[2,16,64], index: 5, kind: input, shape index: {}]   ;;  %s4454_s6 = inlined_call_operand.hbm [shape: f32[2,64,256], index: 6, kind: output, shape index: {}]  }
   0x1   :  { %13 = vsyncpa [#allocation3 + $0x1], 0 }
   0x2   :  { %14 = vsyncpa [#allocation4], 0 }
   0x3   :  { %16 = vsyncpa [#allocation4 + $0x1], 0  ;;  %s3585_s21 = smov 0   ;;  %s3587_s22 = smov 0  }
   0x4   :  { %s3589_s23 = smov 0   ;;  %s3591_s24 = smov 0  }
   0x5 LB: > { %s3606_s25 = sadd.s32 4294967295, %s3539_s24   ;;  %s2862_s26 = sadd.s32 4294967294, %s3539_s24   ;;  %s3539_s24 = sphi %s3591_s24, %s4469_s24   ;;  %s3535_s23 = sphi %s3589_s23, %s4468_s23   ;;  %s3531_s22 = sphi %s3587_s22, %s4467_s22   ;;  %s3527_s21 = sphi %s3585_s21, %s4466_s21  }
   0x6   : > { %s3610_s27 = sadd.s32 1, %s3539_s24   ;;  %s29_s28 = sadd.s32 1, %s3535_s23 }
   0x7   : > { %s26_s29 = ssub.s32 %s3539_s24, %s3610_s27  ;;  %p36_p0 = scmp.ne.s32.totalorder %s3535_s23, %s3531_s22 }
   0x8   : > { %p27_p1 = scmp.eq.s32.totalorder %s26_s29, 0  ;;  %p37_p2 = scmp.eq.s32.totalorder %s3539_s24, 0 }
   0x9   : > { %p42_p3 = scmp.ne.s32.totalorder %s3531_s22, %s3527_s21  ;;  %p43_p4 = scmp.eq.s32.totalorder %s3606_s25, 0 }
   0xa   : > { %s3622_s30 = scalar_select %p27_p1, %s3535_s23, %s29_s28  }
   0xb   : > { %p3624_p5 = por %p37_p2, %p36_p0  ;;  %p3628_p6 = por %p43_p4, %p42_p3 }
   0xc   : > { %p176_p7 = scmp.eq.s32.totalorder %s3606_s25, 1  ;;  %p182_p8 = scmp.eq.s32.totalorder %s2862_s26, 1 }
   0xd   : > { %s4458_s8 = scalar_select %p3628_p6, 1, 0 }
   0xe   : > { %p3192_p10 = scmp.lt.s32.totalorder %s3539_s24, 2  ;;  %p3635_p11 = por %p176_p7, %p36_p0 }
   0xf   : > { %p3639_p12 = por %p182_p8, %p42_p3  ;;  %s214_s11 = sand.u32 1, %s3535_s23  }
  0x10   : > { %s4459_s9 = scalar_select %p3635_p11, 1, 0 }
  0x11   : > { %s4460_s10 = scalar_select %p3639_p12, 1, 0 }
  0x12   : > { %s2925_s12 = sshll.u32 %s3539_s24, 11  ;;  %s2865_s13 = sshll.u32 %s214_s11, 7 }
  0x13   : > { %s3648_s16 = scalar_lea.hbm %s4448_s0, %s2925_s12  ;;  %s218_s17 = scalar_lea.vmem [#allocation2], %s2865_s13 }
  0x14   : > { %s225_s18 = sshll.u32 %s218_s17, 4  ;;  %p3652_p13 = pnand %p3192_p10, %p3624_p5  ;;  %s3656_s18 = int_to_ptr.vmem [resolvable:$true] %s225_s18 }
  0x15   : > { %s3658_s20 = scalar_lea.sflag [#allocation3], %s214_s11  ;;  %s3447_s26 = scalar_lea.hbm %s3648_s16, 2048 }
  0x16   : > { %p3448_p0 = scmp.ne.s32.totalorder %s3648_s16, %s3447_s26  ;;  %p3449_p1 = pneg %p3652_p13 }
  0x17   : > { %s3452_s12 = scalar_lea.hbm %s4448_s0, 4096  ;;  %p3453_p4 = scmp.lt.s32.totalorder %s3648_s16, %s4448_s0 }
  0x18   : > { %p3450_p2 = pnand %p3449_p1, %p3448_p0  ;;  %p3454_p5 = scmp.lt.s32.totalorder %s3452_s12, %s3447_s26 }
  0x1a   : > { %p3451_p3 = pneg %p3450_p2  ;;  %p3455_p7 = por %p3454_p5, %p3453_p4 }
  0x1c   : > { %p3456_p8 = pnand %p3455_p7, %p3451_p3 }
  0x1e   : > { %3459 = shalt.err (!%p3456_p8)
}
  0x1f   : > { %s3460_s11 = scalar_lea.vmem %s3656_s18, 2048  ;;  %s3541_s14 = smov [#allocation2]  }
  0x20   : > { %p3461_p10 = scmp.ne.s32.totalorder %s3656_s18, %s3460_s11  ;;  %s3465_s15 = sshll.u32 %s3541_s14, 4  ;;  %s3466_s15 = int_to_ptr.vmem [resolvable:$false] %s3465_s15 }
  0x21   : > { %s3467_s17 = scalar_lea.vmem %s3466_s15, 4096  ;;  %p3468_p2 = scmp.lt.s32.totalorder %s3656_s18, %s3466_s15 }
  0x22   : > { %p3463_p9 = pnand %p3461_p10, %p3449_p1  ;;  %p3469_p12 = scmp.lt.s32.totalorder %s3467_s17, %s3460_s11 }
  0x24   : > { %p3464_p0 = pneg %p3463_p9  ;;  %p3470_p11 = por %p3469_p12, %p3468_p2 }
  0x26   : > { %p3471_p6 = pnand %p3470_p11, %p3464_p0 }
  0x28   : > { %3474 = shalt.err (!%p3471_p6)
}
  0x29   : > { %s3542_s26 = smov 256   ;;  %s3543_s28 = smov 16  }
  0x2a   : > { %3187 = dma.hbm_to_vmem [thread:$0]  (!%p3652_p13), %s3648_s16, 2048, %s3656_s18, %s3658_s20, %s3542_s26, %s3542_s26, %s3543_s28  }
  0x2b   : > { %p2868_p9 = scmp.ge.s32.totalorder %s3539_s24, 1  ;;  %p241_p1 = scmp.lt.s32.totalorder %s3539_s24, 3 }
  0x2d   : > { %p242_p3 = pnand %p2868_p9, %p241_p1 }
  0x2e   : > { %s3682_s29 = sand.u32 (!%p242_p3), 1, %s3531_s22   ;;  %p4462_p6 = scmp.ne.s32.totalorder (!%p242_p3), %s4458_s8, 0 }
  0x2f   : > { %245 = sbr.rel (%p242_p3) target bundleno = 6157 (0x180d), region = 44  ;;  %s2869_s12 = sshll.u32 (!%p242_p3), %s3682_s29, 7 }
  0x30   : > { %s248_s7 = scalar_lea.sflag (!%p242_p3), [#allocation3], %s3682_s29  ;;  %s3688_s13 = scalar_lea.vmem (!%p242_p3), [#allocation2], %s2869_s12 }
  0x34   : > { %3518 = dma.done.wait (%p4462_p6), %s248_s7, 2048  }
  0x35   : > { %3520 = vsyncadd (%p4462_p6), %s248_s7, 4294965248  ;;  %v3544_v0 = vmov 0   ;;  %v312_v1 = vld [vmem:[%s3688_s13 + $0x68] sm:$0xff]  ;;  %v314_v2 = vld [vmem:[%s3688_s13 + $0x78] sm:$0xff]  ;;  %vm391_vm0 = vcmask 523264   ;;  %p285_p11 = scmp.lt.s32.totalorder %s3606_s25, 1 }
  0x36   : > { %436 = vmatprep.mubr.bf16.mxu0 %v3544_v0  ;;  %3234 = vset.pattern.permute.xlu1 %v3544_v0  ;;  %v311_v3 = vld [vmem:[%s3688_s13 + $0x60] sm:$0xff]  ;;  %v322_v4 = vpack.c.bf16 %v314_v2, %v312_v1  ;;  %v313_v5 = vld [vmem:[%s3688_s13 + $0x70] sm:$0xff]  ;;  %v308_v6 = vld [vmem:[%s3688_s13 + $0x48] sm:$0xff]  ;;  %vm3546_vm1 = vmmov 0   ;;  %vm724_vm2 = vcmask 130048   ;;  %s2764_s28 = scalar_lea.sflag [#allocation4], %s3682_s29 }
  0x37   : > { %3233 = vset.pattern.permute.xlu0 %v3544_v0  ;;  %619 = vmatprep.mubr.bf16.mxu1 %v3544_v0  ;;  %v310_v7 = vld [vmem:[%s3688_s13 + $0x58] sm:$0xff]  ;;  %v321_v8 = vpack.c.bf16 %v313_v5, %v311_v3  ;;  %v307_v10 = vld [vmem:[%s3688_s13 + $0x40] sm:$0xff]  ;;  %v309_v11 = vld [vmem:[%s3688_s13 + $0x50] sm:$0xff]  ;;  %s286_s20 = scalar_select %p285_p11, %s3606_s25, 1 }
  0x38   : > { %v320_v9 = vpack.c.bf16 %v310_v7, %v308_v6  ;;  %v304_v12 = vld [vmem:[%s3688_s13 + $0x28] sm:$0xff]  ;;  %412 = vmatprep.subr.bf16.mxu0 %v322_v4  ;;  %v306_v13 = vld [vmem:[%s3688_s13 + $0x38] sm:$0xff]  ;;  %v319_v14 = vpack.c.bf16 %v309_v11, %v307_v10  ;;  %v303_v15 = vld [vmem:[%s3688_s13 + $0x20] sm:$0xff]  ;;  %p4463_p13 = scmp.ne.s32.totalorder %s4459_s9, 0 }
  0x39   : > { %413 = vmatpush1.bf16.msra.mxu0 %v321_v8  ;;  %v305_v16 = vld [vmem:[%s3688_s13 + $0x30] sm:$0xff]  ;;  %v318_v17 = vpack.c.bf16 %v306_v13, %v304_v12  ;;  %v300_v18 = vld [vmem:[%s3688_s13 + $0x8] sm:$0xff]  ;;  %v302_v19 = vld [vmem:[%s3688_s13 + $0x18] sm:$0xff]  ;;  %s2926_s11 = sshll.u32 %s286_s20, 4 }
  0x3a   : > { %414 = vmatprep.subr.bf16.mxu0 %v320_v9  ;;  %v317_v20 = vpack.c.bf16 %v305_v16, %v303_v15  ;;  %v299_v21 = vld [vmem:[%s3688_s13] sm:$0xff]  ;;  %v316_v22 = vpack.c.bf16 %v302_v19, %v300_v18  ;;  %v301_v23 = vld [vmem:[%s3688_s13 + $0x10] sm:$0xff]  ;;  %v328_v26 = vld [vmem:[%s4450_s2 + $0x28] sm:$0xff]  ;;  %s289_s17 = scalar_lea.vmem %s4453_s5, %s2926_s11  ;;  %s4366_s11 = scalar_lea.vmem [#allocation5], %s2869_s12 }
  0x3b   : > { %v327_v24 = vld [vmem:[%s4450_s2 + $0x20] sm:$0xff]  ;;  %v329_v25 = vld [vmem:[%s4450_s2 + $0x30] sm:$0xff]  ;;  %v330_v27 = vld [vmem:[%s4450_s2 + $0x38] sm:$0xff]  ;;  %v315_v28 = vpack.c.bf16 %v301_v23, %v299_v21  ;;  %s2927_s12 = sshll.u32 %s3606_s25, 11  ;;  %s2777_s14 = sshll.u32 %s4366_s11, 4  ;;  %s4403_s14 = int_to_ptr.vmem [resolvable:$true] %s2777_s14 }
  0x3c   : > { %353 = vperm.xlu1 %3234, %v327_v24   ;;  %363 = vperm.xlu0 %3233, %v329_v25   ;;  %v3331_v29 = vld [vmem:[%s4449_s1] sm:$0xff]   ;;  %v326_v30 = vld [vmem:[%s4450_s2 + $0x18] sm:$0xff]  ;;  %v325_v31 = vld [vmem:[%s4450_s2 + $0x10] sm:$0xff]  ;;  %s4401_s26 = scalar_lea.hbm %s4454_s6, %s2927_s12  ;;  %s3475_s25 = scalar_lea.vmem %s4403_s14, 2048 }
  0x3d   : > { %415 = vmatpush1.bf16.msra.mxu0 %v319_v14  ;;  %v324_v32 = vld [vmem:[%s4450_s2 + $0x8] sm:$0xff]  ;;  %v323_v33 = vld [vmem:[%s4450_s2] sm:$0xff]  ;;  %v3333_v37 = vld [vmem:[%s4449_s1 + $0x10] sm:$0xff]   ;;  %p3476_p12 = scmp.ne.s32.totalorder %s4403_s14, %s3475_s25 }
  0x3e   : > { %416 = vmatprep.subr.bf16.mxu0 %v318_v17  ;;  %v3332_v34 = vld [vmem:[%s4449_s1 + $0x8] sm:$0xff]   ;;  %v2582_v35 = vld [vmem:[%s4452_s4] sm:$0xff]  ;;  %v2584_v38 = vld [vmem:[%s4452_s4 + $0x10] sm:$0xff] }
  0x3f   : > { %v2583_v36 = vld [vmem:[%s4452_s4 + $0x8] sm:$0xff]  ;;  %v2585_v39 = vld [vmem:[%s4452_s4 + $0x18] sm:$0xff]  ;;  %v2586_v41 = vld [vmem:[%s4452_s4 + $0x20] sm:$0xff]  ;;  %p3477_p4 = pnand %p3476_p12, %p4463_p13 }
  0x40   : > { %358 = vperm.xlu1 %3234, %v328_v26   ;;  %368 = vperm.xlu0 %3233, %v330_v27   ;;  %v3334_v40 = vld [vmem:[%s4449_s1 + $0x18] sm:$0xff]   ;;  %v2587_v42 = vld [vmem:[%s4452_s4 + $0x28] sm:$0xff]  ;;  %v2588_v43 = vld [vmem:[%s4452_s4 + $0x30] sm:$0xff] }
  0x41   : > { %417 = vmatpush1.bf16.msra.mxu0 %v317_v20  ;;  %v2589_v44 = vld [vmem:[%s4452_s4 + $0x38] sm:$0xff]  ;;  %p3478_p5 = pneg %p3477_p4 }
  0x42   : > { %418 = vmatprep.subr.bf16.mxu0 %v316_v22 }
  0x44   : > { %348 = vperm.xlu1 %3234, %v326_v30   ;;  %343 = vperm.xlu0 %3233, %v325_v31  }
  0x45   : > { %419 = vmatpush1.bf16.msra.mxu0 %v315_v28 }
  0x48   : > { %2877 = vmatmul.mubr.msk.bf16.vlgmr.msra.gmra.mxu0 %vm391_vm0, %v3331_v29  ;;  %338 = vperm.xlu1 %3234, %v324_v32  }
  0x49   : > { %446 = vmatprep.mubr.bf16.mxu0 %v3544_v0  ;;  %333 = vperm.xlu0 %3233, %v323_v33  }
  0x4c   : > { %2592 = vperm.xlu1 %3234, %v2582_v35  }
  0x50   : > { %2878 = vmatmul.mubr.msk.bf16.gmra.mxu0 %vm391_vm0, %v3332_v34  ;;  %2597 = vperm.xlu1 %3234, %v2583_v36  }
  0x51   : > { %456 = vmatprep.mubr.bf16.mxu0 %v3544_v0 }
  0x54   : > { %2602 = vperm.xlu1 %3234, %v2584_v38  }
  0x58   : > { %2879 = vmatmul.mubr.msk.bf16.gmra.mxu0 %vm391_vm0, %v3333_v37  ;;  %2607 = vperm.xlu1 %3234, %v2585_v39  }
  0x59   : > { %466 = vmatprep.mubr.bf16.mxu0 %v3544_v0 }
  0x5c   : > { %2612 = vperm.xlu1 %3234, %v2586_v41  }
  0x60   : > { %2880 = vmatmul.mubr.msk.bf16.gmra.mxu0 %vm391_vm0, %v3334_v40  ;;  %2617 = vperm.xlu1 %3234, %v2587_v42  }
  0x64   : > { %2622 = vperm.xlu1 %3234, %v2588_v43  }
  0x68   : > { %2627 = vperm.xlu1 %3234, %v2589_v44  }
  0xb7   : > { %v364_v45 = vpop.permute.xlu0 %363  ;;  %v354_v46 = vpop.permute.xlu1 %353 }
  0xbb   : > { %v3781_v47 = vpop.permute.xlu0 %368  ;;  %v359_v48 = vpop.permute.xlu1 %358 }
  0xbf   : > { %v344_v49 = vpop.permute.xlu0 %343  ;;  %v349_v50 = vpop.permute.xlu1 %348 }
  0xc3   : > { %v339_v56 = vpop.permute.xlu1 %338 }
  0xc4   : > { %v334_v51 = vpop.permute.xlu0 %333 }
 0x108   : > { %v438_v52 = vpop.f32.mrf.mxu0 }
 0x109   : > { %v3783_v53 = vadd.f32 %v438_v52, %v334_v51 }
 0x10a   : > { %v440_v54 = vpop.f32.mrf.mxu0 }
 0x10b   : > { %v3785_v55 = vadd.f32 %v440_v54, %v334_v51  ;;  %v477_v58 = vmax.f32 %v3783_v53, 0.0  ;;  %v3837_v54 = vld [vmem:[%s289_s17] sm:$0xff] }
 0x10c   : > { %v442_v57 = vpop.f32.mrf.mxu0 }
 0x10d   : > { %v478_v59 = vmax.f32 %v3785_v55, 0.0  ;;  %v3789_v60 = vadd.f32 %v442_v57, %v339_v56 }
 0x10e   : > { %v444_v61 = vpop.f32.mrf.mxu0 }
 0x10f   : > { %v3235_v62 = vpack.i.bf16 %v477_v58, %v478_v59  ;;  %v3795_v63 = vadd.f32 %v444_v61, %v339_v56  ;;  %v479_v2 = vmax.f32 %v3789_v60, 0.0  ;;  %v3839_v56 = vld [vmem:[%s289_s17 + $0x8] sm:$0xff] }
 0x110   : > { %v448_v1 = vpop.f32.mrf.mxu0  ;;  %v3850_v55 = vpack.c.bf16 %v3839_v56, %v3837_v54 }
 0x111   : > { %v480_v3 = vmax.f32 %v3795_v63, 0.0  ;;  %v3799_v4 = vadd.f32 %v448_v1, %v344_v49  ;;  %3236 = vxpose.xlu0.b32.start [1/8] (short) %v3235_v62, 128  ;;  %v3846_v57 = vpack.c.bf16 %v479_v2, %v477_v58 }
 0x112   : > { %v450_v5 = vpop.f32.mrf.mxu0  ;;  %v585_v61 = vsel %vm391_vm0, %v3850_v55, 0 }
 0x113   : > { %v3237_v6 = vpack.i.bf16 %v479_v2, %v480_v3  ;;  %v451_v7 = vadd.f32 %v450_v5, %v344_v49  ;;  %v481_v9 = vmax.f32 %v3799_v4, 0.0  ;;  %v3834_v52 = vpack.c.bf16 %v480_v3, %v478_v59 }
 0x114   : > { %v452_v8 = vpop.f32.mrf.mxu0  ;;  %v3545_v59 = vmov 0.0  }
 0x115   : > { %v482_v10 = vmax.f32 %v451_v7, 0.0  ;;  %v453_v11 = vadd.f32 %v452_v8, %v349_v50  ;;  %3238 = vxpose.xlu0.b32.cont [2/8] (short) %v3237_v6, 128 }
 0x116   : > { %v454_v12 = vpop.f32.mrf.mxu0 }
 0x117   : > { %v3239_v13 = vpack.i.bf16 %v481_v9, %v482_v10  ;;  %v455_v14 = vadd.f32 %v454_v12, %v349_v50  ;;  %v483_v16 = vmax.f32 %v453_v11, 0.0 }
 0x118   : > { %v458_v15 = vpop.f32.mrf.mxu0 }
 0x119   : > { %v484_v17 = vmax.f32 %v455_v14, 0.0  ;;  %v459_v18 = vadd.f32 %v458_v15, %v354_v46  ;;  %3240 = vxpose.xlu0.b32.cont [3/8] (short) %v3239_v13, 128  ;;  %v3828_v51 = vpack.c.bf16 %v483_v16, %v481_v9 }
 0x11a   : > { %v460_v19 = vpop.f32.mrf.mxu0 }
 0x11b   : > { %v3241_v20 = vpack.i.bf16 %v483_v16, %v484_v17  ;;  %v461_v21 = vadd.f32 %v460_v19, %v354_v46  ;;  %v485_v23 = vmax.f32 %v459_v18, 0.0  ;;  %v3821_v50 = vpack.c.bf16 %v484_v17, %v482_v10 }
 0x11c   : > { %v462_v22 = vpop.f32.mrf.mxu0 }
 0x11d   : > { %v486_v24 = vmax.f32 %v461_v21, 0.0  ;;  %v463_v25 = vadd.f32 %v462_v22, %v359_v48  ;;  %3242 = vxpose.xlu0.b32.cont [4/8] (short) %v3241_v20, 128 }
 0x11e   : > { %v464_v26 = vpop.f32.mrf.mxu0 }
 0x11f   : > { %v3243_v27 = vpack.i.bf16 %v485_v23, %v486_v24  ;;  %v465_v28 = vadd.f32 %v464_v26, %v359_v48  ;;  %v487_v30 = vmax.f32 %v463_v25, 0.0 }
 0x120   : > { %v468_v29 = vpop.f32.mrf.mxu0 }
 0x121   : > { %v488_v31 = vmax.f32 %v465_v28, 0.0  ;;  %v469_v32 = vadd.f32 %v468_v29, %v364_v45  ;;  %3244 = vxpose.xlu0.b32.cont [5/8] (short) %v3243_v27, 128 }
 0x122   : > { %v470_v33 = vpop.f32.mrf.mxu0 }
 0x123   : > { %v3245_v34 = vpack.i.bf16 %v487_v30, %v488_v31  ;;  %v471_v35 = vadd.f32 %v470_v33, %v364_v45  ;;  %v489_v37 = vmax.f32 %v469_v32, 0.0  ;;  %v3814_v45 = vpack.c.bf16 %v488_v31, %v486_v24 }
 0x124   : > { %v472_v36 = vpop.f32.mrf.mxu0 }
 0x125   : > { %v490_v38 = vmax.f32 %v471_v35, 0.0  ;;  %v473_v39 = vadd.f32 %v472_v36, %v3781_v47  ;;  %3246 = vxpose.xlu0.b32.cont [6/8] (short) %v3245_v34, 128 }
 0x126   : > { %v474_v40 = vpop.f32.mrf.mxu0 }
 0x127   : > { %v3247_v41 = vpack.i.bf16 %v489_v37, %v490_v38  ;;  %v475_v42 = vadd.f32 %v474_v40, %v3781_v47  ;;  %v491_v43 = vmax.f32 %v473_v39, 0.0  ;;  %v3819_v47 = vpack.c.bf16 %v487_v30, %v485_v23 }
 0x129   : > { %v492_v44 = vmax.f32 %v475_v42, 0.0  ;;  %3248 = vxpose.xlu0.b32.cont [7/8] (short) %v3247_v41, 128  ;;  %v3811_v49 = vpack.c.bf16 %v491_v43, %v489_v37 }
 0x12b   : > { %v3249_v46 = vpack.i.bf16 %v491_v43, %v492_v44  ;;  %v3809_v48 = vpack.c.bf16 %v492_v44, %v490_v38 }
 0x12d   : > { %595 = vmatprep.subr.bf16.mxu1 %v3809_v48  ;;  %3250 = vxpose.xlu0.b32.end [8/8] (short) %v3249_v46, 128 }
 0x12e   : > { %596 = vmatpush1.bf16.msra.mxu1 %v3811_v49 }
 0x12f   : > { %597 = vmatprep.subr.bf16.mxu1 %v3814_v45 }
 0x132   : > { %598 = vmatpush1.bf16.msra.mxu1 %v3819_v47 }
 0x133   : > { %599 = vmatprep.subr.bf16.mxu1 %v3821_v50 }
 0x136   : > { %600 = vmatpush1.bf16.msra.mxu1 %v3828_v51 }
 0x137   : > { %601 = vmatprep.subr.bf16.mxu1 %v3834_v52 }
 0x13a   : > { %602 = vmatpush1.bf16.msra.mxu1 %v3846_v57 }
 0x13b   : > { %3091 = vmatprep.subr.bf16.mxu1 %v3545_v59 }
 0x13d   : > { %2881 = vmatmul.mubr.msk.bf16.vlgmr.msra.gmra.mxu1 %vm391_vm0, %v3850_v55 }
 0x13e   : > { %3092 = vmatpush3.bf16.xpose.msra.mxu1 %v585_v61  ;;  %3093 = vmatprep.mubr.msk.bf16.mxu1 %vm3546_vm1, %v3545_v59 }
 0x145   : > { %3094 = vmatmul.mubr.msk.bf16.vlgmr.msra.gmra.mxu1 %vm391_vm0, %v3850_v55 }
 0x146   : > { %760 = vmatprep.mubr.bf16.mxu1 %v3544_v0 }
 0x18d   : > { %v3251_v53 = vpop.trf.xlu0 }
 0x18e   : > { %v3255_v58 = vunpack.i.h.bf16 %v3251_v53  ;;  %v3252_v60 = vunpack.i.l.bf16 %v3251_v53 }
 0x191   : > { %v3256_v62 = vpop.trf.xlu0 }
 0x192   : > { %v3260_v63 = vunpack.i.h.bf16 %v3256_v62  ;;  %v3257_v1 = vunpack.i.l.bf16 %v3256_v62 }
 0x194   : > { %v3863_v2 = vpack.c.bf16 %v3260_v63, %v3255_v58  ;;  %v3865_v3 = vpack.c.bf16 %v3257_v1, %v3252_v60 }
 0x195   : > { %v3261_v4 = vpop.trf.xlu0 }
 0x196   : > { %v3265_v5 = vunpack.i.h.bf16 %v3261_v4  ;;  %v3262_v6 = vunpack.i.l.bf16 %v3261_v4 }
 0x199   : > { %v3266_v7 = vpop.trf.xlu0 }
 0x19a   : > { %v3270_v8 = vunpack.i.h.bf16 %v3266_v7  ;;  %v3267_v9 = vunpack.i.l.bf16 %v3266_v7 }
 0x19c   : > { %v3867_v10 = vpack.c.bf16 %v3270_v8, %v3265_v5  ;;  %v3869_v11 = vpack.c.bf16 %v3267_v9, %v3262_v6 }
 0x19d   : > { %v3871_v12 = vpop.trf.xlu0 }
 0x1a1   : > { %v3873_v13 = vpop.trf.xlu0 }
 0x1a5   : > { %v3875_v14 = vpop.trf.xlu0 }
 0x1a9   : > { %v3877_v15 = vpop.trf.xlu0 }
 0x1ad   : > { %v3879_v16 = vpop.trf.xlu0 }
 0x1b1   : > { %v3881_v17 = vpop.trf.xlu0 }
 0x1b5   : > { %v3301_v18 = vpop.trf.xlu0 }
 0x1b6   : > { %v3302_v53 = vunpack.i.l.bf16 %v3301_v18  ;;  %v3305_v5 = vunpack.i.h.bf16 %v3301_v18  ;;  %v3295_v18 = vunpack.i.h.bf16 %v3879_v16 }
 0x1b9   : > { %v3306_v19 = vpop.trf.xlu0 }
 0x1ba   : > { %v3307_v58 = vunpack.i.l.bf16 %v3306_v19  ;;  %v3310_v8 = vunpack.i.h.bf16 %v3306_v19 }
 0x1bd   : > { %v3311_v20 = vpop.trf.xlu0 }
 0x1be   : > { %v3312_v32 = vunpack.i.l.bf16 %v3311_v20  ;;  %v3315_v40 = vunpack.i.h.bf16 %v3311_v20  ;;  %v3292_v20 = vunpack.i.l.bf16 %v3879_v16 }
 0x1c1   : > { %v3316_v22 = vpop.trf.xlu0 }
 0x1c2   : > { %v3317_v33 = vunpack.i.l.bf16 %v3316_v22  ;;  %v3320_v44 = vunpack.i.h.bf16 %v3316_v22  ;;  %v3297_v22 = vunpack.i.l.bf16 %v3881_v17 }
 0x1c4   : > { %v3901_v60 = vpack.c.bf16 %v3317_v33, %v3312_v32  ;;  %v3906_v9 = vpack.c.bf16 %v3320_v44, %v3315_v40  ;;  %v3918_v33 = vpack.c.bf16 %v3310_v8, %v3305_v5  ;;  %v3290_v40 = vunpack.i.h.bf16 %v3877_v15 }
 0x1c5   : > { %v3321_v25 = vpop.trf.xlu0  ;;  %v3272_v44 = vunpack.i.l.bf16 %v3871_v12 }
 0x1c6   : > { %v3325_v30 = vunpack.i.h.bf16 %v3321_v25  ;;  %v3322_v34 = vunpack.i.l.bf16 %v3321_v25  ;;  %v3911_v25 = vpack.c.bf16 %v3307_v58, %v3302_v53  ;;  %v3277_v53 = vunpack.i.l.bf16 %v3873_v13 }
 0x1c9   : > { %v3326_v35 = vpop.trf.xlu0 }
 0x1ca   : > { %v3330_v38 = vunpack.i.h.bf16 %v3326_v35  ;;  %v3327_v41 = vunpack.i.l.bf16 %v3326_v35  ;;  %v3287_v35 = vunpack.i.l.bf16 %v3877_v15  ;;  %v3280_v15 = vunpack.i.h.bf16 %v3873_v13 }
 0x1cc   : > { %v3897_v46 = vpack.c.bf16 %v3330_v38, %v3325_v30  ;;  %v3903_v62 = vpack.c.bf16 %v3327_v41, %v3322_v34  ;;  %v3282_v34 = vunpack.i.l.bf16 %v3875_v14 }
 0x1ce   : > { %2930 = vmatprep.subr.bf16.mxu0 %v3903_v62  ;;  %v3935_v58 = vpack.c.bf16 %v3287_v35, %v3282_v34 }
 0x1cf   : > { %2931 = vmatpush3.bf16.msra.mxu0 %v3897_v46 }
 0x1d0   : > { %2932 = vmatprep.subr.bf16.mxu0 %v3901_v60 }
 0x1d3   : > { %2933 = vmatpush3.bf16.msra.mxu0 %v3906_v9 }
 0x1d4   : > { %2934 = vmatprep.subr.bf16.mxu0 %v3911_v25 }
 0x1d7   : > { %2935 = vmatpush3.bf16.msra.mxu0 %v3918_v33 }
 0x1fd   : > { %v3883_v21 = vpop.f32.mrf.mxu1 }
 0x1ff   : > { %v3885_v23 = vpop.f32.mrf.mxu1 }
 0x201   : > { %v3887_v24 = vpop.f32.mrf.mxu1 }
 0x202   : > { %v630_v26 = vmax.f32 %v3883_v21, %v3887_v24 }
 0x203   : > { %v3891_v27 = vpop.f32.mrf.mxu1 }
 0x204   : > { %v631_v28 = vrot.slane %v630_v26, 4  ;;  %v637_v29 = vmax.f32 %v3885_v23, %v3891_v27 }
 0x205   : > { %v3895_v31 = vpop.f32.mrf.mxu1 }
 0x206   : > { %v632_v36 = vmax.f32 %v630_v26, %v631_v28  ;;  %v638_v37 = vrot.slane %v637_v29, 4 }
 0x207   : > { %v3095_v39 = vpop.f32.mrf.mxu1 }
 0x208   : > { %v633_v42 = vrot.slane %v632_v36, 2  ;;  %v639_v43 = vmax.f32 %v637_v29, %v638_v37  ;;  %v3300_v29 = vunpack.i.h.bf16 %v3881_v17  ;;  %v3285_v39 = vunpack.i.h.bf16 %v3875_v14 }
 0x209   : > { %v3899_v61 = vpop.f32.mrf.mxu1  ;;  %v3275_v14 = vunpack.i.h.bf16 %v3871_v12 }
 0x20a   : > { %v634_v63 = vmax.f32 %v632_v36, %v633_v42  ;;  %v640_v1 = vrot.slane %v639_v43, 2  ;;  %v3923_v36 = vpack.c.bf16 %v3297_v22, %v3292_v20 }
 0x20b   : > { %v3096_v4 = vpop.f32.mrf.mxu1 }
 0x20c   : > { %v635_v6 = vrot.slane %v634_v63, 1  ;;  %v641_v7 = vmax.f32 %v639_v43, %v640_v1  ;;  %v3930_v43 = vpack.c.bf16 %v3300_v29, %v3295_v18  ;;  %2936 = vmatprep.subr.bf16.mxu0 %v3923_v36  ;;  %v3943_v1 = vpack.c.bf16 %v3277_v53, %v3272_v44 }
 0x20d   : > { %v3946_v4 = vpack.c.bf16 %v3280_v15, %v3275_v14  ;;  %v717_v14 = vpack.c.bf16 %v3899_v61, %v3895_v31 }
 0x20e   : > { %v636_v26 = vmax.f32 %v634_v63, %v635_v6  ;;  %v642_v28 = vrot.slane %v641_v7, 1  ;;  %v3940_v63 = vpack.c.bf16 %v3290_v40, %v3285_v39  ;;  %2937 = vmatpush3.bf16.msra.mxu0 %v3930_v43 }
 0x20f   : > { %2938 = vmatprep.subr.bf16.mxu0 %v3935_v58 }
 0x210   : > { %v644_v19 = vsub.f32 %v3883_v21, %v636_v26  ;;  %v646_v30 = vsub.f32 %v3887_v24, %v636_v26  ;;  %v643_v32 = vmax.f32 %v641_v7, %v642_v28 }
 0x212   : > { %v648_v16 = vmul.f32 1.442695, %v644_v19  ;;  %v652_v37 = vmul.f32 1.442695, %v646_v30  ;;  %v645_v17 = vsub.f32 %v3885_v23, %v643_v32  ;;  %v647_v38 = vsub.f32 %v3891_v27, %v643_v32  ;;  %2939 = vmatpush3.bf16.msra.mxu0 %v3940_v63 }
 0x213   : > { %2940 = vmatprep.subr.bf16.mxu0 %v3943_v1 }
 0x214   : > { %3339 = vpow2.f32 %v648_v16  ;;  %v650_v41 = vmul.f32 1.442695, %v645_v17  ;;  %v654_v42 = vmul.f32 1.442695, %v647_v38 }
 0x215   : > { %3341 = vpow2.f32 %v652_v37 }
 0x216   : > { %3343 = vpow2.f32 %v650_v41  ;;  %2941 = vmatpush3.bf16.msra.mxu0 %v3946_v4 }
 0x217   : > { %3345 = vpow2.f32 %v654_v42  ;;  %2942 = vmatprep.subr.bf16.mxu0 %v3869_v11 }
 0x21a   : > { %2943 = vmatpush3.bf16.msra.mxu0 %v3867_v10 }
 0x21b   : > { %2944 = vmatprep.subr.bf16.mxu0 %v3865_v3 }
 0x21e   : > { %2945 = vmatpush3.bf16.msra.mxu0 %v3863_v2 }
 0x221   : > { %v3340_v5 = vpop.eup %3339 }
 0x222   : > { %v3342_v12 = vpop.eup %3341 }
 0x223   : > { %v3344_v13 = vpop.eup %3343  ;;  %v656_v6 = vadd.f32 %v3342_v12, %v3340_v5 }
 0x224   : > { %v3346_v7 = vpop.eup %3345 }
 0x225   : > { %v657_v8 = vrot.slane %v656_v6, 4  ;;  %v663_v20 = vadd.f32 %v3346_v7, %v3344_v13 }
 0x227   : > { %v658_v22 = vadd.f32 %v657_v8, %v656_v6  ;;  %v664_v26 = vrot.slane %v663_v20, 4 }
 0x229   : > { %v659_v28 = vrot.slane %v658_v22, 2  ;;  %v665_v18 = vadd.f32 %v664_v26, %v663_v20 }
 0x22b   : > { %v660_v29 = vadd.f32 %v659_v28, %v658_v22  ;;  %v666_v19 = vrot.slane %v665_v18, 2 }
 0x22d   : > { %v661_v30 = vrot.slane %v660_v29, 1  ;;  %v667_v32 = vadd.f32 %v666_v19, %v665_v18 }
 0x22f   : > { %v662_v34 = vadd.f32 %v661_v30, %v660_v29  ;;  %v668_v35 = vrot.slane %v667_v32, 1 }
 0x231   : > { %3347 = vrcp.f32 %v662_v34  ;;  %v669_v16 = vadd.f32 %v668_v35, %v667_v32 }
 0x233   : > { %3349 = vrcp.f32 %v669_v16 }
 0x23e   : > { %v3348_v37 = vpop.eup %3347 }
 0x23f   : > { %v674_v17 = vmul.f32 %v3348_v37, %v3342_v12  ;;  %v671_v39 = vmul.f32 %v3348_v37, %v3340_v5 }
 0x240   : > { %v3350_v38 = vpop.eup %3349 }
 0x241   : > { %v722_v40 = vmul.f32 %v674_v17, %v3887_v24  ;;  %v675_v41 = vmul.f32 %v3350_v38, %v3346_v7  ;;  %v673_v42 = vmul.f32 %v3350_v38, %v3344_v13  ;;  %v718_v53 = vpack.c.bf16 %v674_v17, %v671_v39 }
 0x242   : > { %v720_v28 = vmul.f32 %v671_v39, %v3883_v21 }
 0x243   : > { %v719_v44 = vpack.c.bf16 %v675_v41, %v673_v42  ;;  %v723_v20 = vmul.f32 %v675_v41, %v3891_v27  ;;  %v721_v22 = vmul.f32 %v673_v42, %v3885_v23 }
 0x245   : > { %742 = vmatprep.subr.bf16.mxu1 %v719_v44 }
 0x246   : > { %743 = vmatpush1.bf16.msra.mxu1 %v718_v53 }
 0x247   : > { %3097 = vmatprep.subr.bf16.mxu1 %v3545_v59 }
 0x249   : > { %2883 = vmatmul.mubr.msk.bf16.vlgmr.msra.gmra.mxu1 %vm724_vm2, %v717_v14 }
 0x24a   : > { %3098 = vmatpush3.bf16.msra.mxu1 %v3850_v55  ;;  %3099 = vmatprep.mubr.msk.bf16.mxu1 %vm3546_vm1, %v3545_v59 }
 0x24b   : > { %3103 = vmatprep.subr.bf16.mxu1 %v3545_v59 }
 0x309   : > { %v762_v24 = vpop.f32.mrf.mxu1 }
 0x30a   : > { %v763_v12 = vadd.f32 1e-06, %v762_v24 }
 0x30b   : > { %v764_v15 = vpop.f32.mrf.mxu1 }
 0x30c   : > { %v765_v5 = vadd.f32 1e-06, %v764_v15 }
 0x30d   : > { %v766_v13 = vpop.f32.mrf.mxu1 }
 0x30e   : > { %v767_v6 = vadd.f32 1e-06, %v766_v13  ;;  %3351 = vrcp.f32 %v765_v5 }
 0x30f   : > { %v768_v7 = vpop.f32.mrf.mxu1 }
 0x310   : > { %3353 = vrcp.f32 %v767_v6  ;;  %v769_v31 = vadd.f32 1e-06, %v768_v7 }
 0x311   : > { %3355 = vrcp.f32 %v763_v12 }
 0x312   : > { %3357 = vrcp.f32 %v769_v31 }
 0x31b   : > { %v3352_v61 = vpop.eup %3351 }
 0x31c   : > { %v3969_v29 = vmul.f32 %v3352_v61, %v721_v22 }
 0x31d   : > { %v3354_v8 = vpop.eup %3353 }
 0x31e   : > { %v3356_v55 = vpop.eup %3355  ;;  %v3967_v18 = vmul.f32 %v3354_v8, %v722_v40 }
 0x31f   : > { %v3358_v26 = vpop.eup %3357  ;;  %v3973_v30 = vmul.f32 %v3356_v55, %v720_v28 }
 0x320   : > { %v3971_v19 = vmul.f32 %v3358_v26, %v723_v20 }
 0x321   : > { %v779_v34 = vpack.c.bf16 %v3967_v18, %v3973_v30 }
 0x322   : > { %v780_v32 = vpack.c.bf16 %v3971_v19, %v3969_v29 }
 0x324   : > { %813 = vmatprep.mubr.bf16.mxu0 %v780_v32  ;;  %836 = vmatprep.subr.bf16.mxu0 %v780_v32 }
 0x325   : > { %814 = vmatmul.mubr.bf16.vlgmr.msra.gmra.mxu0 %v779_v34 }
 0x326   : > { %837 = vmatpush1.bf16.xpose.msra.mxu0 %v779_v34  ;;  %854 = vmatprep.mubr.bf16.mxu0 %v780_v32 }
 0x327   : > { %926 = vmatprep.subr.bf16.mxu0 %v3809_v48 }
 0x32d   : > { %855 = vmatmul.mubr.bf16.vlgmr.msra.gmra.mxu0 %v779_v34 }
 0x32e   : > { %927 = vmatpush1.bf16.msra.mxu0 %v3811_v49  ;;  %950 = vmatprep.mubr.bf16.mxu0 %v3544_v0 }
 0x32f   : > { %928 = vmatprep.subr.bf16.mxu0 %v3814_v45 }
 0x332   : > { %929 = vmatpush1.bf16.msra.mxu0 %v3819_v47 }
 0x333   : > { %930 = vmatprep.subr.bf16.mxu0 %v3821_v50 }
 0x336   : > { %931 = vmatpush1.bf16.msra.mxu0 %v3828_v51 }
 0x337   : > { %932 = vmatprep.subr.bf16.mxu0 %v3834_v52 }
 0x33a   : > { %933 = vmatpush1.bf16.msra.mxu0 %v3846_v57 }
 0x33b   : > { %2956 = vmatprep.subr.bf16.mxu0 %v3903_v62 }
 0x3e5   : > { %v2946_v21 = vpop.f32.mrf.mxu0 }
 0x3e7   : > { %v2947_v23 = vpop.f32.mrf.mxu0 }
 0x3e8   : > { %v2948_v27 = vadd.f32 %v2947_v23, %v2946_v21 }
 0x3e9   : > { %v2949_v35 = vpop.f32.mrf.mxu0 }
 0x3ea   : > { %v864_v12 = vmul.f32 %v2948_v27, %v3837_v54 }
 0x3eb   : > { %v2950_v16 = vpop.f32.mrf.mxu0 }
 0x3ec   : > { %v2951_v37 = vadd.f32 %v2950_v16, %v2949_v35 }
 0x3ed   : > { %v856_v17 = vpop.f32.mrf.mxu0 }
 0x3ee   : > { %v865_v13 = vmul.f32 %v2951_v37, %v3839_v56 }
 0x3ef   : > { %v858_v38 = vpop.f32.mrf.mxu0 }
 0x3f1   : > { %v859_v39 = vpop.f32.mrf.mxu0 }
 0x3f2   : > { %v863_v40 = vpack.c.bf16 %v859_v39, %v856_v17 }
 0x3f3   : > { %v861_v41 = vpop.f32.mrf.mxu0 }
 0x3f4   : > { %3100 = vmatmul.mubr.msk.bf16.vlgmr.msra.gmra.mxu1 %vm724_vm2, %v863_v40 }
 0x3f5   : > { %3105 = vmatprep.mubr.msk.bf16.mxu1 %vm3546_vm1, %v3545_v59 }
 0x4b4   : > { %v903_v42 = vpop.f32.mrf.mxu1 }
 0x4b5   : > { %v904_v44 = vadd.f32 1e-06, %v903_v42 }
 0x4b6   : > { %v3101_v53 = vpop.f32.mrf.mxu1 }
 0x4b7   : > { %3359 = vrcp.f32 %v904_v44 }
 0x4b8   : > { %v906_v14 = vpop.f32.mrf.mxu1 }
 0x4b9   : > { %v907_v24 = vadd.f32 1e-06, %v906_v14 }
 0x4ba   : > { %v3102_v15 = vpop.f32.mrf.mxu1 }
 0x4bb   : > { %3361 = vrcp.f32 %v907_v24 }
 0x4c4   : > { %v3360_v5 = vpop.eup %3359 }
 0x4c5   : > { %v3994_v7 = vmul.f32 %v3360_v5, %v864_v12 }
 0x4c8   : > { %v3362_v6 = vpop.eup %3361 }
 0x4c9   : > { %v3996_v31 = vmul.f32 %v3362_v6, %v865_v13 }
 0x4cb   : > { %v4000_v61 = vpack.c.bf16 %v3996_v31, %v3994_v7 }
 0x4cd   : > { %2885 = vmatmul.mubr.msk.bf16.vlgmr.msra.gmra.mxu0 %vm391_vm0, %v4000_v61  ;;  %v916_v8 = vsel %vm391_vm0, %v4000_v61, 0 }
 0x4ce   : > { %2957 = vmatpush3.bf16.msra.mxu0 %v3897_v46  ;;  %3104 = vmatpush3.bf16.xpose.msra.mxu1 %v916_v8 }
 0x4cf   : > { %2958 = vmatprep.subr.bf16.mxu0 %v3901_v60  ;;  %1024 = vmatprep.subr.bf16.mxu1 %v780_v32 }
 0x4d2   : > { %2959 = vmatpush3.bf16.msra.mxu0 %v3906_v9 }
 0x4d3   : > { %2960 = vmatprep.subr.bf16.mxu0 %v3911_v25 }
 0x4d5   : > { %3106 = vmatmul.mubr.msk.bf16.vlgmr.msra.gmra.mxu1 %vm391_vm0, %v4000_v61 }
 0x4d6   : > { %2961 = vmatpush3.bf16.msra.mxu0 %v3918_v33  ;;  %1025 = vmatpush1.bf16.msra.mxu1 %v779_v34 }
 0x4d7   : > { %2962 = vmatprep.subr.bf16.mxu0 %v3923_v36  ;;  %1042 = vmatprep.mubr.bf16.mxu1 %v3544_v0 }
 0x4da   : > { %2963 = vmatpush3.bf16.msra.mxu0 %v3930_v43 }
 0x4db   : > { %2964 = vmatprep.subr.bf16.mxu0 %v3935_v58 }
 0x4de   : > { %2965 = vmatpush3.bf16.msra.mxu0 %v3940_v63 }
 0x4df   : > { %2966 = vmatprep.subr.bf16.mxu0 %v3943_v1 }
 0x4e2   : > { %2967 = vmatpush3.bf16.msra.mxu0 %v3946_v4 }
 0x4e3   : > { %2968 = vmatprep.subr.bf16.mxu0 %v3869_v11 }
 0x4e6   : > { %2969 = vmatpush3.bf16.msra.mxu0 %v3867_v10 }
 0x4e7   : > { %2970 = vmatprep.subr.bf16.mxu0 %v3865_v3 }
 0x4ea   : > { %2971 = vmatpush3.bf16.msra.mxu0 %v3863_v2 }
 0x4eb   : > { %3115 = vmatprep.subr.bf16.mxu0 %v3545_v59 }
 0x58d   : > { %v952_v27 = vpop.f32.mrf.mxu0 }
 0x58e   : > { %v1003_v24 = vmul.f32 %v952_v27, %v3973_v30 }
 0x58f   : > { %v954_v37 = vpop.f32.mrf.mxu0 }
 0x590   : > { %v1004_v44 = vmul.f32 %v954_v37, %v3969_v29 }
 0x591   : > { %v956_v17 = vpop.f32.mrf.mxu0 }
 0x592   : > { %v1005_v41 = vmul.f32 %v956_v17, %v3967_v18 }
 0x593   : > { %v958_v38 = vpop.f32.mrf.mxu0 }
 0x594   : > { %v1006_v53 = vmul.f32 %v958_v38, %v3971_v19 }
 0x595   : > { %v995_v54 = vpop.f32.mrf.mxu1 }
 0x597   : > { %v3107_v56 = vpop.f32.mrf.mxu1 }
 0x599   : > { %v998_v55 = vpop.f32.mrf.mxu1 }
 0x59a   : > { %v1002_v20 = vpack.c.bf16 %v998_v55, %v995_v54 }
 0x59b   : > { %v3108_v22 = vpop.f32.mrf.mxu1 }
 0x59c   : > { %2887 = vmatmul.mubr.msk.bf16.vlgmr.msra.gmra.mxu1 %vm724_vm2, %v1002_v20 }
 0x65c   : > { %v1044_v26 = vpop.f32.mrf.mxu1 }
 0x65d   : > { %v1045_v34 = vadd.f32 1e-06, %v1044_v26 }
 0x65e   : > { %v1046_v28 = vpop.f32.mrf.mxu1 }
 0x65f   : > { %v1047_v32 = vadd.f32 1e-06, %v1046_v28 }
 0x660   : > { %v1048_v21 = vpop.f32.mrf.mxu1 }
 0x661   : > { %v1049_v23 = vadd.f32 1e-06, %v1048_v21  ;;  %3363 = vrcp.f32 %v1047_v32 }
 0x662   : > { %v1050_v35 = vpop.f32.mrf.mxu1 }
 0x663   : > { %3365 = vrcp.f32 %v1049_v23  ;;  %v1051_v16 = vadd.f32 1e-06, %v1050_v35 }
 0x664   : > { %3367 = vrcp.f32 %v1045_v34 }
 0x665   : > { %3369 = vrcp.f32 %v1051_v16 }
 0x66e   : > { %v3364_v39 = vpop.eup %3363 }
 0x66f   : > { %v4032_v5 = vmul.f32 %v3364_v39, %v1004_v44 }
 0x670   : > { %v3366_v40 = vpop.eup %3365 }
 0x671   : > { %v3368_v42 = vpop.eup %3367  ;;  %v4030_v15 = vmul.f32 %v3366_v40, %v1005_v41 }
 0x672   : > { %v3370_v14 = vpop.eup %3369  ;;  %v4036_v13 = vmul.f32 %v3368_v42, %v1003_v24 }
 0x673   : > { %v4034_v12 = vmul.f32 %v3370_v14, %v1006_v53 }
 0x674   : > { %v1061_v18 = vpack.c.bf16 %v4030_v15, %v4036_v13 }
 0x675   : > { %v1062_v6 = vpack.c.bf16 %v4034_v12, %v4032_v5 }
 0x677   : > { %1095 = vmatprep.mubr.bf16.mxu0 %v1062_v6  ;;  %1118 = vmatprep.subr.bf16.mxu1 %v1062_v6 }
 0x678   : > { %1136 = vmatprep.mubr.bf16.mxu1 %v1062_v6  ;;  %1096 = vmatmul.mubr.bf16.vlgmr.msra.gmra.mxu0 %v1061_v18 }
 0x679   : > { %1119 = vmatpush1.bf16.xpose.msra.mxu1 %v1061_v18  ;;  %3117 = vmatprep.mubr.msk.bf16.mxu0 %vm3546_vm1, %v3545_v59 }
 0x67a   : > { %3109 = vmatprep.subr.bf16.mxu1 %v3545_v59 }
 0x680   : > { %1137 = vmatmul.mubr.bf16.vlgmr.msra.gmra.mxu1 %v1061_v18 }
 0x681   : > { %3110 = vmatpush3.bf16.msra.mxu1 %v4000_v61  ;;  %3111 = vmatprep.mubr.msk.bf16.mxu1 %vm3546_vm1, %v3545_v59 }
 0x682   : > { %1208 = vmatprep.subr.bf16.mxu1 %v3809_v48 }
 0x738   : > { %v2972_v61 = vpop.f32.mrf.mxu0 }
 0x73a   : > { %v2973_v22 = vpop.f32.mrf.mxu0 }
 0x73b   : > { %v2974_v23 = vadd.f32 %v2973_v22, %v2972_v61 }
 0x73c   : > { %v2975_v34 = vpop.f32.mrf.mxu0 }
 0x73d   : > { %v1146_v16 = vmul.f32 %v2974_v23, %v3994_v7 }
 0x73e   : > { %v2976_v21 = vpop.f32.mrf.mxu0 }
 0x73f   : > { %v2977_v27 = vadd.f32 %v2976_v21, %v2975_v34 }
 0x740   : > { %v1138_v29 = vpop.f32.mrf.mxu1 }
 0x741   : > { %v1147_v37 = vmul.f32 %v2977_v27, %v3996_v31 }
 0x742   : > { %v1140_v19 = vpop.f32.mrf.mxu1 }
 0x744   : > { %v1141_v30 = vpop.f32.mrf.mxu1 }
 0x745   : > { %v1145_v8 = vpack.c.bf16 %v1141_v30, %v1138_v29 }
 0x746   : > { %v1143_v54 = vpop.f32.mrf.mxu1 }
 0x747   : > { %3112 = vmatmul.mubr.msk.bf16.vlgmr.msra.gmra.mxu1 %vm724_vm2, %v1145_v8 }
 0x748   : > { %1209 = vmatpush1.bf16.msra.mxu1 %v3811_v49  ;;  %1232 = vmatprep.mubr.bf16.mxu1 %v3544_v0 }
 0x749   : > { %1210 = vmatprep.subr.bf16.mxu1 %v3814_v45 }
 0x74c   : > { %1211 = vmatpush1.bf16.msra.mxu1 %v3819_v47 }
 0x74d   : > { %1212 = vmatprep.subr.bf16.mxu1 %v3821_v50 }
 0x750   : > { %1213 = vmatpush1.bf16.msra.mxu1 %v3828_v51 }
 0x751   : > { %1214 = vmatprep.subr.bf16.mxu1 %v3834_v52 }
 0x754   : > { %1215 = vmatpush1.bf16.msra.mxu1 %v3846_v57 }
 0x755   : > { %1306 = vmatprep.subr.bf16.mxu1 %v1062_v6 }
 0x807   : > { %v1185_v56 = vpop.f32.mrf.mxu1 }
 0x808   : > { %v1186_v55 = vadd.f32 1e-06, %v1185_v56 }
 0x809   : > { %v3113_v20 = vpop.f32.mrf.mxu1 }
 0x80a   : > { %3371 = vrcp.f32 %v1186_v55 }
 0x80b   : > { %v1188_v26 = vpop.f32.mrf.mxu1 }
 0x80c   : > { %v1189_v28 = vadd.f32 1e-06, %v1188_v26 }
 0x80d   : > { %v3114_v32 = vpop.f32.mrf.mxu1 }
 0x80e   : > { %3373 = vrcp.f32 %v1189_v28 }
 0x817   : > { %v3372_v35 = vpop.eup %3371 }
 0x818   : > { %v4060_v38 = vmul.f32 %v3372_v35, %v1146_v16 }
 0x81b   : > { %v3374_v17 = vpop.eup %3373 }
 0x81c   : > { %v4062_v39 = vmul.f32 %v3374_v17, %v1147_v37 }
 0x81e   : > { %v4066_v40 = vpack.c.bf16 %v4062_v39, %v4060_v38 }
 0x820   : > { %2889 = vmatmul.mubr.msk.bf16.vlgmr.msra.gmra.mxu1 %vm391_vm0, %v4066_v40  ;;  %v1198_v41 = vsel %vm391_vm0, %v4066_v40, 0 }
 0x821   : > { %1307 = vmatpush1.bf16.msra.mxu1 %v1061_v18  ;;  %3116 = vmatpush3.bf16.xpose.msra.mxu0 %v1198_v41 }
 0x822   : > { %2982 = vmatprep.subr.bf16.mxu0 %v3903_v62  ;;  %1324 = vmatprep.mubr.bf16.mxu1 %v3544_v0 }
 0x828   : > { %3118 = vmatmul.mubr.msk.bf16.vlgmr.msra.gmra.mxu0 %vm391_vm0, %v4066_v40 }
 0x829   : > { %2983 = vmatpush3.bf16.msra.mxu0 %v3897_v46 }
 0x82a   : > { %2984 = vmatprep.subr.bf16.mxu0 %v3901_v60 }
 0x82d   : > { %2985 = vmatpush3.bf16.msra.mxu0 %v3906_v9 }
 0x82e   : > { %2986 = vmatprep.subr.bf16.mxu0 %v3911_v25 }
 0x831   : > { %2987 = vmatpush3.bf16.msra.mxu0 %v3918_v33 }
 0x832   : > { %2988 = vmatprep.subr.bf16.mxu0 %v3923_v36 }
 0x835   : > { %2989 = vmatpush3.bf16.msra.mxu0 %v3930_v43 }
 0x836   : > { %2990 = vmatprep.subr.bf16.mxu0 %v3935_v58 }
 0x839   : > { %2991 = vmatpush3.bf16.msra.mxu0 %v3940_v63 }
 0x83a   : > { %2992 = vmatprep.subr.bf16.mxu0 %v3943_v1 }
 0x83d   : > { %2993 = vmatpush3.bf16.msra.mxu0 %v3946_v4 }
 0x83e   : > { %2994 = vmatprep.subr.bf16.mxu0 %v3869_v11 }
 0x841   : > { %2995 = vmatpush3.bf16.msra.mxu0 %v3867_v10 }
 0x842   : > { %2996 = vmatprep.subr.bf16.mxu0 %v3865_v3 }
 0x845   : > { %2997 = vmatpush3.bf16.msra.mxu0 %v3863_v2 }
 0x846   : > { %3127 = vmatprep.subr.bf16.mxu0 %v3545_v59 }
 0x8e0   : > { %v1234_v14 = vpop.f32.mrf.mxu1 }
 0x8e1   : > { %v1285_v23 = vmul.f32 %v1234_v14, %v4036_v13 }
 0x8e2   : > { %v1236_v24 = vpop.f32.mrf.mxu1 }
 0x8e3   : > { %v1286_v32 = vmul.f32 %v1236_v24, %v4032_v5 }
 0x8e4   : > { %v1238_v6 = vpop.f32.mrf.mxu1 }
 0x8e5   : > { %v1287_v26 = vmul.f32 %v1238_v6, %v4030_v15 }
 0x8e6   : > { %v1240_v18 = vpop.f32.mrf.mxu1 }
 0x8e7   : > { %v1288_v34 = vmul.f32 %v1240_v18, %v4034_v12 }
 0x8e8   : > { %v1277_v7 = vpop.f32.mrf.mxu0 }
 0x8ea   : > { %v3119_v31 = vpop.f32.mrf.mxu0 }
 0x8ec   : > { %v1280_v42 = vpop.f32.mrf.mxu0 }
 0x8ed   : > { %v1284_v44 = vpack.c.bf16 %v1280_v42, %v1277_v7 }
 0x8ee   : > { %v3120_v53 = vpop.f32.mrf.mxu0 }
 0x8ef   : > { %2891 = vmatmul.mubr.msk.bf16.vlgmr.msra.gmra.mxu1 %vm724_vm2, %v1284_v44 }
 0x9af   : > { %v1326_v29 = vpop.f32.mrf.mxu1 }
 0x9b0   : > { %v1327_v8 = vadd.f32 1e-06, %v1326_v29 }
 0x9b1   : > { %v1328_v19 = vpop.f32.mrf.mxu1 }
 0x9b2   : > { %v1329_v30 = vadd.f32 1e-06, %v1328_v19 }
 0x9b3   : > { %v1330_v54 = vpop.f32.mrf.mxu1 }
 0x9b4   : > { %v1331_v61 = vadd.f32 1e-06, %v1330_v54  ;;  %3375 = vrcp.f32 %v1329_v30 }
 0x9b5   : > { %v1332_v56 = vpop.f32.mrf.mxu1 }
 0x9b6   : > { %3377 = vrcp.f32 %v1331_v61  ;;  %v1333_v55 = vadd.f32 1e-06, %v1332_v56 }
 0x9b7   : > { %3379 = vrcp.f32 %v1327_v8 }
 0x9b8   : > { %3381 = vrcp.f32 %v1333_v55 }
 0x9c1   : > { %v3376_v20 = vpop.eup %3375 }
 0x9c2   : > { %v4099_v35 = vmul.f32 %v3376_v20, %v1286_v32 }
 0x9c3   : > { %v3378_v22 = vpop.eup %3377 }
 0x9c4   : > { %v3380_v28 = vpop.eup %3379  ;;  %v4097_v27 = vmul.f32 %v3378_v22, %v1287_v26 }
 0x9c5   : > { %v3382_v21 = vpop.eup %3381  ;;  %v4103_v37 = vmul.f32 %v3380_v28, %v1285_v23 }
 0x9c6   : > { %v4101_v16 = vmul.f32 %v3382_v21, %v1288_v34 }
 0x9c7   : > { %v1343_v15 = vpack.c.bf16 %v4097_v27, %v4103_v37 }
 0x9c8   : > { %v1344_v17 = vpack.c.bf16 %v4101_v16, %v4099_v35 }
 0x9ca   : > { %1377 = vmatprep.mubr.bf16.mxu0 %v1344_v17  ;;  %1400 = vmatprep.subr.bf16.mxu1 %v1344_v17 }
 0x9cb   : > { %1418 = vmatprep.mubr.bf16.mxu1 %v1344_v17  ;;  %1378 = vmatmul.mubr.bf16.vlgmr.msra.gmra.mxu0 %v1343_v15 }
 0x9cc   : > { %1401 = vmatpush1.bf16.xpose.msra.mxu1 %v1343_v15  ;;  %3129 = vmatprep.mubr.msk.bf16.mxu0 %vm3546_vm1, %v3545_v59 }
 0x9cd   : > { %3121 = vmatprep.subr.bf16.mxu1 %v3545_v59 }
 0x9d3   : > { %1419 = vmatmul.mubr.bf16.vlgmr.msra.gmra.mxu1 %v1343_v15 }
 0x9d4   : > { %3122 = vmatpush3.bf16.msra.mxu1 %v4066_v40  ;;  %3123 = vmatprep.mubr.msk.bf16.mxu1 %vm3546_vm1, %v3545_v59 }
 0x9d5   : > { %1490 = vmatprep.subr.bf16.mxu1 %v3809_v48 }
 0xa8b   : > { %v2998_v40 = vpop.f32.mrf.mxu0 }
 0xa8d   : > { %v2999_v53 = vpop.f32.mrf.mxu0 }
 0xa8e   : > { %v3000_v19 = vadd.f32 %v2999_v53, %v2998_v40 }
 0xa8f   : > { %v3001_v18 = vpop.f32.mrf.mxu0 }
 0xa90   : > { %v1428_v54 = vmul.f32 %v3000_v19, %v4060_v38 }
 0xa91   : > { %v3002_v29 = vpop.f32.mrf.mxu0 }
 0xa92   : > { %v3003_v30 = vadd.f32 %v3002_v29, %v3001_v18 }
 0xa93   : > { %v1420_v5 = vpop.f32.mrf.mxu1 }
 0xa94   : > { %v1429_v61 = vmul.f32 %v3003_v30, %v4062_v39 }
 0xa95   : > { %v1422_v12 = vpop.f32.mrf.mxu1 }
 0xa97   : > { %v1423_v13 = vpop.f32.mrf.mxu1 }
 0xa98   : > { %v1427_v41 = vpack.c.bf16 %v1423_v13, %v1420_v5 }
 0xa99   : > { %v1425_v7 = vpop.f32.mrf.mxu1 }
 0xa9a   : > { %3124 = vmatmul.mubr.msk.bf16.vlgmr.msra.gmra.mxu1 %vm724_vm2, %v1427_v41 }
 0xa9b   : > { %1491 = vmatpush1.bf16.msra.mxu1 %v3811_v49  ;;  %1514 = vmatprep.mubr.bf16.mxu1 %v3544_v0 }
 0xa9c   : > { %1492 = vmatprep.subr.bf16.mxu1 %v3814_v45 }
 0xa9f   : > { %1493 = vmatpush1.bf16.msra.mxu1 %v3819_v47 }
 0xaa0   : > { %1494 = vmatprep.subr.bf16.mxu1 %v3821_v50 }
 0xaa3   : > { %1495 = vmatpush1.bf16.msra.mxu1 %v3828_v51 }
 0xaa4   : > { %1496 = vmatprep.subr.bf16.mxu1 %v3834_v52 }
 0xaa7   : > { %1497 = vmatpush1.bf16.msra.mxu1 %v3846_v57 }
 0xaa8   : > { %1588 = vmatprep.subr.bf16.mxu1 %v1344_v17 }
 0xb5a   : > { %v1467_v31 = vpop.f32.mrf.mxu1 }
 0xb5b   : > { %v1468_v42 = vadd.f32 1e-06, %v1467_v31 }
 0xb5c   : > { %v3125_v44 = vpop.f32.mrf.mxu1 }
 0xb5d   : > { %3383 = vrcp.f32 %v1468_v42 }
 0xb5e   : > { %v1470_v14 = vpop.f32.mrf.mxu1 }
 0xb5f   : > { %v1471_v24 = vadd.f32 1e-06, %v1470_v14 }
 0xb60   : > { %v3126_v6 = vpop.f32.mrf.mxu1 }
 0xb61   : > { %3385 = vrcp.f32 %v1471_v24 }
 0xb6a   : > { %v3384_v8 = vpop.eup %3383 }
 0xb6b   : > { %v4127_v55 = vmul.f32 %v3384_v8, %v1428_v54 }
 0xb6e   : > { %v3386_v56 = vpop.eup %3385 }
 0xb6f   : > { %v4129_v20 = vmul.f32 %v3386_v56, %v1429_v61 }
 0xb71   : > { %v4133_v22 = vpack.c.bf16 %v4129_v20, %v4127_v55 }
 0xb73   : > { %2893 = vmatmul.mubr.msk.bf16.vlgmr.msra.gmra.mxu1 %vm391_vm0, %v4133_v22  ;;  %v1480_v26 = vsel %vm391_vm0, %v4133_v22, 0 }
 0xb74   : > { %1589 = vmatpush1.bf16.msra.mxu1 %v1343_v15  ;;  %3128 = vmatpush3.bf16.xpose.msra.mxu0 %v1480_v26 }
 0xb75   : > { %3008 = vmatprep.subr.bf16.mxu0 %v3903_v62  ;;  %1606 = vmatprep.mubr.bf16.mxu1 %v3544_v0 }
 0xb7b   : > { %3130 = vmatmul.mubr.msk.bf16.vlgmr.msra.gmra.mxu0 %vm391_vm0, %v4133_v22 }
 0xb7c   : > { %3009 = vmatpush3.bf16.msra.mxu0 %v3897_v46 }
 0xb7d   : > { %3010 = vmatprep.subr.bf16.mxu0 %v3901_v60 }
 0xb80   : > { %3011 = vmatpush3.bf16.msra.mxu0 %v3906_v9 }
 0xb81   : > { %3012 = vmatprep.subr.bf16.mxu0 %v3911_v25 }
 0xb84   : > { %3013 = vmatpush3.bf16.msra.mxu0 %v3918_v33 }
 0xb85   : > { %3014 = vmatprep.subr.bf16.mxu0 %v3923_v36 }
 0xb88   : > { %3015 = vmatpush3.bf16.msra.mxu0 %v3930_v43 }
 0xb89   : > { %3016 = vmatprep.subr.bf16.mxu0 %v3935_v58 }
 0xb8c   : > { %3017 = vmatpush3.bf16.msra.mxu0 %v3940_v63 }
 0xb8d   : > { %3018 = vmatprep.subr.bf16.mxu0 %v3943_v1 }
 0xb90   : > { %3019 = vmatpush3.bf16.msra.mxu0 %v3946_v4 }
 0xb91   : > { %3020 = vmatprep.subr.bf16.mxu0 %v3869_v11 }
 0xb94   : > { %3021 = vmatpush3.bf16.msra.mxu0 %v3867_v10 }
 0xb95   : > { %3022 = vmatprep.subr.bf16.mxu0 %v3865_v3 }
 0xb98   : > { %3023 = vmatpush3.bf16.msra.mxu0 %v3863_v2 }
 0xb99   : > { %3139 = vmatprep.subr.bf16.mxu0 %v3545_v59 }
 0xc33   : > { %v1516_v21 = vpop.f32.mrf.mxu1 }
 0xc34   : > { %v1567_v19 = vmul.f32 %v1516_v21, %v4103_v37 }
 0xc35   : > { %v1518_v23 = vpop.f32.mrf.mxu1 }
 0xc36   : > { %v1568_v6 = vmul.f32 %v1518_v23, %v4099_v35 }
 0xc37   : > { %v1520_v17 = vpop.f32.mrf.mxu1 }
 0xc38   : > { %v1569_v14 = vmul.f32 %v1520_v17, %v4097_v27 }
 0xc39   : > { %v1522_v15 = vpop.f32.mrf.mxu1 }
 0xc3a   : > { %v1570_v18 = vmul.f32 %v1522_v15, %v4101_v16 }
 0xc3b   : > { %v1559_v38 = vpop.f32.mrf.mxu0 }
 0xc3d   : > { %v3131_v39 = vpop.f32.mrf.mxu0 }
 0xc3f   : > { %v1562_v28 = vpop.f32.mrf.mxu0 }
 0xc40   : > { %v1566_v32 = vpack.c.bf16 %v1562_v28, %v1559_v38 }
 0xc41   : > { %v3132_v34 = vpop.f32.mrf.mxu0 }
 0xc42   : > { %2895 = vmatmul.mubr.msk.bf16.vlgmr.msra.gmra.mxu1 %vm724_vm2, %v1566_v32 }
 0xd02   : > { %v1608_v5 = vpop.f32.mrf.mxu1 }
 0xd03   : > { %v1609_v41 = vadd.f32 1e-06, %v1608_v5 }
 0xd04   : > { %v1610_v12 = vpop.f32.mrf.mxu1 }
 0xd05   : > { %v1611_v13 = vadd.f32 1e-06, %v1610_v12 }
 0xd06   : > { %v1612_v7 = vpop.f32.mrf.mxu1 }
 0xd07   : > { %v1613_v40 = vadd.f32 1e-06, %v1612_v7  ;;  %3387 = vrcp.f32 %v1611_v13 }
 0xd08   : > { %v1614_v31 = vpop.f32.mrf.mxu1 }
 0xd09   : > { %3389 = vrcp.f32 %v1613_v40  ;;  %v1615_v42 = vadd.f32 1e-06, %v1614_v31 }
 0xd0a   : > { %3391 = vrcp.f32 %v1609_v41 }
 0xd0b   : > { %3393 = vrcp.f32 %v1615_v42 }
 0xd14   : > { %v3388_v44 = vpop.eup %3387 }
 0xd15   : > { %v4166_v8 = vmul.f32 %v3388_v44, %v1568_v6 }
 0xd16   : > { %v3390_v53 = vpop.eup %3389 }
 0xd17   : > { %v3392_v24 = vpop.eup %3391  ;;  %v4164_v30 = vmul.f32 %v3390_v53, %v1569_v14 }
 0xd18   : > { %v3394_v29 = vpop.eup %3393  ;;  %v4170_v61 = vmul.f32 %v3392_v24, %v1567_v19 }
 0xd19   : > { %v4168_v54 = vmul.f32 %v3394_v29, %v1570_v18 }
 0xd1a   : > { %v1625_v27 = vpack.c.bf16 %v4164_v30, %v4170_v61 }
 0xd1b   : > { %v1626_v56 = vpack.c.bf16 %v4168_v54, %v4166_v8 }
 0xd1d   : > { %1659 = vmatprep.mubr.bf16.mxu0 %v1626_v56  ;;  %1682 = vmatprep.subr.bf16.mxu1 %v1626_v56 }
 0xd1e   : > { %1700 = vmatprep.mubr.bf16.mxu1 %v1626_v56  ;;  %1660 = vmatmul.mubr.bf16.vlgmr.msra.gmra.mxu0 %v1625_v27 }
 0xd1f   : > { %1683 = vmatpush1.bf16.xpose.msra.mxu1 %v1625_v27  ;;  %3141 = vmatprep.mubr.msk.bf16.mxu0 %vm3546_vm1, %v3545_v59 }
 0xd20   : > { %3133 = vmatprep.subr.bf16.mxu1 %v3545_v59 }
 0xd26   : > { %1701 = vmatmul.mubr.bf16.vlgmr.msra.gmra.mxu1 %v1625_v27 }
 0xd27   : > { %3134 = vmatpush3.bf16.msra.mxu1 %v4133_v22  ;;  %3135 = vmatprep.mubr.msk.bf16.mxu1 %vm3546_vm1, %v3545_v59 }
 0xd28   : > { %1772 = vmatprep.subr.bf16.mxu1 %v3809_v48 }
 0xdde   : > { %v3024_v22 = vpop.f32.mrf.mxu0 }
 0xde0   : > { %v3025_v34 = vpop.f32.mrf.mxu0 }
 0xde1   : > { %v3026_v12 = vadd.f32 %v3025_v34, %v3024_v22 }
 0xde2   : > { %v3027_v15 = vpop.f32.mrf.mxu0 }
 0xde3   : > { %v1710_v7 = vmul.f32 %v3026_v12, %v4127_v55 }
 0xde4   : > { %v3028_v5 = vpop.f32.mrf.mxu0 }
 0xde5   : > { %v3029_v13 = vadd.f32 %v3028_v5, %v3027_v15 }
 0xde6   : > { %v1702_v35 = vpop.f32.mrf.mxu1 }
 0xde7   : > { %v1711_v40 = vmul.f32 %v3029_v13, %v4129_v20 }
 0xde8   : > { %v1704_v16 = vpop.f32.mrf.mxu1 }
 0xdea   : > { %v1705_v37 = vpop.f32.mrf.mxu1 }
 0xdeb   : > { %v1709_v26 = vpack.c.bf16 %v1705_v37, %v1702_v35 }
 0xdec   : > { %v1707_v38 = vpop.f32.mrf.mxu1 }
 0xded   : > { %3136 = vmatmul.mubr.msk.bf16.vlgmr.msra.gmra.mxu1 %vm724_vm2, %v1709_v26 }
 0xdee   : > { %1773 = vmatpush1.bf16.msra.mxu1 %v3811_v49  ;;  %1796 = vmatprep.mubr.bf16.mxu1 %v3544_v0 }
 0xdef   : > { %1774 = vmatprep.subr.bf16.mxu1 %v3814_v45 }
 0xdf2   : > { %1775 = vmatpush1.bf16.msra.mxu1 %v3819_v47 }
 0xdf3   : > { %1776 = vmatprep.subr.bf16.mxu1 %v3821_v50 }
 0xdf6   : > { %1777 = vmatpush1.bf16.msra.mxu1 %v3828_v51 }
 0xdf7   : > { %1778 = vmatprep.subr.bf16.mxu1 %v3834_v52 }
 0xdfa   : > { %1779 = vmatpush1.bf16.msra.mxu1 %v3846_v57 }
 0xdfb   : > { %1870 = vmatprep.subr.bf16.mxu1 %v1626_v56 }
 0xead   : > { %v1749_v39 = vpop.f32.mrf.mxu1 }
 0xeae   : > { %v1750_v28 = vadd.f32 1e-06, %v1749_v39 }
 0xeaf   : > { %v3137_v32 = vpop.f32.mrf.mxu1 }
 0xeb0   : > { %3395 = vrcp.f32 %v1750_v28 }
 0xeb1   : > { %v1752_v21 = vpop.f32.mrf.mxu1 }
 0xeb2   : > { %v1753_v23 = vadd.f32 1e-06, %v1752_v21 }
 0xeb3   : > { %v3138_v17 = vpop.f32.mrf.mxu1 }
 0xeb4   : > { %3397 = vrcp.f32 %v1753_v23 }
 0xebd   : > { %v3396_v41 = vpop.eup %3395 }
 0xebe   : > { %v4194_v42 = vmul.f32 %v3396_v41, %v1710_v7 }
 0xec1   : > { %v3398_v31 = vpop.eup %3397 }
 0xec2   : > { %v4196_v44 = vmul.f32 %v3398_v31, %v1711_v40 }
 0xec4   : > { %v4200_v53 = vpack.c.bf16 %v4196_v44, %v4194_v42 }
 0xec6   : > { %2897 = vmatmul.mubr.msk.bf16.vlgmr.msra.gmra.mxu1 %vm391_vm0, %v4200_v53  ;;  %v1762_v14 = vsel %vm391_vm0, %v4200_v53, 0 }
 0xec7   : > { %1871 = vmatpush1.bf16.msra.mxu1 %v1625_v27  ;;  %3140 = vmatpush3.bf16.xpose.msra.mxu0 %v1762_v14 }
 0xec8   : > { %3034 = vmatprep.subr.bf16.mxu0 %v3903_v62  ;;  %1888 = vmatprep.mubr.bf16.mxu1 %v3544_v0 }
 0xece   : > { %3142 = vmatmul.mubr.msk.bf16.vlgmr.msra.gmra.mxu0 %vm391_vm0, %v4200_v53 }
 0xecf   : > { %3035 = vmatpush3.bf16.msra.mxu0 %v3897_v46 }
 0xed0   : > { %3036 = vmatprep.subr.bf16.mxu0 %v3901_v60 }
 0xed3   : > { %3037 = vmatpush3.bf16.msra.mxu0 %v3906_v9 }
 0xed4   : > { %3038 = vmatprep.subr.bf16.mxu0 %v3911_v25 }
 0xed7   : > { %3039 = vmatpush3.bf16.msra.mxu0 %v3918_v33 }
 0xed8   : > { %3040 = vmatprep.subr.bf16.mxu0 %v3923_v36 }
 0xedb   : > { %3041 = vmatpush3.bf16.msra.mxu0 %v3930_v43 }
 0xedc   : > { %3042 = vmatprep.subr.bf16.mxu0 %v3935_v58 }
 0xedf   : > { %3043 = vmatpush3.bf16.msra.mxu0 %v3940_v63 }
 0xee0   : > { %3044 = vmatprep.subr.bf16.mxu0 %v3943_v1 }
 0xee3   : > { %3045 = vmatpush3.bf16.msra.mxu0 %v3946_v4 }
 0xee4   : > { %3046 = vmatprep.subr.bf16.mxu0 %v3869_v11 }
 0xee7   : > { %3047 = vmatpush3.bf16.msra.mxu0 %v3867_v10 }
 0xee8   : > { %3048 = vmatprep.subr.bf16.mxu0 %v3865_v3 }
 0xeeb   : > { %3049 = vmatpush3.bf16.msra.mxu0 %v3863_v2 }
 0xeec   : > { %3151 = vmatprep.subr.bf16.mxu0 %v3545_v59 }
 0xf86   : > { %v1798_v29 = vpop.f32.mrf.mxu1 }
 0xf87   : > { %v1849_v12 = vmul.f32 %v1798_v29, %v4170_v61 }
 0xf88   : > { %v1800_v19 = vpop.f32.mrf.mxu1 }
 0xf89   : > { %v1850_v17 = vmul.f32 %v1800_v19, %v4166_v8 }
 0xf8a   : > { %v1802_v56 = vpop.f32.mrf.mxu1 }
 0xf8b   : > { %v1851_v21 = vmul.f32 %v1802_v56, %v4164_v30 }
 0xf8c   : > { %v1804_v27 = vpop.f32.mrf.mxu1 }
 0xf8d   : > { %v1852_v15 = vmul.f32 %v1804_v27, %v4168_v54 }
 0xf8e   : > { %v1841_v55 = vpop.f32.mrf.mxu0 }
 0xf90   : > { %v3143_v20 = vpop.f32.mrf.mxu0 }
 0xf92   : > { %v1844_v24 = vpop.f32.mrf.mxu0 }
 0xf93   : > { %v1848_v6 = vpack.c.bf16 %v1844_v24, %v1841_v55 }
 0xf94   : > { %v3144_v18 = vpop.f32.mrf.mxu0 }
 0xf95   : > { %2899 = vmatmul.mubr.msk.bf16.vlgmr.msra.gmra.mxu1 %vm724_vm2, %v1848_v6 }
0x1055   : > { %v1890_v35 = vpop.f32.mrf.mxu1 }
0x1056   : > { %v1891_v26 = vadd.f32 1e-06, %v1890_v35 }
0x1057   : > { %v1892_v16 = vpop.f32.mrf.mxu1 }
0x1058   : > { %v1893_v37 = vadd.f32 1e-06, %v1892_v16 }
0x1059   : > { %v1894_v38 = vpop.f32.mrf.mxu1 }
0x105a   : > { %v1895_v22 = vadd.f32 1e-06, %v1894_v38  ;;  %3399 = vrcp.f32 %v1893_v37 }
0x105b   : > { %v1896_v39 = vpop.f32.mrf.mxu1 }
0x105c   : > { %3401 = vrcp.f32 %v1895_v22  ;;  %v1897_v28 = vadd.f32 1e-06, %v1896_v39 }
0x105d   : > { %3403 = vrcp.f32 %v1891_v26 }
0x105e   : > { %3405 = vrcp.f32 %v1897_v28 }
0x1067   : > { %v3400_v32 = vpop.eup %3399 }
0x1068   : > { %v4233_v41 = vmul.f32 %v3400_v32, %v1850_v17 }
0x1069   : > { %v3402_v34 = vpop.eup %3401 }
0x106a   : > { %v3404_v23 = vpop.eup %3403  ;;  %v4231_v13 = vmul.f32 %v3402_v34, %v1851_v21 }
0x106b   : > { %v3406_v5 = vpop.eup %3405  ;;  %v4237_v40 = vmul.f32 %v3404_v23, %v1849_v12 }
0x106c   : > { %v4235_v7 = vmul.f32 %v3406_v5, %v1852_v15 }
0x106d   : > { %v1907_v30 = vpack.c.bf16 %v4231_v13, %v4237_v40 }
0x106e   : > { %v1908_v31 = vpack.c.bf16 %v4235_v7, %v4233_v41 }
0x1070   : > { %1941 = vmatprep.mubr.bf16.mxu0 %v1908_v31  ;;  %1964 = vmatprep.subr.bf16.mxu1 %v1908_v31 }
0x1071   : > { %1982 = vmatprep.mubr.bf16.mxu1 %v1908_v31  ;;  %1942 = vmatmul.mubr.bf16.vlgmr.msra.gmra.mxu0 %v1907_v30 }
0x1072   : > { %1965 = vmatpush1.bf16.xpose.msra.mxu1 %v1907_v30  ;;  %3153 = vmatprep.mubr.msk.bf16.mxu0 %vm3546_vm1, %v3545_v59 }
0x1073   : > { %3145 = vmatprep.subr.bf16.mxu1 %v3545_v59 }
0x1079   : > { %1983 = vmatmul.mubr.bf16.vlgmr.msra.gmra.mxu1 %v1907_v30 }
0x107a   : > { %3146 = vmatpush3.bf16.msra.mxu1 %v4200_v53  ;;  %3147 = vmatprep.mubr.msk.bf16.mxu1 %vm3546_vm1, %v3545_v59 }
0x107b   : > { %2054 = vmatprep.subr.bf16.mxu1 %v3809_v48 }
0x1131   : > { %v3050_v53 = vpop.f32.mrf.mxu0 }
0x1133   : > { %v3051_v18 = vpop.f32.mrf.mxu0 }
0x1134   : > { %v3052_v16 = vadd.f32 %v3051_v18, %v3050_v53 }
0x1135   : > { %v3053_v27 = vpop.f32.mrf.mxu0 }
0x1136   : > { %v1992_v38 = vmul.f32 %v3052_v16, %v4194_v42 }
0x1137   : > { %v3054_v35 = vpop.f32.mrf.mxu0 }
0x1138   : > { %v3055_v37 = vadd.f32 %v3054_v35, %v3053_v27 }
0x1139   : > { %v1984_v8 = vpop.f32.mrf.mxu1 }
0x113a   : > { %v1993_v22 = vmul.f32 %v3055_v37, %v4196_v44 }
0x113b   : > { %v1986_v54 = vpop.f32.mrf.mxu1 }
0x113d   : > { %v1987_v61 = vpop.f32.mrf.mxu1 }
0x113e   : > { %v1991_v14 = vpack.c.bf16 %v1987_v61, %v1984_v8 }
0x113f   : > { %v1989_v55 = vpop.f32.mrf.mxu1 }
0x1140   : > { %3148 = vmatmul.mubr.msk.bf16.vlgmr.msra.gmra.mxu1 %vm724_vm2, %v1991_v14 }
0x1141   : > { %2055 = vmatpush1.bf16.msra.mxu1 %v3811_v49  ;;  %2078 = vmatprep.mubr.bf16.mxu1 %v3544_v0 }
0x1142   : > { %2056 = vmatprep.subr.bf16.mxu1 %v3814_v45 }
0x1145   : > { %2057 = vmatpush1.bf16.msra.mxu1 %v3819_v47 }
0x1146   : > { %2058 = vmatprep.subr.bf16.mxu1 %v3821_v50 }
0x1149   : > { %2059 = vmatpush1.bf16.msra.mxu1 %v3828_v51 }
0x114a   : > { %2060 = vmatprep.subr.bf16.mxu1 %v3834_v52 }
0x114d   : > { %2061 = vmatpush1.bf16.msra.mxu1 %v3846_v57 }
0x114e   : > { %2152 = vmatprep.subr.bf16.mxu1 %v1908_v31 }
0x1200   : > { %v2031_v20 = vpop.f32.mrf.mxu1 }
0x1201   : > { %v2032_v24 = vadd.f32 1e-06, %v2031_v20 }
0x1202   : > { %v3149_v6 = vpop.f32.mrf.mxu1 }
0x1203   : > { %3407 = vrcp.f32 %v2032_v24 }
0x1204   : > { %v2034_v29 = vpop.f32.mrf.mxu1 }
0x1205   : > { %v2035_v19 = vadd.f32 1e-06, %v2034_v29 }
0x1206   : > { %v3150_v56 = vpop.f32.mrf.mxu1 }
0x1207   : > { %3409 = vrcp.f32 %v2035_v19 }
0x1210   : > { %v3408_v26 = vpop.eup %3407 }
0x1211   : > { %v4261_v28 = vmul.f32 %v3408_v26, %v1992_v38  ;;  %v3335_v38 = vld [vmem:[%s4451_s3] sm:$0xff]  }
0x1214   : > { %v3410_v39 = vpop.eup %3409 }
0x1215   : > { %v4263_v32 = vmul.f32 %v3410_v39, %v1993_v22  ;;  %v3336_v22 = vld [vmem:[%s4451_s3 + $0x8] sm:$0xff]   ;;  %v3337_v39 = vld [vmem:[%s4451_s3 + $0x10] sm:$0xff]  }
0x1217   : > { %v4267_v34 = vpack.c.bf16 %v4263_v32, %v4261_v28 }
0x1219   : > { %2901 = vmatmul.mubr.msk.bf16.vlgmr.msra.gmra.mxu1 %vm391_vm0, %v4267_v34  ;;  %v2044_v21 = vsel %vm391_vm0, %v4267_v34, 0 }
0x121a   : > { %2153 = vmatpush1.bf16.msra.mxu1 %v1907_v30  ;;  %3152 = vmatpush3.bf16.xpose.msra.mxu0 %v2044_v21 }
0x121b   : > { %3060 = vmatprep.subr.bf16.mxu0 %v3903_v62  ;;  %2170 = vmatprep.mubr.bf16.mxu1 %v3544_v0 }
0x1221   : > { %3154 = vmatmul.mubr.msk.bf16.vlgmr.msra.gmra.mxu0 %vm391_vm0, %v4267_v34 }
0x1222   : > { %3061 = vmatpush3.bf16.msra.mxu0 %v3897_v46 }
0x1223   : > { %3062 = vmatprep.subr.bf16.mxu0 %v3901_v60 }
0x1226   : > { %3063 = vmatpush3.bf16.msra.mxu0 %v3906_v9 }
0x1227   : > { %3064 = vmatprep.subr.bf16.mxu0 %v3911_v25 }
0x122a   : > { %3065 = vmatpush3.bf16.msra.mxu0 %v3918_v33 }
0x122b   : > { %3066 = vmatprep.subr.bf16.mxu0 %v3923_v36 }
0x122e   : > { %3067 = vmatpush3.bf16.msra.mxu0 %v3930_v43 }
0x122f   : > { %3068 = vmatprep.subr.bf16.mxu0 %v3935_v58 }
0x1232   : > { %3069 = vmatpush3.bf16.msra.mxu0 %v3940_v63 }
0x1233   : > { %3070 = vmatprep.subr.bf16.mxu0 %v3943_v1 }
0x1236   : > { %3071 = vmatpush3.bf16.msra.mxu0 %v3946_v4 }
0x1237   : > { %3072 = vmatprep.subr.bf16.mxu0 %v3869_v11 }
0x123a   : > { %3073 = vmatpush3.bf16.msra.mxu0 %v3867_v10 }
0x123b   : > { %3074 = vmatprep.subr.bf16.mxu0 %v3865_v3 }
0x123e   : > { %3075 = vmatpush3.bf16.msra.mxu0 %v3863_v2 }
0x123f   : > { %3163 = vmatprep.subr.bf16.mxu0 %v3545_v59 }
0x12d9   : > { %v2080_v33 = vpop.f32.mrf.mxu1 }
0x12da   : > { %v2131_v30 = vmul.f32 %v2080_v33, %v4237_v40 }
0x12db   : > { %v2082_v36 = vpop.f32.mrf.mxu1 }
0x12dc   : > { %v2132_v5 = vmul.f32 %v2082_v36, %v4233_v41 }
0x12dd   : > { %v2084_v43 = vpop.f32.mrf.mxu1 }
0x12de   : > { %v2133_v17 = vmul.f32 %v2084_v43, %v4231_v13 }
0x12df   : > { %v2086_v58 = vpop.f32.mrf.mxu1 }
0x12e0   : > { %v2134_v12 = vmul.f32 %v2086_v58, %v4235_v7 }
0x12e1   : > { %v2123_v46 = vpop.f32.mrf.mxu0 }
0x12e3   : > { %v3155_v60 = vpop.f32.mrf.mxu0 }
0x12e5   : > { %v2126_v62 = vpop.f32.mrf.mxu0 }
0x12e6   : > { %v2130_v9 = vpack.c.bf16 %v2126_v62, %v2123_v46 }
0x12e7   : > { %v3156_v25 = vpop.f32.mrf.mxu0 }
0x12e8   : > { %2903 = vmatmul.mubr.msk.bf16.vlgmr.msra.gmra.mxu1 %vm724_vm2, %v2130_v9 }
0x13a8   : > { %v2172_v11 = vpop.f32.mrf.mxu1 }
0x13a9   : > { %v2173_v1 = vadd.f32 1e-06, %v2172_v11 }
0x13aa   : > { %v2174_v63 = vpop.f32.mrf.mxu1 }
0x13ab   : > { %v2175_v10 = vadd.f32 1e-06, %v2174_v63 }
0x13ac   : > { %v2176_v3 = vpop.f32.mrf.mxu1 }
0x13ad   : > { %v2177_v4 = vadd.f32 1e-06, %v2176_v3  ;;  %3411 = vrcp.f32 %v2175_v10 }
0x13ae   : > { %v2178_v2 = vpop.f32.mrf.mxu1 }
0x13af   : > { %3413 = vrcp.f32 %v2177_v4  ;;  %v2179_v42 = vadd.f32 1e-06, %v2178_v2 }
0x13b0   : > { %3415 = vrcp.f32 %v2173_v1 }
0x13b1   : > { %3417 = vrcp.f32 %v2179_v42 }
0x13ba   : > { %v3412_v44 = vpop.eup %3411 }
0x13bb   : > { %v4300_v54 = vmul.f32 %v3412_v44, %v2132_v5 }
0x13bc   : > { %v3414_v23 = vpop.eup %3413 }
0x13bd   : > { %v3416_v15 = vpop.eup %3415  ;;  %v4298_v8 = vmul.f32 %v3414_v23, %v2133_v17 }
0x13be   : > { %v3418_v31 = vpop.eup %3417  ;;  %v4304_v14 = vmul.f32 %v3416_v15, %v2131_v30 }
0x13bf   : > { %v4302_v61 = vmul.f32 %v3418_v31, %v2134_v12 }
0x13c0   : > { %v2189_v13 = vpack.c.bf16 %v4298_v8, %v4304_v14 }
0x13c1   : > { %v2190_v55 = vpack.c.bf16 %v4302_v61, %v4300_v54 }
0x13c3   : > { %2223 = vmatprep.mubr.bf16.mxu0 %v2190_v55  ;;  %2246 = vmatprep.subr.bf16.mxu1 %v2190_v55 }
0x13c4   : > { %2264 = vmatprep.mubr.bf16.mxu1 %v2190_v55  ;;  %2224 = vmatmul.mubr.bf16.vlgmr.msra.gmra.mxu0 %v2189_v13 }
0x13c5   : > { %2247 = vmatpush1.bf16.xpose.msra.mxu1 %v2189_v13  ;;  %3165 = vmatprep.mubr.msk.bf16.mxu0 %vm3546_vm1, %v3545_v59 }
0x13c6   : > { %3157 = vmatprep.subr.bf16.mxu1 %v3545_v59 }
0x13cc   : > { %2265 = vmatmul.mubr.bf16.vlgmr.msra.gmra.mxu1 %v2189_v13 }
0x13cd   : > { %3158 = vmatpush3.bf16.msra.mxu1 %v4267_v34  ;;  %3159 = vmatprep.mubr.msk.bf16.mxu1 %vm3546_vm1, %v3545_v59 }
0x13ce   : > { %2336 = vmatprep.subr.bf16.mxu1 %v3809_v48 }
0x1484   : > { %v3076_v48 = vpop.f32.mrf.mxu0 }
0x148c   : > { %v2266_v41 = vpop.f32.mrf.mxu1 }
0x148e   : > { %v2268_v7 = vpop.f32.mrf.mxu1 }
0x1490   : > { %v2269_v40 = vpop.f32.mrf.mxu1 }
0x1491   : > { %v2273_v53 = vpack.c.bf16 %v2269_v40, %v2266_v41 }
0x1492   : > { %v2271_v20 = vpop.f32.mrf.mxu1 }
0x1493   : > { %3160 = vmatmul.mubr.msk.bf16.vlgmr.msra.gmra.mxu1 %vm724_vm2, %v2273_v53 }
0x1494   : > { %2337 = vmatpush1.bf16.msra.mxu1 %v3811_v49  ;;  %2360 = vmatprep.mubr.bf16.mxu1 %v3544_v0  ;;  %v3077_v49 = vpop.f32.mrf.mxu0 }
0x1495   : > { %2338 = vmatprep.subr.bf16.mxu1 %v3814_v45 }
0x1498   : > { %2339 = vmatpush1.bf16.msra.mxu1 %v3819_v47  ;;  %v3079_v47 = vpop.f32.mrf.mxu0 }
0x1499   : > { %2340 = vmatprep.subr.bf16.mxu1 %v3821_v50  ;;  %v3078_v50 = vadd.f32 %v3077_v49, %v3076_v48  ;;  %v2593_v49 = vpop.permute.xlu1 %2592 }
0x149a   : > { %v3080_v19 = vpop.f32.mrf.mxu0 }
0x149b   : > { %v3081_v56 = vadd.f32 %v3080_v19, %v3079_v47 }
0x149c   : > { %2341 = vmatpush1.bf16.msra.mxu1 %v3828_v51 }
0x149d   : > { %2342 = vmatprep.subr.bf16.mxu1 %v3834_v52  ;;  %v2274_v52 = vmul.f32 %v3078_v50, %v4261_v28  ;;  %v3338_v28 = vld [vmem:[%s4451_s3 + $0x18] sm:$0xff]   ;;  %v3431_v50 = vld [vmem:[%s3688_s13] sm:$0xff] }
0x14a0   : > { %2343 = vmatpush1.bf16.msra.mxu1 %v3846_v57  ;;  %v2275_v57 = vmul.f32 %v3081_v56, %v4263_v32 }
0x14a1   : > { %2434 = vmatprep.subr.bf16.mxu1 %v2190_v55 }
0x1553   : > { %v2313_v59 = vpop.f32.mrf.mxu1 }
0x1554   : > { %v2314_v24 = vadd.f32 1e-06, %v2313_v59 }
0x1555   : > { %v3161_v6 = vpop.f32.mrf.mxu1 }
0x1556   : > { %3419 = vrcp.f32 %v2314_v24 }
0x1557   : > { %v2316_v18 = vpop.f32.mrf.mxu1 }
0x1558   : > { %v2317_v29 = vadd.f32 1e-06, %v2316_v18  ;;  %v2598_v18 = vpop.permute.xlu1 %2597 }
0x1559   : > { %v3162_v45 = vpop.f32.mrf.mxu1 }
0x155a   : > { %3421 = vrcp.f32 %v2317_v29 }
0x155c   : > { %v2603_v29 = vpop.permute.xlu1 %2602 }
0x1563   : > { %v3420_v51 = vpop.eup %3419 }
0x1564   : > { %v2322_v35 = vmul.f32 %v3420_v51, %v2274_v52  ;;  %v2608_v52 = vpop.permute.xlu1 %2607 }
0x1567   : > { %v3422_v27 = vpop.eup %3421 }
0x1568   : > { %v2323_v16 = vmul.f32 %v3422_v27, %v2275_v57 }
0x156a   : > { %v2324_v37 = vpack.c.bf16 %v2323_v16, %v2322_v35  ;;  %v3432_v35 = vld [vmem:[%s3688_s13 + $0x8] sm:$0xff] }
0x156c   : > { %2905 = vmatmul.mubr.msk.bf16.vlgmr.msra.gmra.mxu1 %vm391_vm0, %v2324_v37  ;;  %v2326_v26 = vsel %vm391_vm0, %v2324_v37, 0 }
0x156d   : > { %2435 = vmatpush1.bf16.msra.mxu1 %v2189_v13  ;;  %3164 = vmatpush3.bf16.xpose.msra.mxu0 %v2326_v26 }
0x156e   : > { %3179 = vmatprep.subr.msk.bf16.mxu0 %vm391_vm0, %v2324_v37  ;;  %2452 = vmatprep.mubr.bf16.mxu1 %v3544_v0 }
0x1574   : > { %3166 = vmatmul.mubr.msk.bf16.vlgmr.msra.gmra.mxu0 %vm391_vm0, %v2324_v37 }
0x1575   : > { %3170 = vmatpush3.bf16.xpose.msra.mxu0 %v2326_v26  ;;  %3171 = vmatprep.mubr.msk.bf16.mxu0 %vm391_vm0, %v3335_v38  ;;  %v3433_v38 = vld [vmem:[%s3688_s13 + $0x10] sm:$0xff] }
0x157c   : > { %3172 = vmatmul.mubr.msk.bf16.vlgmr.msra.gmra.mxu0 %vm391_vm0, %v3336_v22 }
0x157d   : > { %3175 = vmatprep.mubr.msk.bf16.mxu0 %vm391_vm0, %v3337_v39 }
0x1584   : > { %3176 = vmatmul.mubr.msk.bf16.gmra.mxu0 %vm391_vm0, %v3338_v28 }
0x162c   : > { %v2362_v62 = vpop.f32.mrf.mxu1 }
0x162d   : > { %v2413_v31 = vmul.f32 %v2362_v62, %v4304_v14 }
0x162e   : > { %v2364_v9 = vpop.f32.mrf.mxu1 }
0x162f   : > { %v2414_v15 = vmul.f32 %v2364_v9, %v4300_v54 }
0x1630   : > { %v2366_v25 = vpop.f32.mrf.mxu1 }
0x1631   : > { %v2415_v23 = vmul.f32 %v2366_v25, %v4298_v8  ;;  %v3435_v25 = vld [vmem:[%s3688_s13 + $0x20] sm:$0xff] }
0x1632   : > { %v2368_v33 = vpop.f32.mrf.mxu1 }
0x1633   : > { %v2416_v5 = vmul.f32 %v2368_v33, %v4302_v61 }
0x1634   : > { %v2405_v32 = vpop.f32.mrf.mxu0 }
0x1636   : > { %v3167_v34 = vpop.f32.mrf.mxu0 }
0x1637   : > { %v3434_v34 = vld [vmem:[%s3688_s13 + $0x18] sm:$0xff] }
0x1638   : > { %v2408_v21 = vpop.f32.mrf.mxu0 }
0x1639   : > { %v2412_v46 = vpack.c.bf16 %v2408_v21, %v2405_v32 }
0x163a   : > { %v3168_v60 = vpop.f32.mrf.mxu0 }
0x163b   : > { %2907 = vmatmul.mubr.msk.bf16.vlgmr.msra.gmra.mxu1 %vm724_vm2, %v2412_v46  ;;  %v2613_v60 = vpop.permute.xlu1 %2612 }
0x163c   : > { %2674 = vmatprep.mubr.bf16.mxu1 %v3544_v0  ;;  %v3173_v4 = vpop.f32.mrf.mxu0 }
0x163e   : > { %v2545_v2 = vpop.f32.mrf.mxu0 }
0x1640   : > { %v3174_v30 = vpop.f32.mrf.mxu0 }
0x1641   : > { %v2577_v61 = vpack.c.bf16 %v3174_v30, %v3173_v4  ;;  %v3437_v4 = vld [vmem:[%s3688_s13 + $0x30] sm:$0xff] }
0x1642   : > { %v2548_v53 = vpop.f32.mrf.mxu0 }
0x1643   : > { %v2576_v48 = vpack.c.bf16 %v2548_v53, %v2545_v2  ;;  %v3440_v53 = vld [vmem:[%s3688_s13 + $0x48] sm:$0xff] }
0x1644   : > { %v3177_v8 = vpop.f32.mrf.mxu0 }
0x1646   : > { %v2561_v54 = vpop.f32.mrf.mxu0 }
0x1648   : > { %v3178_v14 = vpop.f32.mrf.mxu0 }
0x1649   : > { %v2579_v6 = vpack.c.bf16 %v3178_v14, %v3177_v8  ;;  %v3441_v14 = vld [vmem:[%s3688_s13 + $0x50] sm:$0xff] }
0x164a   : > { %v2564_v59 = vpop.f32.mrf.mxu0 }
0x164b   : > { %v2578_v24 = vpack.c.bf16 %v2564_v59, %v2561_v54 }
0x16fb   : > { %v2454_v36 = vpop.f32.mrf.mxu1 }
0x16fc   : > { %v2455_v11 = vadd.f32 1e-06, %v2454_v36 }
0x16fd   : > { %v2456_v43 = vpop.f32.mrf.mxu1 }
0x16fe   : > { %v2457_v58 = vadd.f32 1e-06, %v2456_v43 }
0x16ff   : > { %v2458_v63 = vpop.f32.mrf.mxu1 }
0x1700   : > { %v2459_v10 = vadd.f32 1e-06, %v2458_v63  ;;  %3423 = vrcp.f32 %v2457_v58 }
0x1701   : > { %v2460_v1 = vpop.f32.mrf.mxu1 }
0x1702   : > { %3425 = vrcp.f32 %v2459_v10  ;;  %v2461_v3 = vadd.f32 1e-06, %v2460_v1 }
0x1703   : > { %3427 = vrcp.f32 %v2455_v11  ;;  %v3436_v11 = vld [vmem:[%s3688_s13 + $0x28] sm:$0xff] }
0x1704   : > { %3429 = vrcp.f32 %v2461_v3 }
0x170d   : > { %v3424_v42 = vpop.eup %3423 }
0x170e   : > { %v2468_v13 = vmul.f32 %v3424_v42, %v2414_v15  ;;  %v3438_v15 = vld [vmem:[%s3688_s13 + $0x38] sm:$0xff] }
0x170f   : > { %v3426_v44 = vpop.eup %3425 }
0x1710   : > { %v3428_v17 = vpop.eup %3427  ;;  %v2469_v55 = vmul.f32 %v3426_v44, %v2415_v23  ;;  %v2618_v44 = vpop.permute.xlu1 %2617 }
0x1711   : > { %v3430_v12 = vpop.eup %3429  ;;  %v2467_v7 = vmul.f32 %v3428_v17, %v2413_v31 }
0x1712   : > { %v2470_v41 = vmul.f32 %v3430_v12, %v2416_v5 }
0x1713   : > { %v2580_v20 = vpack.c.bf16 %v2469_v55, %v2467_v7  ;;  %v3439_v55 = vld [vmem:[%s3688_s13 + $0x40] sm:$0xff] }
0x1714   : > { %v2581_v40 = vpack.c.bf16 %v2470_v41, %v2468_v13  ;;  %v2623_v8 = vpop.permute.xlu1 %2622 }
0x1716   : > { %2656 = vmatprep.subr.bf16.mxu1 %v2581_v40 }
0x1717   : > { %2657 = vmatpush1.bf16.msra.mxu1 %v2580_v20 }
0x171a   : > { %2916 = vmatmul.mubr.msk.bf16.vlgmr.msra.gmra.mxu1 %vm724_vm2, %v2576_v48 }
0x171b   : > { %2684 = vmatprep.mubr.bf16.mxu1 %v3544_v0 }
0x1722   : > { %2917 = vmatmul.mubr.msk.bf16.gmra.mxu1 %vm724_vm2, %v2577_v61 }
0x1723   : > { %2694 = vmatprep.mubr.bf16.mxu1 %v3544_v0 }
0x172a   : > { %2918 = vmatmul.mubr.msk.bf16.gmra.mxu1 %vm724_vm2, %v2578_v24 }
0x172b   : > { %2704 = vmatprep.mubr.bf16.mxu1 %v3544_v0 }
0x1732   : > { %2919 = vmatmul.mubr.msk.bf16.gmra.mxu1 %vm724_vm2, %v2579_v6 }
0x17da   : > { %v2676_v45 = vpop.f32.mrf.mxu1 }
0x17db   : > { %v2677_v47 = vadd.f32 %v2676_v45, %v2593_v49 }
0x17dc   : > { %v2678_v19 = vpop.f32.mrf.mxu1 }
0x17dd   : > { %v2715_v56 = vadd.f32 %v3431_v50, %v2677_v47  ;;  %v2679_v51 = vadd.f32 %v2678_v19, %v2593_v49  ;;  %v3443_v50 = vld [vmem:[%s3688_s13 + $0x60] sm:$0xff] }
0x17de   : > { %v2680_v57 = vpop.f32.mrf.mxu1 }
0x17df   : > { %v2731_v27 = vmax.f32 %v2715_v56, 0.0  ;;  %v2716_v0 = vadd.f32 %v3432_v35, %v2679_v51  ;;  %v2681_v16 = vadd.f32 %v2680_v57, %v2598_v18  ;;  %v3444_v35 = vld [vmem:[%s3688_s13 + $0x68] sm:$0xff] }
0x17e0   : > { %v2682_v37 = vpop.f32.mrf.mxu1 }
0x17e1   : > { %2747 = vst [vmem:[%s4366_s11] sm:$0xff] %v2731_v27  ;;  %v2732_v26 = vmax.f32 %v2716_v0, 0.0  ;;  %v2717_v22 = vadd.f32 %v3433_v38, %v2681_v16  ;;  %v2683_v39 = vadd.f32 %v2682_v37, %v2598_v18  ;;  %v3442_v18 = vld [vmem:[%s3688_s13 + $0x58] sm:$0xff]  ;;  %v3445_v38 = vld [vmem:[%s3688_s13 + $0x70] sm:$0xff] }
0x17e2   : > { %v2686_v28 = vpop.f32.mrf.mxu1 }
0x17e3   : > { %2748 = vst [vmem:[%s4366_s11 + $0x8] sm:$0xff] %v2732_v26  ;;  %v2733_v32 = vmax.f32 %v2717_v22, 0.0  ;;  %v2718_v21 = vadd.f32 %v3434_v34, %v2683_v39  ;;  %v2687_v46 = vadd.f32 %v2686_v28, %v2603_v29 }
0x17e4   : > { %v2688_v62 = vpop.f32.mrf.mxu1 }
0x17e5   : > { %2749 = vst [vmem:[%s4366_s11 + $0x10] sm:$0xff] %v2733_v32  ;;  %v2734_v9 = vmax.f32 %v2718_v21, 0.0  ;;  %v2719_v33 = vadd.f32 %v3435_v25, %v2687_v46  ;;  %v2689_v36 = vadd.f32 %v2688_v62, %v2603_v29  ;;  %v3446_v32 = vld [vmem:[%s3688_s13 + $0x78] sm:$0xff]  ;;  %s3547_s13 = smov [#allocation5]  }
0x17e6   : > { %v2690_v43 = vpop.f32.mrf.mxu1  ;;  %s3479_s7 = sshll.u32 %s3547_s13, 4  ;;  %s3480_s7 = int_to_ptr.vmem [resolvable:$false] %s3479_s7 }
0x17e7   : > { %2750 = vst [vmem:[%s4366_s11 + $0x18] sm:$0xff] %v2734_v9  ;;  %v2735_v58 = vmax.f32 %v2719_v33, 0.0  ;;  %v2720_v63 = vadd.f32 %v3436_v11, %v2689_v36  ;;  %v2691_v10 = vadd.f32 %v2690_v43, %v2608_v52  ;;  %s3481_s8 = scalar_lea.vmem %s3480_s7, 4096  ;;  %p3482_p7 = scmp.lt.s32.totalorder %s4403_s14, %s3480_s7 }
0x17e8   : > { %v2692_v1 = vpop.f32.mrf.mxu1  ;;  %p3483_p8 = scmp.lt.s32.totalorder %s3481_s8, %s3475_s25 }
0x17e9   : > { %2751 = vst [vmem:[%s4366_s11 + $0x20] sm:$0xff] %v2735_v58  ;;  %v2736_v3 = vmax.f32 %v2720_v63, 0.0  ;;  %v2721_v2 = vadd.f32 %v3437_v4, %v2691_v10  ;;  %v2693_v42 = vadd.f32 %v2692_v1, %v2608_v52  ;;  %v2628_v52 = vpop.permute.xlu1 %2627 }
0x17ea   : > { %v2696_v23 = vpop.f32.mrf.mxu1  ;;  %p3484_p10 = por %p3483_p8, %p3482_p7 }
0x17eb   : > { %2752 = vst [vmem:[%s4366_s11 + $0x28] sm:$0xff] %v2736_v3  ;;  %v2737_v17 = vmax.f32 %v2721_v2, 0.0  ;;  %v2722_v5 = vadd.f32 %v3438_v15, %v2693_v42  ;;  %v2697_v12 = vadd.f32 %v2696_v23, %v2613_v60 }
0x17ec   : > { %v2698_v31 = vpop.f32.mrf.mxu1  ;;  %p3485_p0 = pnand %p3484_p10, %p3478_p5 }
0x17ed   : > { %2753 = vst [vmem:[%s4366_s11 + $0x30] sm:$0xff] %v2737_v17  ;;  %v2738_v30 = vmax.f32 %v2722_v5, 0.0  ;;  %v2723_v13 = vadd.f32 %v3439_v55, %v2697_v12  ;;  %v2699_v41 = vadd.f32 %v2698_v31, %v2613_v60 }
0x17ee   : > { %v2700_v7 = vpop.f32.mrf.mxu1 }
0x17ef   : > { %2754 = vst [vmem:[%s4366_s11 + $0x38] sm:$0xff] %v2738_v30  ;;  %v2739_v40 = vmax.f32 %v2723_v13, 0.0  ;;  %v2724_v20 = vadd.f32 %v3440_v53, %v2699_v41  ;;  %v2701_v48 = vadd.f32 %v2700_v7, %v2618_v44 }
0x17f0   : > { %v2702_v54 = vpop.f32.mrf.mxu1 }
0x17f1   : > { %2755 = vst [vmem:[%s4366_s11 + $0x40] sm:$0xff] %v2739_v40  ;;  %v2740_v61 = vmax.f32 %v2724_v20, 0.0  ;;  %v2725_v59 = vadd.f32 %v3441_v14, %v2701_v48  ;;  %v2703_v24 = vadd.f32 %v2702_v54, %v2618_v44 }
0x17f2   : > { %v2706_v6 = vpop.f32.mrf.mxu1 }
0x17f3   : > { %2756 = vst [vmem:[%s4366_s11 + $0x48] sm:$0xff] %v2740_v61  ;;  %v2741_v49 = vmax.f32 %v2725_v59, 0.0  ;;  %v2726_v29 = vadd.f32 %v3442_v18, %v2703_v24  ;;  %v2707_v45 = vadd.f32 %v2706_v6, %v2623_v8 }
0x17f4   : > { %v2708_v47 = vpop.f32.mrf.mxu1 }
0x17f5   : > { %2757 = vst [vmem:[%s4366_s11 + $0x50] sm:$0xff] %v2741_v49  ;;  %v2742_v19 = vmax.f32 %v2726_v29, 0.0  ;;  %v2727_v56 = vadd.f32 %v3443_v50, %v2707_v45  ;;  %v2709_v51 = vadd.f32 %v2708_v47, %v2623_v8 }
0x17f6   : > { %v2710_v57 = vpop.f32.mrf.mxu1 }
0x17f7   : > { %2758 = vst [vmem:[%s4366_s11 + $0x58] sm:$0xff] %v2742_v19  ;;  %v2743_v27 = vmax.f32 %v2727_v56, 0.0  ;;  %v2728_v0 = vadd.f32 %v3444_v35, %v2709_v51  ;;  %v2711_v16 = vadd.f32 %v2710_v57, %v2628_v52 }
0x17f8   : > { %v2712_v37 = vpop.f32.mrf.mxu1 }
0x17f9   : > { %2759 = vst [vmem:[%s4366_s11 + $0x60] sm:$0xff] %v2743_v27  ;;  %v2744_v26 = vmax.f32 %v2728_v0, 0.0  ;;  %v2729_v22 = vadd.f32 %v3445_v38, %v2711_v16  ;;  %v2713_v39 = vadd.f32 %v2712_v37, %v2628_v52 }
0x17fb   : > { %2760 = vst [vmem:[%s4366_s11 + $0x68] sm:$0xff] %v2744_v26  ;;  %v2745_v28 = vmax.f32 %v2729_v22, 0.0  ;;  %v2730_v34 = vadd.f32 %v3446_v32, %v2713_v39 }
0x17fd   : > { %2761 = vst [vmem:[%s4366_s11 + $0x70] sm:$0xff] %v2745_v28  ;;  %v2746_v21 = vmax.f32 %v2730_v34, 0.0 }
0x17ff   : > { %2762 = vst [vmem:[%s4366_s11 + $0x78] sm:$0xff] %v2746_v21 }
0x1800   : > { %3488 = shalt.err (!%p3485_p0)
}
0x1801   : > { %s3489_s16 = scalar_lea.hbm %s4401_s26, 2048  ;;  %s3493_s20 = scalar_lea.hbm %s4454_s6, 4096 }
0x1802   : > { %p3490_p2 = scmp.ne.s32.totalorder %s4401_s26, %s3489_s16  ;;  %p3494_p3 = scmp.lt.s32.totalorder %s4401_s26, %s4454_s6 }
0x1803   : > { %p3495_p6 = scmp.lt.s32.totalorder %s3493_s20, %s3489_s16 }
0x1804   : > { %p3491_p9 = pnand %p3490_p2, %p4463_p13 }
0x1805   : > { %p3496_p11 = por %p3495_p6, %p3494_p3 }
0x1806   : > { %p3492_p1 = pneg %p3491_p9 }
0x1808   : > { %p3497_p12 = pnand %p3496_p11, %p3492_p1 }
0x180a   : > { %3500 = shalt.err (!%p3497_p12)
}
0x180b   : > { %s3548_s15 = smov 256   ;;  %s3549_s17 = smov 16  }
0x180c   : > { %3182 = dma.vmem_to_hbm [thread:$0]  (%p4463_p13), %s4403_s14, 2048, %s4401_s26, %s2764_s28, %s3548_s15, %s3548_s15, %s3549_s17  }
0x180d PF: > { %s2792_s25 = sand.u32 1, %s3527_s21   ;;  %p4464_p4 = scmp.ne.s32.totalorder %s4460_s10, 0 }
0x180e   : > { %p4465_p5 = scmp.ge.s32.totalorder %s3539_s24, 2  ;;  %s2793_s13 = scalar_lea.sflag [#allocation4], %s2792_s25 }
0x1810   : > { %p3189_p7 = pnand %p4465_p5, %p4464_p4 }
0x1812   : > { %p3190_p8 = pneg %p3189_p7 }
0x1814   : > { %3522 = dma.done.wait (%p3190_p8), %s2793_s13, 2048  }
0x1815   : > { %3524 = vsyncadd (%p3190_p8), %s2793_s13, 4294965248  ;;  %p19_p10 = scmp.ge.s32.totalorder %s3610_s27, 4   ;;  %s4466_s21 = smov %s3531_s22 }
0x1816   : > { %s4467_s22 = smov %s3535_s23  ;;  %s4468_s23 = smov %s3622_s30 }
0x1817   : > { %s4469_s24 = smov %s3610_s27  ;;  %21 = sbr.rel (!%p19_p10) target bundleno = 5 (0x5), region = 92 }
0x181c   :  { %2798 = vsyncpa [#allocation3], 1 }
0x181d   :  { %2800 = vsyncpa [#allocation3 + $0x1], 1 }
0x181e   :  { %2801 = vsyncpa [#allocation4], 1 }
0x181f   :  { %2803 = vsyncpa [#allocation4 + $0x1], 1 }

// kernel: tpu_custom_call.1
= control target key start
LH: loop header
LB: loop body
LE: loop exit
PB: predicated region body
PF: predicated region fallthrough
CT: control target
= control target key end

     0   :  { %11 = vsyncpa [#allocation3], 0  ;;  %s4448_s0 = inlined_call_operand.hbm [shape: f32[2,64,256], index: 0, kind: input, shape index: {}]   ;;  %s4449_s1 = inlined_call_operand.vmem [shape: bf16[64,64], index: 1, kind: input, shape index: {}]   ;;  %s4450_s2 = inlined_call_operand.vmem [shape: f32[64,1], index: 2, kind: input, shape index: {}]   ;;  %s4451_s3 = inlined_call_operand.vmem [shape: bf16[64,64], index: 3, kind: input, shape index: {}]   ;;  %s4452_s4 = inlined_call_operand.vmem [shape: f32[64,1], index: 4, kind: input, shape index: {}]   ;;  %s4453_s5 = inlined_call_operand.vmem [shape: f32[2,16,64], index: 5, kind: input, shape index: {}]   ;;  %s4454_s6 = inlined_call_operand.hbm [shape: f32[2,64,256], index: 6, kind: output, shape index: {}]  }
   0x1   :  { %13 = vsyncpa [#allocation3 + $0x1], 0 }
   0x2   :  { %14 = vsyncpa [#allocation4], 0 }
   0x3   :  { %16 = vsyncpa [#allocation4 + $0x1], 0  ;;  %s3585_s21 = smov 0   ;;  %s3587_s22 = smov 0  }
   0x4   :  { %s3589_s23 = smov 0   ;;  %s3591_s24 = smov 0  }
   0x5 LB: > { %s3606_s25 = sadd.s32 4294967295, %s3539_s24   ;;  %s2862_s26 = sadd.s32 4294967294, %s3539_s24   ;;  %s3539_s24 = sphi %s3591_s24, %s4469_s24   ;;  %s3535_s23 = sphi %s3589_s23, %s4468_s23   ;;  %s3531_s22 = sphi %s3587_s22, %s4467_s22   ;;  %s3527_s21 = sphi %s3585_s21, %s4466_s21  }
   0x6   : > { %s3610_s27 = sadd.s32 1, %s3539_s24   ;;  %s29_s28 = sadd.s32 1, %s3535_s23 }
   0x7   : > { %s26_s29 = ssub.s32 %s3539_s24, %s3610_s27  ;;  %p36_p0 = scmp.ne.s32.totalorder %s3535_s23, %s3531_s22 }
   0x8   : > { %p27_p1 = scmp.eq.s32.totalorder %s26_s29, 0  ;;  %p37_p2 = scmp.eq.s32.totalorder %s3539_s24, 0 }
   0x9   : > { %p42_p3 = scmp.ne.s32.totalorder %s3531_s22, %s3527_s21  ;;  %p43_p4 = scmp.eq.s32.totalorder %s3606_s25, 0 }
   0xa   : > { %s3622_s30 = scalar_select %p27_p1, %s3535_s23, %s29_s28  }
   0xb   : > { %p3624_p5 = por %p37_p2, %p36_p0  ;;  %p3628_p6 = por %p43_p4, %p42_p3 }
   0xc   : > { %p176_p7 = scmp.eq.s32.totalorder %s3606_s25, 1  ;;  %p182_p8 = scmp.eq.s32.totalorder %s2862_s26, 1 }
   0xd   : > { %s4458_s8 = scalar_select %p3628_p6, 1, 0 }
   0xe   : > { %p3192_p10 = scmp.lt.s32.totalorder %s3539_s24, 2  ;;  %p3635_p11 = por %p176_p7, %p36_p0 }
   0xf   : > { %p3639_p12 = por %p182_p8, %p42_p3  ;;  %s214_s11 = sand.u32 1, %s3535_s23  }
  0x10   : > { %s4459_s9 = scalar_select %p3635_p11, 1, 0 }
  0x11   : > { %s4460_s10 = scalar_select %p3639_p12, 1, 0 }
  0x12   : > { %s2925_s12 = sshll.u32 %s3539_s24, 11  ;;  %s2865_s13 = sshll.u32 %s214_s11, 7 }
  0x13   : > { %s3648_s16 = scalar_lea.hbm %s4448_s0, %s2925_s12  ;;  %s218_s17 = scalar_lea.vmem [#allocation2], %s2865_s13 }
  0x14   : > { %s225_s18 = sshll.u32 %s218_s17, 4  ;;  %p3652_p13 = pnand %p3192_p10, %p3624_p5  ;;  %s3656_s18 = int_to_ptr.vmem [resolvable:$true] %s225_s18 }
  0x15   : > { %s3658_s20 = scalar_lea.sflag [#allocation3], %s214_s11  ;;  %s3447_s26 = scalar_lea.hbm %s3648_s16, 2048 }
  0x16   : > { %p3448_p0 = scmp.ne.s32.totalorder %s3648_s16, %s3447_s26  ;;  %p3449_p1 = pneg %p3652_p13 }
  0x17   : > { %s3452_s12 = scalar_lea.hbm %s4448_s0, 4096  ;;  %p3453_p4 = scmp.lt.s32.totalorder %s3648_s16, %s4448_s0 }
  0x18   : > { %p3450_p2 = pnand %p3449_p1, %p3448_p0  ;;  %p3454_p5 = scmp.lt.s32.totalorder %s3452_s12, %s3447_s26 }
  0x1a   : > { %p3451_p3 = pneg %p3450_p2  ;;  %p3455_p7 = por %p3454_p5, %p3453_p4 }
  0x1c   : > { %p3456_p8 = pnand %p3455_p7, %p3451_p3 }
  0x1e   : > { %3459 = shalt.err (!%p3456_p8)
}
  0x1f   : > { %s3460_s11 = scalar_lea.vmem %s3656_s18, 2048  ;;  %s3541_s14 = smov [#allocation2]  }
  0x20   : > { %p3461_p10 = scmp.ne.s32.totalorder %s3656_s18, %s3460_s11  ;;  %s3465_s15 = sshll.u32 %s3541_s14, 4  ;;  %s3466_s15 = int_to_ptr.vmem [resolvable:$false] %s3465_s15 }
  0x21   : > { %s3467_s17 = scalar_lea.vmem %s3466_s15, 4096  ;;  %p3468_p2 = scmp.lt.s32.totalorder %s3656_s18, %s3466_s15 }
  0x22   : > { %p3463_p9 = pnand %p3461_p10, %p3449_p1  ;;  %p3469_p12 = scmp.lt.s32.totalorder %s3467_s17, %s3460_s11 }
  0x24   : > { %p3464_p0 = pneg %p3463_p9  ;;  %p3470_p11 = por %p3469_p12, %p3468_p2 }
  0x26   : > { %p3471_p6 = pnand %p3470_p11, %p3464_p0 }
  0x28   : > { %3474 = shalt.err (!%p3471_p6)
}
  0x29   : > { %s3542_s26 = smov 256   ;;  %s3543_s28 = smov 16  }
  0x2a   : > { %3187 = dma.hbm_to_vmem [thread:$0]  (!%p3652_p13), %s3648_s16, 2048, %s3656_s18, %s3658_s20, %s3542_s26, %s3542_s26, %s3543_s28  }
  0x2b   : > { %p2868_p9 = scmp.ge.s32.totalorder %s3539_s24, 1  ;;  %p241_p1 = scmp.lt.s32.totalorder %s3539_s24, 3 }
  0x2d   : > { %p242_p3 = pnand %p2868_p9, %p241_p1 }
  0x2e   : > { %s3682_s29 = sand.u32 (!%p242_p3), 1, %s3531_s22   ;;  %p4462_p6 = scmp.ne.s32.totalorder (!%p242_p3), %s4458_s8, 0 }
  0x2f   : > { %245 = sbr.rel (%p242_p3) target bundleno = 6157 (0x180d), region = 44  ;;  %s2869_s12 = sshll.u32 (!%p242_p3), %s3682_s29, 7 }
  0x30   : > { %s248_s7 = scalar_lea.sflag (!%p242_p3), [#allocation3], %s3682_s29  ;;  %s3688_s13 = scalar_lea.vmem (!%p242_p3), [#allocation2], %s2869_s12 }
  0x34   : > { %3518 = dma.done.wait (%p4462_p6), %s248_s7, 2048  }
  0x35   : > { %3520 = vsyncadd (%p4462_p6), %s248_s7, 4294965248  ;;  %v3544_v0 = vmov 0   ;;  %v312_v1 = vld [vmem:[%s3688_s13 + $0x68] sm:$0xff]  ;;  %v314_v2 = vld [vmem:[%s3688_s13 + $0x78] sm:$0xff]  ;;  %vm391_vm0 = vcmask 523264   ;;  %p285_p11 = scmp.lt.s32.totalorder %s3606_s25, 1 }
  0x36   : > { %436 = vmatprep.mubr.bf16.mxu0 %v3544_v0  ;;  %3234 = vset.pattern.permute.xlu1 %v3544_v0  ;;  %v311_v3 = vld [vmem:[%s3688_s13 + $0x60] sm:$0xff]  ;;  %v322_v4 = vpack.c.bf16 %v314_v2, %v312_v1  ;;  %v313_v5 = vld [vmem:[%s3688_s13 + $0x70] sm:$0xff]  ;;  %v308_v6 = vld [vmem:[%s3688_s13 + $0x48] sm:$0xff]  ;;  %vm3546_vm1 = vmmov 0   ;;  %vm724_vm2 = vcmask 130048   ;;  %s2764_s28 = scalar_lea.sflag [#allocation4], %s3682_s29 }
  0x37   : > { %3233 = vset.pattern.permute.xlu0 %v3544_v0  ;;  %619 = vmatprep.mubr.bf16.mxu1 %v3544_v0  ;;  %v310_v7 = vld [vmem:[%s3688_s13 + $0x58] sm:$0xff]  ;;  %v321_v8 = vpack.c.bf16 %v313_v5, %v311_v3  ;;  %v307_v10 = vld [vmem:[%s3688_s13 + $0x40] sm:$0xff]  ;;  %v309_v11 = vld [vmem:[%s3688_s13 + $0x50] sm:$0xff]  ;;  %s286_s20 = scalar_select %p285_p11, %s3606_s25, 1 }
  0x38   : > { %v320_v9 = vpack.c.bf16 %v310_v7, %v308_v6  ;;  %v304_v12 = vld [vmem:[%s3688_s13 + $0x28] sm:$0xff]  ;;  %412 = vmatprep.subr.bf16.mxu0 %v322_v4  ;;  %v306_v13 = vld [vmem:[%s3688_s13 + $0x38] sm:$0xff]  ;;  %v319_v14 = vpack.c.bf16 %v309_v11, %v307_v10  ;;  %v303_v15 = vld [vmem:[%s3688_s13 + $0x20] sm:$0xff]  ;;  %p4463_p13 = scmp.ne.s32.totalorder %s4459_s9, 0 }
  0x39   : > { %413 = vmatpush1.bf16.msra.mxu0 %v321_v8  ;;  %v305_v16 = vld [vmem:[%s3688_s13 + $0x30] sm:$0xff]  ;;  %v318_v17 = vpack.c.bf16 %v306_v13, %v304_v12  ;;  %v300_v18 = vld [vmem:[%s3688_s13 + $0x8] sm:$0xff]  ;;  %v302_v19 = vld [vmem:[%s3688_s13 + $0x18] sm:$0xff]  ;;  %s2926_s11 = sshll.u32 %s286_s20, 4 }
  0x3a   : > { %414 = vmatprep.subr.bf16.mxu0 %v320_v9  ;;  %v317_v20 = vpack.c.bf16 %v305_v16, %v303_v15  ;;  %v299_v21 = vld [vmem:[%s3688_s13] sm:$0xff]  ;;  %v316_v22 = vpack.c.bf16 %v302_v19, %v300_v18  ;;  %v301_v23 = vld [vmem:[%s3688_s13 + $0x10] sm:$0xff]  ;;  %v328_v26 = vld [vmem:[%s4450_s2 + $0x28] sm:$0xff]  ;;  %s289_s17 = scalar_lea.vmem %s4453_s5, %s2926_s11  ;;  %s4366_s11 = scalar_lea.vmem [#allocation5], %s2869_s12 }
  0x3b   : > { %v327_v24 = vld [vmem:[%s4450_s2 + $0x20] sm:$0xff]  ;;  %v329_v25 = vld [vmem:[%s4450_s2 + $0x30] sm:$0xff]  ;;  %v330_v27 = vld [vmem:[%s4450_s2 + $0x38] sm:$0xff]  ;;  %v315_v28 = vpack.c.bf16 %v301_v23, %v299_v21  ;;  %s2927_s12 = sshll.u32 %s3606_s25, 11  ;;  %s2777_s14 = sshll.u32 %s4366_s11, 4  ;;  %s4403_s14 = int_to_ptr.vmem [resolvable:$true] %s2777_s14 }
  0x3c   : > { %353 = vperm.xlu1 %3234, %v327_v24   ;;  %363 = vperm.xlu0 %3233, %v329_v25   ;;  %v3331_v29 = vld [vmem:[%s4449_s1] sm:$0xff]   ;;  %v326_v30 = vld [vmem:[%s4450_s2 + $0x18] sm:$0xff]  ;;  %v325_v31 = vld [vmem:[%s4450_s2 + $0x10] sm:$0xff]  ;;  %s4401_s26 = scalar_lea.hbm %s4454_s6, %s2927_s12  ;;  %s3475_s25 = scalar_lea.vmem %s4403_s14, 2048 }
  0x3d   : > { %415 = vmatpush1.bf16.msra.mxu0 %v319_v14  ;;  %v324_v32 = vld [vmem:[%s4450_s2 + $0x8] sm:$0xff]  ;;  %v323_v33 = vld [vmem:[%s4450_s2] sm:$0xff]  ;;  %v3333_v37 = vld [vmem:[%s4449_s1 + $0x10] sm:$0xff]   ;;  %p3476_p12 = scmp.ne.s32.totalorder %s4403_s14, %s3475_s25 }
  0x3e   : > { %416 = vmatprep.subr.bf16.mxu0 %v318_v17  ;;  %v3332_v34 = vld [vmem:[%s4449_s1 + $0x8] sm:$0xff]   ;;  %v2582_v35 = vld [vmem:[%s4452_s4] sm:$0xff]  ;;  %v2584_v38 = vld [vmem:[%s4452_s4 + $0x10] sm:$0xff] }
  0x3f   : > { %v2583_v36 = vld [vmem:[%s4452_s4 + $0x8] sm:$0xff]  ;;  %v2585_v39 = vld [vmem:[%s4452_s4 + $0x18] sm:$0xff]  ;;  %v2586_v41 = vld [vmem:[%s4452_s4 + $0x20] sm:$0xff]  ;;  %p3477_p4 = pnand %p3476_p12, %p4463_p13 }
  0x40   : > { %358 = vperm.xlu1 %3234, %v328_v26   ;;  %368 = vperm.xlu0 %3233, %v330_v27   ;;  %v3334_v40 = vld [vmem:[%s4449_s1 + $0x18] sm:$0xff]   ;;  %v2587_v42 = vld [vmem:[%s4452_s4 + $0x28] sm:$0xff]  ;;  %v2588_v43 = vld [vmem:[%s4452_s4 + $0x30] sm:$0xff] }
  0x41   : > { %417 = vmatpush1.bf16.msra.mxu0 %v317_v20  ;;  %v2589_v44 = vld [vmem:[%s4452_s4 + $0x38] sm:$0xff]  ;;  %p3478_p5 = pneg %p3477_p4 }
  0x42   : > { %418 = vmatprep.subr.bf16.mxu0 %v316_v22 }
  0x44   : > { %348 = vperm.xlu1 %3234, %v326_v30   ;;  %343 = vperm.xlu0 %3233, %v325_v31  }
  0x45   : > { %419 = vmatpush1.bf16.msra.mxu0 %v315_v28 }
  0x48   : > { %2877 = vmatmul.mubr.msk.bf16.vlgmr.msra.gmra.mxu0 %vm391_vm0, %v3331_v29  ;;  %338 = vperm.xlu1 %3234, %v324_v32  }
  0x49   : > { %446 = vmatprep.mubr.bf16.mxu0 %v3544_v0  ;;  %333 = vperm.xlu0 %3233, %v323_v33  }
  0x4c   : > { %2592 = vperm.xlu1 %3234, %v2582_v35  }
  0x50   : > { %2878 = vmatmul.mubr.msk.bf16.gmra.mxu0 %vm391_vm0, %v3332_v34  ;;  %2597 = vperm.xlu1 %3234, %v2583_v36  }
  0x51   : > { %456 = vmatprep.mubr.bf16.mxu0 %v3544_v0 }
  0x54   : > { %2602 = vperm.xlu1 %3234, %v2584_v38  }
  0x58   : > { %2879 = vmatmul.mubr.msk.bf16.gmra.mxu0 %vm391_vm0, %v3333_v37  ;;  %2607 = vperm.xlu1 %3234, %v2585_v39  }
  0x59   : > { %466 = vmatprep.mubr.bf16.mxu0 %v3544_v0 }
  0x5c   : > { %2612 = vperm.xlu1 %3234, %v2586_v41  }
  0x60   : > { %2880 = vmatmul.mubr.msk.bf16.gmra.mxu0 %vm391_vm0, %v3334_v40  ;;  %2617 = vperm.xlu1 %3234, %v2587_v42  }
  0x64   : > { %2622 = vperm.xlu1 %3234, %v2588_v43  }
  0x68   : > { %2627 = vperm.xlu1 %3234, %v2589_v44  }
  0xb7   : > { %v364_v45 = vpop.permute.xlu0 %363  ;;  %v354_v46 = vpop.permute.xlu1 %353 }
  0xbb   : > { %v3781_v47 = vpop.permute.xlu0 %368  ;;  %v359_v48 = vpop.permute.xlu1 %358 }
  0xbf   : > { %v344_v49 = vpop.permute.xlu0 %343  ;;  %v349_v50 = vpop.permute.xlu1 %348 }
  0xc3   : > { %v339_v56 = vpop.permute.xlu1 %338 }
  0xc4   : > { %v334_v51 = vpop.permute.xlu0 %333 }
 0x108   : > { %v438_v52 = vpop.f32.mrf.mxu0 }
 0x109   : > { %v3783_v53 = vadd.f32 %v438_v52, %v334_v51 }
 0x10a   : > { %v440_v54 = vpop.f32.mrf.mxu0 }
 0x10b   : > { %v3785_v55 = vadd.f32 %v440_v54, %v334_v51  ;;  %v477_v58 = vmax.f32 %v3783_v53, 0.0  ;;  %v3837_v54 = vld [vmem:[%s289_s17] sm:$0xff] }
 0x10c   : > { %v442_v57 = vpop.f32.mrf.mxu0 }
 0x10d   : > { %v478_v59 = vmax.f32 %v3785_v55, 0.0  ;;  %v3789_v60 = vadd.f32 %v442_v57, %v339_v56 }
 0x10e   : > { %v444_v61 = vpop.f32.mrf.mxu0 }
 0x10f   : > { %v3235_v62 = vpack.i.bf16 %v477_v58, %v478_v59  ;;  %v3795_v63 = vadd.f32 %v444_v61, %v339_v56  ;;  %v479_v2 = vmax.f32 %v3789_v60, 0.0  ;;  %v3839_v56 = vld [vmem:[%s289_s17 + $0x8] sm:$0xff] }
 0x110   : > { %v448_v1 = vpop.f32.mrf.mxu0  ;;  %v3850_v55 = vpack.c.bf16 %v3839_v56, %v3837_v54 }
 0x111   : > { %v480_v3 = vmax.f32 %v3795_v63, 0.0  ;;  %v3799_v4 = vadd.f32 %v448_v1, %v344_v49  ;;  %3236 = vxpose.xlu0.b32.start [1/8] (short) %v3235_v62, 128  ;;  %v3846_v57 = vpack.c.bf16 %v479_v2, %v477_v58 }
 0x112   : > { %v450_v5 = vpop.f32.mrf.mxu0  ;;  %v585_v61 = vsel %vm391_vm0, %v3850_v55, 0 }
 0x113   : > { %v3237_v6 = vpack.i.bf16 %v479_v2, %v480_v3  ;;  %v451_v7 = vadd.f32 %v450_v5, %v344_v49  ;;  %v481_v9 = vmax.f32 %v3799_v4, 0.0  ;;  %v3834_v52 = vpack.c.bf16 %v480_v3, %v478_v59 }
 0x114   : > { %v452_v8 = vpop.f32.mrf.mxu0  ;;  %v3545_v59 = vmov 0.0  }
 0x115   : > { %v482_v10 = vmax.f32 %v451_v7, 0.0  ;;  %v453_v11 = vadd.f32 %v452_v8, %v349_v50  ;;  %3238 = vxpose.xlu0.b32.cont [2/8] (short) %v3237_v6, 128 }
 0x116   : > { %v454_v12 = vpop.f32.mrf.mxu0 }
 0x117   : > { %v3239_v13 = vpack.i.bf16 %v481_v9, %v482_v10  ;;  %v455_v14 = vadd.f32 %v454_v12, %v349_v50  ;;  %v483_v16 = vmax.f32 %v453_v11, 0.0 }
 0x118   : > { %v458_v15 = vpop.f32.mrf.mxu0 }
 0x119   : > { %v484_v17 = vmax.f32 %v455_v14, 0.0  ;;  %v459_v18 = vadd.f32 %v458_v15, %v354_v46  ;;  %3240 = vxpose.xlu0.b32.cont [3/8] (short) %v3239_v13, 128  ;;  %v3828_v51 = vpack.c.bf16 %v483_v16, %v481_v9 }
 0x11a   : > { %v460_v19 = vpop.f32.mrf.mxu0 }
 0x11b   : > { %v3241_v20 = vpack.i.bf16 %v483_v16, %v484_v17  ;;  %v461_v21 = vadd.f32 %v460_v19, %v354_v46  ;;  %v485_v23 = vmax.f32 %v459_v18, 0.0  ;;  %v3821_v50 = vpack.c.bf16 %v484_v17, %v482_v10 }
 0x11c   : > { %v462_v22 = vpop.f32.mrf.mxu0 }
 0x11d   : > { %v486_v24 = vmax.f32 %v461_v21, 0.0  ;;  %v463_v25 = vadd.f32 %v462_v22, %v359_v48  ;;  %3242 = vxpose.xlu0.b32.cont [4/8] (short) %v3241_v20, 128 }
 0x11e   : > { %v464_v26 = vpop.f32.mrf.mxu0 }
 0x11f   : > { %v3243_v27 = vpack.i.bf16 %v485_v23, %v486_v24  ;;  %v465_v28 = vadd.f32 %v464_v26, %v359_v48  ;;  %v487_v30 = vmax.f32 %v463_v25, 0.0 }
 0x120   : > { %v468_v29 = vpop.f32.mrf.mxu0 }
 0x121   : > { %v488_v31 = vmax.f32 %v465_v28, 0.0  ;;  %v469_v32 = vadd.f32 %v468_v29, %v364_v45  ;;  %3244 = vxpose.xlu0.b32.cont [5/8] (short) %v3243_v27, 128 }
 0x122   : > { %v470_v33 = vpop.f32.mrf.mxu0 }
 0x123   : > { %v3245_v34 = vpack.i.bf16 %v487_v30, %v488_v31  ;;  %v471_v35 = vadd.f32 %v470_v33, %v364_v45  ;;  %v489_v37 = vmax.f32 %v469_v32, 0.0  ;;  %v3814_v45 = vpack.c.bf16 %v488_v31, %v486_v24 }
 0x124   : > { %v472_v36 = vpop.f32.mrf.mxu0 }
 0x125   : > { %v490_v38 = vmax.f32 %v471_v35, 0.0  ;;  %v473_v39 = vadd.f32 %v472_v36, %v3781_v47  ;;  %3246 = vxpose.xlu0.b32.cont [6/8] (short) %v3245_v34, 128 }
 0x126   : > { %v474_v40 = vpop.f32.mrf.mxu0 }
 0x127   : > { %v3247_v41 = vpack.i.bf16 %v489_v37, %v490_v38  ;;  %v475_v42 = vadd.f32 %v474_v40, %v3781_v47  ;;  %v491_v43 = vmax.f32 %v473_v39, 0.0  ;;  %v3819_v47 = vpack.c.bf16 %v487_v30, %v485_v23 }
 0x129   : > { %v492_v44 = vmax.f32 %v475_v42, 0.0  ;;  %3248 = vxpose.xlu0.b32.cont [7/8] (short) %v3247_v41, 128  ;;  %v3811_v49 = vpack.c.bf16 %v491_v43, %v489_v37 }
 0x12b   : > { %v3249_v46 = vpack.i.bf16 %v491_v43, %v492_v44  ;;  %v3809_v48 = vpack.c.bf16 %v492_v44, %v490_v38 }
 0x12d   : > { %595 = vmatprep.subr.bf16.mxu1 %v3809_v48  ;;  %3250 = vxpose.xlu0.b32.end [8/8] (short) %v3249_v46, 128 }
 0x12e   : > { %596 = vmatpush1.bf16.msra.mxu1 %v3811_v49 }
 0x12f   : > { %597 = vmatprep.subr.bf16.mxu1 %v3814_v45 }
 0x132   : > { %598 = vmatpush1.bf16.msra.mxu1 %v3819_v47 }
 0x133   : > { %599 = vmatprep.subr.bf16.mxu1 %v3821_v50 }
 0x136   : > { %600 = vmatpush1.bf16.msra.mxu1 %v3828_v51 }
 0x137   : > { %601 = vmatprep.subr.bf16.mxu1 %v3834_v52 }
 0x13a   : > { %602 = vmatpush1.bf16.msra.mxu1 %v3846_v57 }
 0x13b   : > { %3091 = vmatprep.subr.bf16.mxu1 %v3545_v59 }
 0x13d   : > { %2881 = vmatmul.mubr.msk.bf16.vlgmr.msra.gmra.mxu1 %vm391_vm0, %v3850_v55 }
 0x13e   : > { %3092 = vmatpush3.bf16.xpose.msra.mxu1 %v585_v61  ;;  %3093 = vmatprep.mubr.msk.bf16.mxu1 %vm3546_vm1, %v3545_v59 }
 0x145   : > { %3094 = vmatmul.mubr.msk.bf16.vlgmr.msra.gmra.mxu1 %vm391_vm0, %v3850_v55 }
 0x146   : > { %760 = vmatprep.mubr.bf16.mxu1 %v3544_v0 }
 0x18d   : > { %v3251_v53 = vpop.trf.xlu0 }
 0x18e   : > { %v3255_v58 = vunpack.i.h.bf16 %v3251_v53  ;;  %v3252_v60 = vunpack.i.l.bf16 %v3251_v53 }
 0x191   : > { %v3256_v62 = vpop.trf.xlu0 }
 0x192   : > { %v3260_v63 = vunpack.i.h.bf16 %v3256_v62  ;;  %v3257_v1 = vunpack.i.l.bf16 %v3256_v62 }
 0x194   : > { %v3863_v2 = vpack.c.bf16 %v3260_v63, %v3255_v58  ;;  %v3865_v3 = vpack.c.bf16 %v3257_v1, %v3252_v60 }
 0x195   : > { %v3261_v4 = vpop.trf.xlu0 }
 0x196   : > { %v3265_v5 = vunpack.i.h.bf16 %v3261_v4  ;;  %v3262_v6 = vunpack.i.l.bf16 %v3261_v4 }
 0x199   : > { %v3266_v7 = vpop.trf.xlu0 }
 0x19a   : > { %v3270_v8 = vunpack.i.h.bf16 %v3266_v7  ;;  %v3267_v9 = vunpack.i.l.bf16 %v3266_v7 }
 0x19c   : > { %v3867_v10 = vpack.c.bf16 %v3270_v8, %v3265_v5  ;;  %v3869_v11 = vpack.c.bf16 %v3267_v9, %v3262_v6 }
 0x19d   : > { %v3871_v12 = vpop.trf.xlu0 }
 0x1a1   : > { %v3873_v13 = vpop.trf.xlu0 }
 0x1a5   : > { %v3875_v14 = vpop.trf.xlu0 }
 0x1a9   : > { %v3877_v15 = vpop.trf.xlu0 }
 0x1ad   : > { %v3879_v16 = vpop.trf.xlu0 }
 0x1b1   : > { %v3881_v17 = vpop.trf.xlu0 }
 0x1b5   : > { %v3301_v18 = vpop.trf.xlu0 }
 0x1b6   : > { %v3302_v53 = vunpack.i.l.bf16 %v3301_v18  ;;  %v3305_v5 = vunpack.i.h.bf16 %v3301_v18  ;;  %v3295_v18 = vunpack.i.h.bf16 %v3879_v16 }
 0x1b9   : > { %v3306_v19 = vpop.trf.xlu0 }
 0x1ba   : > { %v3307_v58 = vunpack.i.l.bf16 %v3306_v19  ;;  %v3310_v8 = vunpack.i.h.bf16 %v3306_v19 }
 0x1bd   : > { %v3311_v20 = vpop.trf.xlu0 }
 0x1be   : > { %v3312_v32 = vunpack.i.l.bf16 %v3311_v20  ;;  %v3315_v40 = vunpack.i.h.bf16 %v3311_v20  ;;  %v3292_v20 = vunpack.i.l.bf16 %v3879_v16 }
 0x1c1   : > { %v3316_v22 = vpop.trf.xlu0 }
 0x1c2   : > { %v3317_v33 = vunpack.i.l.bf16 %v3316_v22  ;;  %v3320_v44 = vunpack.i.h.bf16 %v3316_v22  ;;  %v3297_v22 = vunpack.i.l.bf16 %v3881_v17 }
 0x1c4   : > { %v3901_v60 = vpack.c.bf16 %v3317_v33, %v3312_v32  ;;  %v3906_v9 = vpack.c.bf16 %v3320_v44, %v3315_v40  ;;  %v3918_v33 = vpack.c.bf16 %v3310_v8, %v3305_v5  ;;  %v3290_v40 = vunpack.i.h.bf16 %v3877_v15 }
 0x1c5   : > { %v3321_v25 = vpop.trf.xlu0  ;;  %v3272_v44 = vunpack.i.l.bf16 %v3871_v12 }
 0x1c6   : > { %v3325_v30 = vunpack.i.h.bf16 %v3321_v25  ;;  %v3322_v34 = vunpack.i.l.bf16 %v3321_v25  ;;  %v3911_v25 = vpack.c.bf16 %v3307_v58, %v3302_v53  ;;  %v3277_v53 = vunpack.i.l.bf16 %v3873_v13 }
 0x1c9   : > { %v3326_v35 = vpop.trf.xlu0 }
 0x1ca   : > { %v3330_v38 = vunpack.i.h.bf16 %v3326_v35  ;;  %v3327_v41 = vunpack.i.l.bf16 %v3326_v35  ;;  %v3287_v35 = vunpack.i.l.bf16 %v3877_v15  ;;  %v3280_v15 = vunpack.i.h.bf16 %v3873_v13 }
 0x1cc   : > { %v3897_v46 = vpack.c.bf16 %v3330_v38, %v3325_v30  ;;  %v3903_v62 = vpack.c.bf16 %v3327_v41, %v3322_v34  ;;  %v3282_v34 = vunpack.i.l.bf16 %v3875_v14 }
 0x1ce   : > { %2930 = vmatprep.subr.bf16.mxu0 %v3903_v62  ;;  %v3935_v58 = vpack.c.bf16 %v3287_v35, %v3282_v34 }
 0x1cf   : > { %2931 = vmatpush3.bf16.msra.mxu0 %v3897_v46 }
 0x1d0   : > { %2932 = vmatprep.subr.bf16.mxu0 %v3901_v60 }
 0x1d3   : > { %2933 = vmatpush3.bf16.msra.mxu0 %v3906_v9 }
 0x1d4   : > { %2934 = vmatprep.subr.bf16.mxu0 %v3911_v25 }
 0x1d7   : > { %2935 = vmatpush3.bf16.msra.mxu0 %v3918_v33 }
 0x1fd   : > { %v3883_v21 = vpop.f32.mrf.mxu1 }
 0x1ff   : > { %v3885_v23 = vpop.f32.mrf.mxu1 }
 0x201   : > { %v3887_v24 = vpop.f32.mrf.mxu1 }
 0x202   : > { %v630_v26 = vmax.f32 %v3883_v21, %v3887_v24 }
 0x203   : > { %v3891_v27 = vpop.f32.mrf.mxu1 }
 0x204   : > { %v631_v28 = vrot.slane %v630_v26, 4  ;;  %v637_v29 = vmax.f32 %v3885_v23, %v3891_v27 }
 0x205   : > { %v3895_v31 = vpop.f32.mrf.mxu1 }
 0x206   : > { %v632_v36 = vmax.f32 %v630_v26, %v631_v28  ;;  %v638_v37 = vrot.slane %v637_v29, 4 }
 0x207   : > { %v3095_v39 = vpop.f32.mrf.mxu1 }
 0x208   : > { %v633_v42 = vrot.slane %v632_v36, 2  ;;  %v639_v43 = vmax.f32 %v637_v29, %v638_v37  ;;  %v3300_v29 = vunpack.i.h.bf16 %v3881_v17  ;;  %v3285_v39 = vunpack.i.h.bf16 %v3875_v14 }
 0x209   : > { %v3899_v61 = vpop.f32.mrf.mxu1  ;;  %v3275_v14 = vunpack.i.h.bf16 %v3871_v12 }
 0x20a   : > { %v634_v63 = vmax.f32 %v632_v36, %v633_v42  ;;  %v640_v1 = vrot.slane %v639_v43, 2  ;;  %v3923_v36 = vpack.c.bf16 %v3297_v22, %v3292_v20 }
 0x20b   : > { %v3096_v4 = vpop.f32.mrf.mxu1 }
 0x20c   : > { %v635_v6 = vrot.slane %v634_v63, 1  ;;  %v641_v7 = vmax.f32 %v639_v43, %v640_v1  ;;  %v3930_v43 = vpack.c.bf16 %v3300_v29, %v3295_v18  ;;  %2936 = vmatprep.subr.bf16.mxu0 %v3923_v36  ;;  %v3943_v1 = vpack.c.bf16 %v3277_v53, %v3272_v44 }
 0x20d   : > { %v3946_v4 = vpack.c.bf16 %v3280_v15, %v3275_v14  ;;  %v717_v14 = vpack.c.bf16 %v3899_v61, %v3895_v31 }
 0x20e   : > { %v636_v26 = vmax.f32 %v634_v63, %v635_v6  ;;  %v642_v28 = vrot.slane %v641_v7, 1  ;;  %v3940_v63 = vpack.c.bf16 %v3290_v40, %v3285_v39  ;;  %2937 = vmatpush3.bf16.msra.mxu0 %v3930_v43 }
 0x20f   : > { %2938 = vmatprep.subr.bf16.mxu0 %v3935_v58 }
 0x210   : > { %v644_v19 = vsub.f32 %v3883_v21, %v636_v26  ;;  %v646_v30 = vsub.f32 %v3887_v24, %v636_v26  ;;  %v643_v32 = vmax.f32 %v641_v7, %v642_v28 }
 0x212   : > { %v648_v16 = vmul.f32 1.442695, %v644_v19  ;;  %v652_v37 = vmul.f32 1.442695, %v646_v30  ;;  %v645_v17 = vsub.f32 %v3885_v23, %v643_v32  ;;  %v647_v38 = vsub.f32 %v3891_v27, %v643_v32  ;;  %2939 = vmatpush3.bf16.msra.mxu0 %v3940_v63 }
 0x213   : > { %2940 = vmatprep.subr.bf16.mxu0 %v3943_v1 }
 0x214   : > { %3339 = vpow2.f32 %v648_v16  ;;  %v650_v41 = vmul.f32 1.442695, %v645_v17  ;;  %v654_v42 = vmul.f32 1.442695, %v647_v38 }
 0x215   : > { %3341 = vpow2.f32 %v652_v37 }
 0x216   : > { %3343 = vpow2.f32 %v650_v41  ;;  %2941 = vmatpush3.bf16.msra.mxu0 %v3946_v4 }
 0x217   : > { %3345 = vpow2.f32 %v654_v42  ;;  %2942 = vmatprep.subr.bf16.mxu0 %v3869_v11 }
 0x21a   : > { %2943 = vmatpush3.bf16.msra.mxu0 %v3867_v10 }
 0x21b   : > { %2944 = vmatprep.subr.bf16.mxu0 %v3865_v3 }
 0x21e   : > { %2945 = vmatpush3.bf16.msra.mxu0 %v3863_v2 }
 0x221   : > { %v3340_v5 = vpop.eup %3339 }
 0x222   : > { %v3342_v12 = vpop.eup %3341 }
 0x223   : > { %v3344_v13 = vpop.eup %3343  ;;  %v656_v6 = vadd.f32 %v3342_v12, %v3340_v5 }
 0x224   : > { %v3346_v7 = vpop.eup %3345 }
 0x225   : > { %v657_v8 = vrot.slane %v656_v6, 4  ;;  %v663_v20 = vadd.f32 %v3346_v7, %v3344_v13 }
 0x227   : > { %v658_v22 = vadd.f32 %v657_v8, %v656_v6  ;;  %v664_v26 = vrot.slane %v663_v20, 4 }
 0x229   : > { %v659_v28 = vrot.slane %v658_v22, 2  ;;  %v665_v18 = vadd.f32 %v664_v26, %v663_v20 }
 0x22b   : > { %v660_v29 = vadd.f32 %v659_v28, %v658_v22  ;;  %v666_v19 = vrot.slane %v665_v18, 2 }
 0x22d   : > { %v661_v30 = vrot.slane %v660_v29, 1  ;;  %v667_v32 = vadd.f32 %v666_v19, %v665_v18 }
 0x22f   : > { %v662_v34 = vadd.f32 %v661_v30, %v660_v29  ;;  %v668_v35 = vrot.slane %v667_v32, 1 }
 0x231   : > { %3347 = vrcp.f32 %v662_v34  ;;  %v669_v16 = vadd.f32 %v668_v35, %v667_v32 }
 0x233   : > { %3349 = vrcp.f32 %v669_v16 }
 0x23e   : > { %v3348_v37 = vpop.eup %3347 }
 0x23f   : > { %v674_v17 = vmul.f32 %v3348_v37, %v3342_v12  ;;  %v671_v39 = vmul.f32 %v3348_v37, %v3340_v5 }
 0x240   : > { %v3350_v38 = vpop.eup %3349 }
 0x241   : > { %v722_v40 = vmul.f32 %v674_v17, %v3887_v24  ;;  %v675_v41 = vmul.f32 %v3350_v38, %v3346_v7  ;;  %v673_v42 = vmul.f32 %v3350_v38, %v3344_v13  ;;  %v718_v53 = vpack.c.bf16 %v674_v17, %v671_v39 }
 0x242   : > { %v720_v28 = vmul.f32 %v671_v39, %v3883_v21 }
 0x243   : > { %v719_v44 = vpack.c.bf16 %v675_v41, %v673_v42  ;;  %v723_v20 = vmul.f32 %v675_v41, %v3891_v27  ;;  %v721_v22 = vmul.f32 %v673_v42, %v3885_v23 }
 0x245   : > { %742 = vmatprep.subr.bf16.mxu1 %v719_v44 }
 0x246   : > { %743 = vmatpush1.bf16.msra.mxu1 %v718_v53 }
 0x247   : > { %3097 = vmatprep.subr.bf16.mxu1 %v3545_v59 }
 0x249   : > { %2883 = vmatmul.mubr.msk.bf16.vlgmr.msra.gmra.mxu1 %vm724_vm2, %v717_v14 }
 0x24a   : > { %3098 = vmatpush3.bf16.msra.mxu1 %v3850_v55  ;;  %3099 = vmatprep.mubr.msk.bf16.mxu1 %vm3546_vm1, %v3545_v59 }
 0x24b   : > { %3103 = vmatprep.subr.bf16.mxu1 %v3545_v59 }
 0x309   : > { %v762_v24 = vpop.f32.mrf.mxu1 }
 0x30a   : > { %v763_v12 = vadd.f32 1e-06, %v762_v24 }
 0x30b   : > { %v764_v15 = vpop.f32.mrf.mxu1 }
 0x30c   : > { %v765_v5 = vadd.f32 1e-06, %v764_v15 }
 0x30d   : > { %v766_v13 = vpop.f32.mrf.mxu1 }
 0x30e   : > { %v767_v6 = vadd.f32 1e-06, %v766_v13  ;;  %3351 = vrcp.f32 %v765_v5 }
 0x30f   : > { %v768_v7 = vpop.f32.mrf.mxu1 }
 0x310   : > { %3353 = vrcp.f32 %v767_v6  ;;  %v769_v31 = vadd.f32 1e-06, %v768_v7 }
 0x311   : > { %3355 = vrcp.f32 %v763_v12 }
 0x312   : > { %3357 = vrcp.f32 %v769_v31 }
 0x31b   : > { %v3352_v61 = vpop.eup %3351 }
 0x31c   : > { %v3969_v29 = vmul.f32 %v3352_v61, %v721_v22 }
 0x31d   : > { %v3354_v8 = vpop.eup %3353 }
 0x31e   : > { %v3356_v55 = vpop.eup %3355  ;;  %v3967_v18 = vmul.f32 %v3354_v8, %v722_v40 }
 0x31f   : > { %v3358_v26 = vpop.eup %3357  ;;  %v3973_v30 = vmul.f32 %v3356_v55, %v720_v28 }
 0x320   : > { %v3971_v19 = vmul.f32 %v3358_v26, %v723_v20 }
 0x321   : > { %v779_v34 = vpack.c.bf16 %v3967_v18, %v3973_v30 }
 0x322   : > { %v780_v32 = vpack.c.bf16 %v3971_v19, %v3969_v29 }
 0x324   : > { %813 = vmatprep.mubr.bf16.mxu0 %v780_v32  ;;  %836 = vmatprep.subr.bf16.mxu0 %v780_v32 }
 0x325   : > { %814 = vmatmul.mubr.bf16.vlgmr.msra.gmra.mxu0 %v779_v34 }
 0x326   : > { %837 = vmatpush1.bf16.xpose.msra.mxu0 %v779_v34  ;;  %854 = vmatprep.mubr.bf16.mxu0 %v780_v32 }
 0x327   : > { %926 = vmatprep.subr.bf16.mxu0 %v3809_v48 }
 0x32d   : > { %855 = vmatmul.mubr.bf16.vlgmr.msra.gmra.mxu0 %v779_v34 }
 0x32e   : > { %927 = vmatpush1.bf16.msra.mxu0 %v3811_v49  ;;  %950 = vmatprep.mubr.bf16.mxu0 %v3544_v0 }
 0x32f   : > { %928 = vmatprep.subr.bf16.mxu0 %v3814_v45 }
 0x332   : > { %929 = vmatpush1.bf16.msra.mxu0 %v3819_v47 }
 0x333   : > { %930 = vmatprep.subr.bf16.mxu0 %v3821_v50 }
 0x336   : > { %931 = vmatpush1.bf16.msra.mxu0 %v3828_v51 }
 0x337   : > { %932 = vmatprep.subr.bf16.mxu0 %v3834_v52 }
 0x33a   : > { %933 = vmatpush1.bf16.msra.mxu0 %v3846_v57 }
 0x33b   : > { %2956 = vmatprep.subr.bf16.mxu0 %v3903_v62 }
 0x3e5   : > { %v2946_v21 = vpop.f32.mrf.mxu0 }
 0x3e7   : > { %v2947_v23 = vpop.f32.mrf.mxu0 }
 0x3e8   : > { %v2948_v27 = vadd.f32 %v2947_v23, %v2946_v21 }
 0x3e9   : > { %v2949_v35 = vpop.f32.mrf.mxu0 }
 0x3ea   : > { %v864_v12 = vmul.f32 %v2948_v27, %v3837_v54 }
 0x3eb   : > { %v2950_v16 = vpop.f32.mrf.mxu0 }
 0x3ec   : > { %v2951_v37 = vadd.f32 %v2950_v16, %v2949_v35 }
 0x3ed   : > { %v856_v17 = vpop.f32.mrf.mxu0 }
 0x3ee   : > { %v865_v13 = vmul.f32 %v2951_v37, %v3839_v56 }
 0x3ef   : > { %v858_v38 = vpop.f32.mrf.mxu0 }
 0x3f1   : > { %v859_v39 = vpop.f32.mrf.mxu0 }
 0x3f2   : > { %v863_v40 = vpack.c.bf16 %v859_v39, %v856_v17 }
 0x3f3   : > { %v861_v41 = vpop.f32.mrf.mxu0 }
 0x3f4   : > { %3100 = vmatmul.mubr.msk.bf16.vlgmr.msra.gmra.mxu1 %vm724_vm2, %v863_v40 }
 0x3f5   : > { %3105 = vmatprep.mubr.msk.bf16.mxu1 %vm3546_vm1, %v3545_v59 }
 0x4b4   : > { %v903_v42 = vpop.f32.mrf.mxu1 }
 0x4b5   : > { %v904_v44 = vadd.f32 1e-06, %v903_v42 }
 0x4b6   : > { %v3101_v53 = vpop.f32.mrf.mxu1 }
 0x4b7   : > { %3359 = vrcp.f32 %v904_v44 }
 0x4b8   : > { %v906_v14 = vpop.f32.mrf.mxu1 }
 0x4b9   : > { %v907_v24 = vadd.f32 1e-06, %v906_v14 }
 0x4ba   : > { %v3102_v15 = vpop.f32.mrf.mxu1 }
 0x4bb   : > { %3361 = vrcp.f32 %v907_v24 }
 0x4c4   : > { %v3360_v5 = vpop.eup %3359 }
 0x4c5   : > { %v3994_v7 = vmul.f32 %v3360_v5, %v864_v12 }
 0x4c8   : > { %v3362_v6 = vpop.eup %3361 }
 0x4c9   : > { %v3996_v31 = vmul.f32 %v3362_v6, %v865_v13 }
 0x4cb   : > { %v4000_v61 = vpack.c.bf16 %v3996_v31, %v3994_v7 }
 0x4cd   : > { %2885 = vmatmul.mubr.msk.bf16.vlgmr.msra.gmra.mxu0 %vm391_vm0, %v4000_v61  ;;  %v916_v8 = vsel %vm391_vm0, %v4000_v61, 0 }
 0x4ce   : > { %2957 = vmatpush3.bf16.msra.mxu0 %v3897_v46  ;;  %3104 = vmatpush3.bf16.xpose.msra.mxu1 %v916_v8 }
 0x4cf   : > { %2958 = vmatprep.subr.bf16.mxu0 %v3901_v60  ;;  %1024 = vmatprep.subr.bf16.mxu1 %v780_v32 }
 0x4d2   : > { %2959 = vmatpush3.bf16.msra.mxu0 %v3906_v9 }
 0x4d3   : > { %2960 = vmatprep.subr.bf16.mxu0 %v3911_v25 }
 0x4d5   : > { %3106 = vmatmul.mubr.msk.bf16.vlgmr.msra.gmra.mxu1 %vm391_vm0, %v4000_v61 }
 0x4d6   : > { %2961 = vmatpush3.bf16.msra.mxu0 %v3918_v33  ;;  %1025 = vmatpush1.bf16.msra.mxu1 %v779_v34 }
 0x4d7   : > { %2962 = vmatprep.subr.bf16.mxu0 %v3923_v36  ;;  %1042 = vmatprep.mubr.bf16.mxu1 %v3544_v0 }
 0x4da   : > { %2963 = vmatpush3.bf16.msra.mxu0 %v3930_v43 }
 0x4db   : > { %2964 = vmatprep.subr.bf16.mxu0 %v3935_v58 }
 0x4de   : > { %2965 = vmatpush3.bf16.msra.mxu0 %v3940_v63 }
 0x4df   : > { %2966 = vmatprep.subr.bf16.mxu0 %v3943_v1 }
 0x4e2   : > { %2967 = vmatpush3.bf16.msra.mxu0 %v3946_v4 }
 0x4e3   : > { %2968 = vmatprep.subr.bf16.mxu0 %v3869_v11 }
 0x4e6   : > { %2969 = vmatpush3.bf16.msra.mxu0 %v3867_v10 }
 0x4e7   : > { %2970 = vmatprep.subr.bf16.mxu0 %v3865_v3 }
 0x4ea   : > { %2971 = vmatpush3.bf16.msra.mxu0 %v3863_v2 }
 0x4eb   : > { %3115 = vmatprep.subr.bf16.mxu0 %v3545_v59 }
 0x58d   : > { %v952_v27 = vpop.f32.mrf.mxu0 }
 0x58e   : > { %v1003_v24 = vmul.f32 %v952_v27, %v3973_v30 }
 0x58f   : > { %v954_v37 = vpop.f32.mrf.mxu0 }
 0x590   : > { %v1004_v44 = vmul.f32 %v954_v37, %v3969_v29 }
 0x591   : > { %v956_v17 = vpop.f32.mrf.mxu0 }
 0x592   : > { %v1005_v41 = vmul.f32 %v956_v17, %v3967_v18 }
 0x593   : > { %v958_v38 = vpop.f32.mrf.mxu0 }
 0x594   : > { %v1006_v53 = vmul.f32 %v958_v38, %v3971_v19 }
 0x595   : > { %v995_v54 = vpop.f32.mrf.mxu1 }
 0x597   : > { %v3107_v56 = vpop.f32.mrf.mxu1 }
 0x599   : > { %v998_v55 = vpop.f32.mrf.mxu1 }
 0x59a   : > { %v1002_v20 = vpack.c.bf16 %v998_v55, %v995_v54 }
 0x59b   : > { %v3108_v22 = vpop.f32.mrf.mxu1 }
 0x59c   : > { %2887 = vmatmul.mubr.msk.bf16.vlgmr.msra.gmra.mxu1 %vm724_vm2, %v1002_v20 }
 0x65c   : > { %v1044_v26 = vpop.f32.mrf.mxu1 }
 0x65d   : > { %v1045_v34 = vadd.f32 1e-06, %v1044_v26 }
 0x65e   : > { %v1046_v28 = vpop.f32.mrf.mxu1 }
 0x65f   : > { %v1047_v32 = vadd.f32 1e-06, %v1046_v28 }
 0x660   : > { %v1048_v21 = vpop.f32.mrf.mxu1 }
 0x661   : > { %v1049_v23 = vadd.f32 1e-06, %v1048_v21  ;;  %3363 = vrcp.f32 %v1047_v32 }
 0x662   : > { %v1050_v35 = vpop.f32.mrf.mxu1 }
 0x663   : > { %3365 = vrcp.f32 %v1049_v23  ;;  %v1051_v16 = vadd.f32 1e-06, %v1050_v35 }
 0x664   : > { %3367 = vrcp.f32 %v1045_v34 }
 0x665   : > { %3369 = vrcp.f32 %v1051_v16 }
 0x66e   : > { %v3364_v39 = vpop.eup %3363 }
 0x66f   : > { %v4032_v5 = vmul.f32 %v3364_v39, %v1004_v44 }
 0x670   : > { %v3366_v40 = vpop.eup %3365 }
 0x671   : > { %v3368_v42 = vpop.eup %3367  ;;  %v4030_v15 = vmul.f32 %v3366_v40, %v1005_v41 }
 0x672   : > { %v3370_v14 = vpop.eup %3369  ;;  %v4036_v13 = vmul.f32 %v3368_v42, %v1003_v24 }
 0x673   : > { %v4034_v12 = vmul.f32 %v3370_v14, %v1006_v53 }
 0x674   : > { %v1061_v18 = vpack.c.bf16 %v4030_v15, %v4036_v13 }
 0x675   : > { %v1062_v6 = vpack.c.bf16 %v4034_v12, %v4032_v5 }
 0x677   : > { %1095 = vmatprep.mubr.bf16.mxu0 %v1062_v6  ;;  %1118 = vmatprep.subr.bf16.mxu1 %v1062_v6 }
 0x678   : > { %1136 = vmatprep.mubr.bf16.mxu1 %v1062_v6  ;;  %1096 = vmatmul.mubr.bf16.vlgmr.msra.gmra.mxu0 %v1061_v18 }
 0x679   : > { %1119 = vmatpush1.bf16.xpose.msra.mxu1 %v1061_v18  ;;  %3117 = vmatprep.mubr.msk.bf16.mxu0 %vm3546_vm1, %v3545_v59 }
 0x67a   : > { %3109 = vmatprep.subr.bf16.mxu1 %v3545_v59 }
 0x680   : > { %1137 = vmatmul.mubr.bf16.vlgmr.msra.gmra.mxu1 %v1061_v18 }
 0x681   : > { %3110 = vmatpush3.bf16.msra.mxu1 %v4000_v61  ;;  %3111 = vmatprep.mubr.msk.bf16.mxu1 %vm3546_vm1, %v3545_v59 }
 0x682   : > { %1208 = vmatprep.subr.bf16.mxu1 %v3809_v48 }
 0x738   : > { %v2972_v61 = vpop.f32.mrf.mxu0 }
 0x73a   : > { %v2973_v22 = vpop.f32.mrf.mxu0 }
 0x73b   : > { %v2974_v23 = vadd.f32 %v2973_v22, %v2972_v61 }
 0x73c   : > { %v2975_v34 = vpop.f32.mrf.mxu0 }
 0x73d   : > { %v1146_v16 = vmul.f32 %v2974_v23, %v3994_v7 }
 0x73e   : > { %v2976_v21 = vpop.f32.mrf.mxu0 }
 0x73f   : > { %v2977_v27 = vadd.f32 %v2976_v21, %v2975_v34 }
 0x740   : > { %v1138_v29 = vpop.f32.mrf.mxu1 }
 0x741   : > { %v1147_v37 = vmul.f32 %v2977_v27, %v3996_v31 }
 0x742   : > { %v1140_v19 = vpop.f32.mrf.mxu1 }
 0x744   : > { %v1141_v30 = vpop.f32.mrf.mxu1 }
 0x745   : > { %v1145_v8 = vpack.c.bf16 %v1141_v30, %v1138_v29 }
 0x746   : > { %v1143_v54 = vpop.f32.mrf.mxu1 }
 0x747   : > { %3112 = vmatmul.mubr.msk.bf16.vlgmr.msra.gmra.mxu1 %vm724_vm2, %v1145_v8 }
 0x748   : > { %1209 = vmatpush1.bf16.msra.mxu1 %v3811_v49  ;;  %1232 = vmatprep.mubr.bf16.mxu1 %v3544_v0 }
 0x749   : > { %1210 = vmatprep.subr.bf16.mxu1 %v3814_v45 }
 0x74c   : > { %1211 = vmatpush1.bf16.msra.mxu1 %v3819_v47 }
 0x74d   : > { %1212 = vmatprep.subr.bf16.mxu1 %v3821_v50 }
 0x750   : > { %1213 = vmatpush1.bf16.msra.mxu1 %v3828_v51 }
 0x751   : > { %1214 = vmatprep.subr.bf16.mxu1 %v3834_v52 }
 0x754   : > { %1215 = vmatpush1.bf16.msra.mxu1 %v3846_v57 }
 0x755   : > { %1306 = vmatprep.subr.bf16.mxu1 %v1062_v6 }
 0x807   : > { %v1185_v56 = vpop.f32.mrf.mxu1 }
 0x808   : > { %v1186_v55 = vadd.f32 1e-06, %v1185_v56 }
 0x809   : > { %v3113_v20 = vpop.f32.mrf.mxu1 }
 0x80a   : > { %3371 = vrcp.f32 %v1186_v55 }
 0x80b   : > { %v1188_v26 = vpop.f32.mrf.mxu1 }
 0x80c   : > { %v1189_v28 = vadd.f32 1e-06, %v1188_v26 }
 0x80d   : > { %v3114_v32 = vpop.f32.mrf.mxu1 }
 0x80e   : > { %3373 = vrcp.f32 %v1189_v28 }
 0x817   : > { %v3372_v35 = vpop.eup %3371 }
 0x818   : > { %v4060_v38 = vmul.f32 %v3372_v35, %v1146_v16 }
 0x81b   : > { %v3374_v17 = vpop.eup %3373 }
 0x81c   : > { %v4062_v39 = vmul.f32 %v3374_v17, %v1147_v37 }
 0x81e   : > { %v4066_v40 = vpack.c.bf16 %v4062_v39, %v4060_v38 }
 0x820   : > { %2889 = vmatmul.mubr.msk.bf16.vlgmr.msra.gmra.mxu1 %vm391_vm0, %v4066_v40  ;;  %v1198_v41 = vsel %vm391_vm0, %v4066_v40, 0 }
 0x821   : > { %1307 = vmatpush1.bf16.msra.mxu1 %v1061_v18  ;;  %3116 = vmatpush3.bf16.xpose.msra.mxu0 %v1198_v41 }
 0x822   : > { %2982 = vmatprep.subr.bf16.mxu0 %v3903_v62  ;;  %1324 = vmatprep.mubr.bf16.mxu1 %v3544_v0 }
 0x828   : > { %3118 = vmatmul.mubr.msk.bf16.vlgmr.msra.gmra.mxu0 %vm391_vm0, %v4066_v40 }
 0x829   : > { %2983 = vmatpush3.bf16.msra.mxu0 %v3897_v46 }
 0x82a   : > { %2984 = vmatprep.subr.bf16.mxu0 %v3901_v60 }
 0x82d   : > { %2985 = vmatpush3.bf16.msra.mxu0 %v3906_v9 }
 0x82e   : > { %2986 = vmatprep.subr.bf16.mxu0 %v3911_v25 }
 0x831   : > { %2987 = vmatpush3.bf16.msra.mxu0 %v3918_v33 }
 0x832   : > { %2988 = vmatprep.subr.bf16.mxu0 %v3923_v36 }
 0x835   : > { %2989 = vmatpush3.bf16.msra.mxu0 %v3930_v43 }
 0x836   : > { %2990 = vmatprep.subr.bf16.mxu0 %v3935_v58 }
 0x839   : > { %2991 = vmatpush3.bf16.msra.mxu0 %v3940_v63 }
 0x83a   : > { %2992 = vmatprep.subr.bf16.mxu0 %v3943_v1 }
 0x83d   : > { %2993 = vmatpush3.bf16.msra.mxu0 %v3946_v4 }
 0x83e   : > { %2994 = vmatprep.subr.bf16.mxu0 %v3869_v11 }
 0x841   : > { %2995 = vmatpush3.bf16.msra.mxu0 %v3867_v10 }
 0x842   : > { %2996 = vmatprep.subr.bf16.mxu0 %v3865_v3 }
 0x845   : > { %2997 = vmatpush3.bf16.msra.mxu0 %v3863_v2 }
 0x846   : > { %3127 = vmatprep.subr.bf16.mxu0 %v3545_v59 }
 0x8e0   : > { %v1234_v14 = vpop.f32.mrf.mxu1 }
 0x8e1   : > { %v1285_v23 = vmul.f32 %v1234_v14, %v4036_v13 }
 0x8e2   : > { %v1236_v24 = vpop.f32.mrf.mxu1 }
 0x8e3   : > { %v1286_v32 = vmul.f32 %v1236_v24, %v4032_v5 }
 0x8e4   : > { %v1238_v6 = vpop.f32.mrf.mxu1 }
 0x8e5   : > { %v1287_v26 = vmul.f32 %v1238_v6, %v4030_v15 }
 0x8e6   : > { %v1240_v18 = vpop.f32.mrf.mxu1 }
 0x8e7   : > { %v1288_v34 = vmul.f32 %v1240_v18, %v4034_v12 }
 0x8e8   : > { %v1277_v7 = vpop.f32.mrf.mxu0 }
 0x8ea   : > { %v3119_v31 = vpop.f32.mrf.mxu0 }
 0x8ec   : > { %v1280_v42 = vpop.f32.mrf.mxu0 }
 0x8ed   : > { %v1284_v44 = vpack.c.bf16 %v1280_v42, %v1277_v7 }
 0x8ee   : > { %v3120_v53 = vpop.f32.mrf.mxu0 }
 0x8ef   : > { %2891 = vmatmul.mubr.msk.bf16.vlgmr.msra.gmra.mxu1 %vm724_vm2, %v1284_v44 }
 0x9af   : > { %v1326_v29 = vpop.f32.mrf.mxu1 }
 0x9b0   : > { %v1327_v8 = vadd.f32 1e-06, %v1326_v29 }
 0x9b1   : > { %v1328_v19 = vpop.f32.mrf.mxu1 }
 0x9b2   : > { %v1329_v30 = vadd.f32 1e-06, %v1328_v19 }
 0x9b3   : > { %v1330_v54 = vpop.f32.mrf.mxu1 }
 0x9b4   : > { %v1331_v61 = vadd.f32 1e-06, %v1330_v54  ;;  %3375 = vrcp.f32 %v1329_v30 }
 0x9b5   : > { %v1332_v56 = vpop.f32.mrf.mxu1 }
 0x9b6   : > { %3377 = vrcp.f32 %v1331_v61  ;;  %v1333_v55 = vadd.f32 1e-06, %v1332_v56 }
 0x9b7   : > { %3379 = vrcp.f32 %v1327_v8 }
 0x9b8   : > { %3381 = vrcp.f32 %v1333_v55 }
 0x9c1   : > { %v3376_v20 = vpop.eup %3375 }
 0x9c2   : > { %v4099_v35 = vmul.f32 %v3376_v20, %v1286_v32 }
 0x9c3   : > { %v3378_v22 = vpop.eup %3377 }
 0x9c4   : > { %v3380_v28 = vpop.eup %3379  ;;  %v4097_v27 = vmul.f32 %v3378_v22, %v1287_v26 }
 0x9c5   : > { %v3382_v21 = vpop.eup %3381  ;;  %v4103_v37 = vmul.f32 %v3380_v28, %v1285_v23 }
 0x9c6   : > { %v4101_v16 = vmul.f32 %v3382_v21, %v1288_v34 }
 0x9c7   : > { %v1343_v15 = vpack.c.bf16 %v4097_v27, %v4103_v37 }
 0x9c8   : > { %v1344_v17 = vpack.c.bf16 %v4101_v16, %v4099_v35 }
 0x9ca   : > { %1377 = vmatprep.mubr.bf16.mxu0 %v1344_v17  ;;  %1400 = vmatprep.subr.bf16.mxu1 %v1344_v17 }
 0x9cb   : > { %1418 = vmatprep.mubr.bf16.mxu1 %v1344_v17  ;;  %1378 = vmatmul.mubr.bf16.vlgmr.msra.gmra.mxu0 %v1343_v15 }
 0x9cc   : > { %1401 = vmatpush1.bf16.xpose.msra.mxu1 %v1343_v15  ;;  %3129 = vmatprep.mubr.msk.bf16.mxu0 %vm3546_vm1, %v3545_v59 }
 0x9cd   : > { %3121 = vmatprep.subr.bf16.mxu1 %v3545_v59 }
 0x9d3   : > { %1419 = vmatmul.mubr.bf16.vlgmr.msra.gmra.mxu1 %v1343_v15 }
 0x9d4   : > { %3122 = vmatpush3.bf16.msra.mxu1 %v4066_v40  ;;  %3123 = vmatprep.mubr.msk.bf16.mxu1 %vm3546_vm1, %v3545_v59 }
 0x9d5   : > { %1490 = vmatprep.subr.bf16.mxu1 %v3809_v48 }
 0xa8b   : > { %v2998_v40 = vpop.f32.mrf.mxu0 }
 0xa8d   : > { %v2999_v53 = vpop.f32.mrf.mxu0 }
 0xa8e   : > { %v3000_v19 = vadd.f32 %v2999_v53, %v2998_v40 }
 0xa8f   : > { %v3001_v18 = vpop.f32.mrf.mxu0 }
 0xa90   : > { %v1428_v54 = vmul.f32 %v3000_v19, %v4060_v38 }
 0xa91   : > { %v3002_v29 = vpop.f32.mrf.mxu0 }
 0xa92   : > { %v3003_v30 = vadd.f32 %v3002_v29, %v3001_v18 }
 0xa93   : > { %v1420_v5 = vpop.f32.mrf.mxu1 }
 0xa94   : > { %v1429_v61 = vmul.f32 %v3003_v30, %v4062_v39 }
 0xa95   : > { %v1422_v12 = vpop.f32.mrf.mxu1 }
 0xa97   : > { %v1423_v13 = vpop.f32.mrf.mxu1 }
 0xa98   : > { %v1427_v41 = vpack.c.bf16 %v1423_v13, %v1420_v5 }
 0xa99   : > { %v1425_v7 = vpop.f32.mrf.mxu1 }
 0xa9a   : > { %3124 = vmatmul.mubr.msk.bf16.vlgmr.msra.gmra.mxu1 %vm724_vm2, %v1427_v41 }
 0xa9b   : > { %1491 = vmatpush1.bf16.msra.mxu1 %v3811_v49  ;;  %1514 = vmatprep.mubr.bf16.mxu1 %v3544_v0 }
 0xa9c   : > { %1492 = vmatprep.subr.bf16.mxu1 %v3814_v45 }
 0xa9f   : > { %1493 = vmatpush1.bf16.msra.mxu1 %v3819_v47 }
 0xaa0   : > { %1494 = vmatprep.subr.bf16.mxu1 %v3821_v50 }
 0xaa3   : > { %1495 = vmatpush1.bf16.msra.mxu1 %v3828_v51 }
 0xaa4   : > { %1496 = vmatprep.subr.bf16.mxu1 %v3834_v52 }
 0xaa7   : > { %1497 = vmatpush1.bf16.msra.mxu1 %v3846_v57 }
 0xaa8   : > { %1588 = vmatprep.subr.bf16.mxu1 %v1344_v17 }
 0xb5a   : > { %v1467_v31 = vpop.f32.mrf.mxu1 }
 0xb5b   : > { %v1468_v42 = vadd.f32 1e-06, %v1467_v31 }
 0xb5c   : > { %v3125_v44 = vpop.f32.mrf.mxu1 }
 0xb5d   : > { %3383 = vrcp.f32 %v1468_v42 }
 0xb5e   : > { %v1470_v14 = vpop.f32.mrf.mxu1 }
 0xb5f   : > { %v1471_v24 = vadd.f32 1e-06, %v1470_v14 }
 0xb60   : > { %v3126_v6 = vpop.f32.mrf.mxu1 }
 0xb61   : > { %3385 = vrcp.f32 %v1471_v24 }
 0xb6a   : > { %v3384_v8 = vpop.eup %3383 }
 0xb6b   : > { %v4127_v55 = vmul.f32 %v3384_v8, %v1428_v54 }
 0xb6e   : > { %v3386_v56 = vpop.eup %3385 }
 0xb6f   : > { %v4129_v20 = vmul.f32 %v3386_v56, %v1429_v61 }
 0xb71   : > { %v4133_v22 = vpack.c.bf16 %v4129_v20, %v4127_v55 }
 0xb73   : > { %2893 = vmatmul.mubr.msk.bf16.vlgmr.msra.gmra.mxu1 %vm391_vm0, %v4133_v22  ;;  %v1480_v26 = vsel %vm391_vm0, %v4133_v22, 0 }
 0xb74   : > { %1589 = vmatpush1.bf16.msra.mxu1 %v1343_v15  ;;  %3128 = vmatpush3.bf16.xpose.msra.mxu0 %v1480_v26 }
 0xb75   : > { %3008 = vmatprep.subr.bf16.mxu0 %v3903_v62  ;;  %1606 = vmatprep.mubr.bf16.mxu1 %v3544_v0 }
 0xb7b   : > { %3130 = vmatmul.mubr.msk.bf16.vlgmr.msra.gmra.mxu0 %vm391_vm0, %v4133_v22 }
 0xb7c   : > { %3009 = vmatpush3.bf16.msra.mxu0 %v3897_v46 }
 0xb7d   : > { %3010 = vmatprep.subr.bf16.mxu0 %v3901_v60 }
 0xb80   : > { %3011 = vmatpush3.bf16.msra.mxu0 %v3906_v9 }
 0xb81   : > { %3012 = vmatprep.subr.bf16.mxu0 %v3911_v25 }
 0xb84   : > { %3013 = vmatpush3.bf16.msra.mxu0 %v3918_v33 }
 0xb85   : > { %3014 = vmatprep.subr.bf16.mxu0 %v3923_v36 }
 0xb88   : > { %3015 = vmatpush3.bf16.msra.mxu0 %v3930_v43 }
 0xb89   : > { %3016 = vmatprep.subr.bf16.mxu0 %v3935_v58 }
 0xb8c   : > { %3017 = vmatpush3.bf16.msra.mxu0 %v3940_v63 }
 0xb8d   : > { %3018 = vmatprep.subr.bf16.mxu0 %v3943_v1 }
 0xb90   : > { %3019 = vmatpush3.bf16.msra.mxu0 %v3946_v4 }
 0xb91   : > { %3020 = vmatprep.subr.bf16.mxu0 %v3869_v11 }
 0xb94   : > { %3021 = vmatpush3.bf16.msra.mxu0 %v3867_v10 }
 0xb95   : > { %3022 = vmatprep.subr.bf16.mxu0 %v3865_v3 }
 0xb98   : > { %3023 = vmatpush3.bf16.msra.mxu0 %v3863_v2 }
 0xb99   : > { %3139 = vmatprep.subr.bf16.mxu0 %v3545_v59 }
 0xc33   : > { %v1516_v21 = vpop.f32.mrf.mxu1 }
 0xc34   : > { %v1567_v19 = vmul.f32 %v1516_v21, %v4103_v37 }
 0xc35   : > { %v1518_v23 = vpop.f32.mrf.mxu1 }
 0xc36   : > { %v1568_v6 = vmul.f32 %v1518_v23, %v4099_v35 }
 0xc37   : > { %v1520_v17 = vpop.f32.mrf.mxu1 }
 0xc38   : > { %v1569_v14 = vmul.f32 %v1520_v17, %v4097_v27 }
 0xc39   : > { %v1522_v15 = vpop.f32.mrf.mxu1 }
 0xc3a   : > { %v1570_v18 = vmul.f32 %v1522_v15, %v4101_v16 }
 0xc3b   : > { %v1559_v38 = vpop.f32.mrf.mxu0 }
 0xc3d   : > { %v3131_v39 = vpop.f32.mrf.mxu0 }
 0xc3f   : > { %v1562_v28 = vpop.f32.mrf.mxu0 }
 0xc40   : > { %v1566_v32 = vpack.c.bf16 %v1562_v28, %v1559_v38 }
 0xc41   : > { %v3132_v34 = vpop.f32.mrf.mxu0 }
 0xc42   : > { %2895 = vmatmul.mubr.msk.bf16.vlgmr.msra.gmra.mxu1 %vm724_vm2, %v1566_v32 }
 0xd02   : > { %v1608_v5 = vpop.f32.mrf.mxu1 }
 0xd03   : > { %v1609_v41 = vadd.f32 1e-06, %v1608_v5 }
 0xd04   : > { %v1610_v12 = vpop.f32.mrf.mxu1 }
 0xd05   : > { %v1611_v13 = vadd.f32 1e-06, %v1610_v12 }
 0xd06   : > { %v1612_v7 = vpop.f32.mrf.mxu1 }
 0xd07   : > { %v1613_v40 = vadd.f32 1e-06, %v1612_v7  ;;  %3387 = vrcp.f32 %v1611_v13 }
 0xd08   : > { %v1614_v31 = vpop.f32.mrf.mxu1 }
 0xd09   : > { %3389 = vrcp.f32 %v1613_v40  ;;  %v1615_v42 = vadd.f32 1e-06, %v1614_v31 }
 0xd0a   : > { %3391 = vrcp.f32 %v1609_v41 }
 0xd0b   : > { %3393 = vrcp.f32 %v1615_v42 }
 0xd14   : > { %v3388_v44 = vpop.eup %3387 }
 0xd15   : > { %v4166_v8 = vmul.f32 %v3388_v44, %v1568_v6 }
 0xd16   : > { %v3390_v53 = vpop.eup %3389 }
 0xd17   : > { %v3392_v24 = vpop.eup %3391  ;;  %v4164_v30 = vmul.f32 %v3390_v53, %v1569_v14 }
 0xd18   : > { %v3394_v29 = vpop.eup %3393  ;;  %v4170_v61 = vmul.f32 %v3392_v24, %v1567_v19 }
 0xd19   : > { %v4168_v54 = vmul.f32 %v3394_v29, %v1570_v18 }
 0xd1a   : > { %v1625_v27 = vpack.c.bf16 %v4164_v30, %v4170_v61 }
 0xd1b   : > { %v1626_v56 = vpack.c.bf16 %v4168_v54, %v4166_v8 }
 0xd1d   : > { %1659 = vmatprep.mubr.bf16.mxu0 %v1626_v56  ;;  %1682 = vmatprep.subr.bf16.mxu1 %v1626_v56 }
 0xd1e   : > { %1700 = vmatprep.mubr.bf16.mxu1 %v1626_v56  ;;  %1660 = vmatmul.mubr.bf16.vlgmr.msra.gmra.mxu0 %v1625_v27 }
 0xd1f   : > { %1683 = vmatpush1.bf16.xpose.msra.mxu1 %v1625_v27  ;;  %3141 = vmatprep.mubr.msk.bf16.mxu0 %vm3546_vm1, %v3545_v59 }
 0xd20   : > { %3133 = vmatprep.subr.bf16.mxu1 %v3545_v59 }
 0xd26   : > { %1701 = vmatmul.mubr.bf16.vlgmr.msra.gmra.mxu1 %v1625_v27 }
 0xd27   : > { %3134 = vmatpush3.bf16.msra.mxu1 %v4133_v22  ;;  %3135 = vmatprep.mubr.msk.bf16.mxu1 %vm3546_vm1, %v3545_v59 }
 0xd28   : > { %1772 = vmatprep.subr.bf16.mxu1 %v3809_v48 }
 0xdde   : > { %v3024_v22 = vpop.f32.mrf.mxu0 }
 0xde0   : > { %v3025_v34 = vpop.f32.mrf.mxu0 }
 0xde1   : > { %v3026_v12 = vadd.f32 %v3025_v34, %v3024_v22 }
 0xde2   : > { %v3027_v15 = vpop.f32.mrf.mxu0 }
 0xde3   : > { %v1710_v7 = vmul.f32 %v3026_v12, %v4127_v55 }
 0xde4   : > { %v3028_v5 = vpop.f32.mrf.mxu0 }
 0xde5   : > { %v3029_v13 = vadd.f32 %v3028_v5, %v3027_v15 }
 0xde6   : > { %v1702_v35 = vpop.f32.mrf.mxu1 }
 0xde7   : > { %v1711_v40 = vmul.f32 %v3029_v13, %v4129_v20 }
 0xde8   : > { %v1704_v16 = vpop.f32.mrf.mxu1 }
 0xdea   : > { %v1705_v37 = vpop.f32.mrf.mxu1 }
 0xdeb   : > { %v1709_v26 = vpack.c.bf16 %v1705_v37, %v1702_v35 }
 0xdec   : > { %v1707_v38 = vpop.f32.mrf.mxu1 }
 0xded   : > { %3136 = vmatmul.mubr.msk.bf16.vlgmr.msra.gmra.mxu1 %vm724_vm2, %v1709_v26 }
 0xdee   : > { %1773 = vmatpush1.bf16.msra.mxu1 %v3811_v49  ;;  %1796 = vmatprep.mubr.bf16.mxu1 %v3544_v0 }
 0xdef   : > { %1774 = vmatprep.subr.bf16.mxu1 %v3814_v45 }
 0xdf2   : > { %1775 = vmatpush1.bf16.msra.mxu1 %v3819_v47 }
 0xdf3   : > { %1776 = vmatprep.subr.bf16.mxu1 %v3821_v50 }
 0xdf6   : > { %1777 = vmatpush1.bf16.msra.mxu1 %v3828_v51 }
 0xdf7   : > { %1778 = vmatprep.subr.bf16.mxu1 %v3834_v52 }
 0xdfa   : > { %1779 = vmatpush1.bf16.msra.mxu1 %v3846_v57 }
 0xdfb   : > { %1870 = vmatprep.subr.bf16.mxu1 %v1626_v56 }
 0xead   : > { %v1749_v39 = vpop.f32.mrf.mxu1 }
 0xeae   : > { %v1750_v28 = vadd.f32 1e-06, %v1749_v39 }
 0xeaf   : > { %v3137_v32 = vpop.f32.mrf.mxu1 }
 0xeb0   : > { %3395 = vrcp.f32 %v1750_v28 }
 0xeb1   : > { %v1752_v21 = vpop.f32.mrf.mxu1 }
 0xeb2   : > { %v1753_v23 = vadd.f32 1e-06, %v1752_v21 }
 0xeb3   : > { %v3138_v17 = vpop.f32.mrf.mxu1 }
 0xeb4   : > { %3397 = vrcp.f32 %v1753_v23 }
 0xebd   : > { %v3396_v41 = vpop.eup %3395 }
 0xebe   : > { %v4194_v42 = vmul.f32 %v3396_v41, %v1710_v7 }
 0xec1   : > { %v3398_v31 = vpop.eup %3397 }
 0xec2   : > { %v4196_v44 = vmul.f32 %v3398_v31, %v1711_v40 }
 0xec4   : > { %v4200_v53 = vpack.c.bf16 %v4196_v44, %v4194_v42 }
 0xec6   : > { %2897 = vmatmul.mubr.msk.bf16.vlgmr.msra.gmra.mxu1 %vm391_vm0, %v4200_v53  ;;  %v1762_v14 = vsel %vm391_vm0, %v4200_v53, 0 }
 0xec7   : > { %1871 = vmatpush1.bf16.msra.mxu1 %v1625_v27  ;;  %3140 = vmatpush3.bf16.xpose.msra.mxu0 %v1762_v14 }
 0xec8   : > { %3034 = vmatprep.subr.bf16.mxu0 %v3903_v62  ;;  %1888 = vmatprep.mubr.bf16.mxu1 %v3544_v0 }
 0xece   : > { %3142 = vmatmul.mubr.msk.bf16.vlgmr.msra.gmra.mxu0 %vm391_vm0, %v4200_v53 }
 0xecf   : > { %3035 = vmatpush3.bf16.msra.mxu0 %v3897_v46 }
 0xed0   : > { %3036 = vmatprep.subr.bf16.mxu0 %v3901_v60 }
 0xed3   : > { %3037 = vmatpush3.bf16.msra.mxu0 %v3906_v9 }
 0xed4   : > { %3038 = vmatprep.subr.bf16.mxu0 %v3911_v25 }
 0xed7   : > { %3039 = vmatpush3.bf16.msra.mxu0 %v3918_v33 }
 0xed8   : > { %3040 = vmatprep.subr.bf16.mxu0 %v3923_v36 }
 0xedb   : > { %3041 = vmatpush3.bf16.msra.mxu0 %v3930_v43 }
 0xedc   : > { %3042 = vmatprep.subr.bf16.mxu0 %v3935_v58 }
 0xedf   : > { %3043 = vmatpush3.bf16.msra.mxu0 %v3940_v63 }
 0xee0   : > { %3044 = vmatprep.subr.bf16.mxu0 %v3943_v1 }
 0xee3   : > { %3045 = vmatpush3.bf16.msra.mxu0 %v3946_v4 }
 0xee4   : > { %3046 = vmatprep.subr.bf16.mxu0 %v3869_v11 }
 0xee7   : > { %3047 = vmatpush3.bf16.msra.mxu0 %v3867_v10 }
 0xee8   : > { %3048 = vmatprep.subr.bf16.mxu0 %v3865_v3 }
 0xeeb   : > { %3049 = vmatpush3.bf16.msra.mxu0 %v3863_v2 }
 0xeec   : > { %3151 = vmatprep.subr.bf16.mxu0 %v3545_v59 }
 0xf86   : > { %v1798_v29 = vpop.f32.mrf.mxu1 }
 0xf87   : > { %v1849_v12 = vmul.f32 %v1798_v29, %v4170_v61 }
 0xf88   : > { %v1800_v19 = vpop.f32.mrf.mxu1 }
 0xf89   : > { %v1850_v17 = vmul.f32 %v1800_v19, %v4166_v8 }
 0xf8a   : > { %v1802_v56 = vpop.f32.mrf.mxu1 }
 0xf8b   : > { %v1851_v21 = vmul.f32 %v1802_v56, %v4164_v30 }
 0xf8c   : > { %v1804_v27 = vpop.f32.mrf.mxu1 }
 0xf8d   : > { %v1852_v15 = vmul.f32 %v1804_v27, %v4168_v54 }
 0xf8e   : > { %v1841_v55 = vpop.f32.mrf.mxu0 }
 0xf90   : > { %v3143_v20 = vpop.f32.mrf.mxu0 }
 0xf92   : > { %v1844_v24 = vpop.f32.mrf.mxu0 }
 0xf93   : > { %v1848_v6 = vpack.c.bf16 %v1844_v24, %v1841_v55 }
 0xf94   : > { %v3144_v18 = vpop.f32.mrf.mxu0 }
 0xf95   : > { %2899 = vmatmul.mubr.msk.bf16.vlgmr.msra.gmra.mxu1 %vm724_vm2, %v1848_v6 }
0x1055   : > { %v1890_v35 = vpop.f32.mrf.mxu1 }
0x1056   : > { %v1891_v26 = vadd.f32 1e-06, %v1890_v35 }
0x1057   : > { %v1892_v16 = vpop.f32.mrf.mxu1 }
0x1058   : > { %v1893_v37 = vadd.f32 1e-06, %v1892_v16 }
0x1059   : > { %v1894_v38 = vpop.f32.mrf.mxu1 }
0x105a   : > { %v1895_v22 = vadd.f32 1e-06, %v1894_v38  ;;  %3399 = vrcp.f32 %v1893_v37 }
0x105b   : > { %v1896_v39 = vpop.f32.mrf.mxu1 }
0x105c   : > { %3401 = vrcp.f32 %v1895_v22  ;;  %v1897_v28 = vadd.f32 1e-06, %v1896_v39 }
0x105d   : > { %3403 = vrcp.f32 %v1891_v26 }
0x105e   : > { %3405 = vrcp.f32 %v1897_v28 }
0x1067   : > { %v3400_v32 = vpop.eup %3399 }
0x1068   : > { %v4233_v41 = vmul.f32 %v3400_v32, %v1850_v17 }
0x1069   : > { %v3402_v34 = vpop.eup %3401 }
0x106a   : > { %v3404_v23 = vpop.eup %3403  ;;  %v4231_v13 = vmul.f32 %v3402_v34, %v1851_v21 }
0x106b   : > { %v3406_v5 = vpop.eup %3405  ;;  %v4237_v40 = vmul.f32 %v3404_v23, %v1849_v12 }
0x106c   : > { %v4235_v7 = vmul.f32 %v3406_v5, %v1852_v15 }
0x106d   : > { %v1907_v30 = vpack.c.bf16 %v4231_v13, %v4237_v40 }
0x106e   : > { %v1908_v31 = vpack.c.bf16 %v4235_v7, %v4233_v41 }
0x1070   : > { %1941 = vmatprep.mubr.bf16.mxu0 %v1908_v31  ;;  %1964 = vmatprep.subr.bf16.mxu1 %v1908_v31 }
0x1071   : > { %1982 = vmatprep.mubr.bf16.mxu1 %v1908_v31  ;;  %1942 = vmatmul.mubr.bf16.vlgmr.msra.gmra.mxu0 %v1907_v30 }
0x1072   : > { %1965 = vmatpush1.bf16.xpose.msra.mxu1 %v1907_v30  ;;  %3153 = vmatprep.mubr.msk.bf16.mxu0 %vm3546_vm1, %v3545_v59 }
0x1073   : > { %3145 = vmatprep.subr.bf16.mxu1 %v3545_v59 }
0x1079   : > { %1983 = vmatmul.mubr.bf16.vlgmr.msra.gmra.mxu1 %v1907_v30 }
0x107a   : > { %3146 = vmatpush3.bf16.msra.mxu1 %v4200_v53  ;;  %3147 = vmatprep.mubr.msk.bf16.mxu1 %vm3546_vm1, %v3545_v59 }
0x107b   : > { %2054 = vmatprep.subr.bf16.mxu1 %v3809_v48 }
0x1131   : > { %v3050_v53 = vpop.f32.mrf.mxu0 }
0x1133   : > { %v3051_v18 = vpop.f32.mrf.mxu0 }
0x1134   : > { %v3052_v16 = vadd.f32 %v3051_v18, %v3050_v53 }
0x1135   : > { %v3053_v27 = vpop.f32.mrf.mxu0 }
0x1136   : > { %v1992_v38 = vmul.f32 %v3052_v16, %v4194_v42 }
0x1137   : > { %v3054_v35 = vpop.f32.mrf.mxu0 }
0x1138   : > { %v3055_v37 = vadd.f32 %v3054_v35, %v3053_v27 }
0x1139   : > { %v1984_v8 = vpop.f32.mrf.mxu1 }
0x113a   : > { %v1993_v22 = vmul.f32 %v3055_v37, %v4196_v44 }
0x113b   : > { %v1986_v54 = vpop.f32.mrf.mxu1 }
0x113d   : > { %v1987_v61 = vpop.f32.mrf.mxu1 }
0x113e   : > { %v1991_v14 = vpack.c.bf16 %v1987_v61, %v1984_v8 }
0x113f   : > { %v1989_v55 = vpop.f32.mrf.mxu1 }
0x1140   : > { %3148 = vmatmul.mubr.msk.bf16.vlgmr.msra.gmra.mxu1 %vm724_vm2, %v1991_v14 }
0x1141   : > { %2055 = vmatpush1.bf16.msra.mxu1 %v3811_v49  ;;  %2078 = vmatprep.mubr.bf16.mxu1 %v3544_v0 }
0x1142   : > { %2056 = vmatprep.subr.bf16.mxu1 %v3814_v45 }
0x1145   : > { %2057 = vmatpush1.bf16.msra.mxu1 %v3819_v47 }
0x1146   : > { %2058 = vmatprep.subr.bf16.mxu1 %v3821_v50 }
0x1149   : > { %2059 = vmatpush1.bf16.msra.mxu1 %v3828_v51 }
0x114a   : > { %2060 = vmatprep.subr.bf16.mxu1 %v3834_v52 }
0x114d   : > { %2061 = vmatpush1.bf16.msra.mxu1 %v3846_v57 }
0x114e   : > { %2152 = vmatprep.subr.bf16.mxu1 %v1908_v31 }
0x1200   : > { %v2031_v20 = vpop.f32.mrf.mxu1 }
0x1201   : > { %v2032_v24 = vadd.f32 1e-06, %v2031_v20 }
0x1202   : > { %v3149_v6 = vpop.f32.mrf.mxu1 }
0x1203   : > { %3407 = vrcp.f32 %v2032_v24 }
0x1204   : > { %v2034_v29 = vpop.f32.mrf.mxu1 }
0x1205   : > { %v2035_v19 = vadd.f32 1e-06, %v2034_v29 }
0x1206   : > { %v3150_v56 = vpop.f32.mrf.mxu1 }
0x1207   : > { %3409 = vrcp.f32 %v2035_v19 }
0x1210   : > { %v3408_v26 = vpop.eup %3407 }
0x1211   : > { %v4261_v28 = vmul.f32 %v3408_v26, %v1992_v38  ;;  %v3335_v38 = vld [vmem:[%s4451_s3] sm:$0xff]  }
0x1214   : > { %v3410_v39 = vpop.eup %3409 }
0x1215   : > { %v4263_v32 = vmul.f32 %v3410_v39, %v1993_v22  ;;  %v3336_v22 = vld [vmem:[%s4451_s3 + $0x8] sm:$0xff]   ;;  %v3337_v39 = vld [vmem:[%s4451_s3 + $0x10] sm:$0xff]  }
0x1217   : > { %v4267_v34 = vpack.c.bf16 %v4263_v32, %v4261_v28 }
0x1219   : > { %2901 = vmatmul.mubr.msk.bf16.vlgmr.msra.gmra.mxu1 %vm391_vm0, %v4267_v34  ;;  %v2044_v21 = vsel %vm391_vm0, %v4267_v34, 0 }
0x121a   : > { %2153 = vmatpush1.bf16.msra.mxu1 %v1907_v30  ;;  %3152 = vmatpush3.bf16.xpose.msra.mxu0 %v2044_v21 }
0x121b   : > { %3060 = vmatprep.subr.bf16.mxu0 %v3903_v62  ;;  %2170 = vmatprep.mubr.bf16.mxu1 %v3544_v0 }
0x1221   : > { %3154 = vmatmul.mubr.msk.bf16.vlgmr.msra.gmra.mxu0 %vm391_vm0, %v4267_v34 }
0x1222   : > { %3061 = vmatpush3.bf16.msra.mxu0 %v3897_v46 }
0x1223   : > { %3062 = vmatprep.subr.bf16.mxu0 %v3901_v60 }
0x1226   : > { %3063 = vmatpush3.bf16.msra.mxu0 %v3906_v9 }
0x1227   : > { %3064 = vmatprep.subr.bf16.mxu0 %v3911_v25 }
0x122a   : > { %3065 = vmatpush3.bf16.msra.mxu0 %v3918_v33 }
0x122b   : > { %3066 = vmatprep.subr.bf16.mxu0 %v3923_v36 }
0x122e   : > { %3067 = vmatpush3.bf16.msra.mxu0 %v3930_v43 }
0x122f   : > { %3068 = vmatprep.subr.bf16.mxu0 %v3935_v58 }
0x1232   : > { %3069 = vmatpush3.bf16.msra.mxu0 %v3940_v63 }
0x1233   : > { %3070 = vmatprep.subr.bf16.mxu0 %v3943_v1 }
0x1236   : > { %3071 = vmatpush3.bf16.msra.mxu0 %v3946_v4 }
0x1237   : > { %3072 = vmatprep.subr.bf16.mxu0 %v3869_v11 }
0x123a   : > { %3073 = vmatpush3.bf16.msra.mxu0 %v3867_v10 }
0x123b   : > { %3074 = vmatprep.subr.bf16.mxu0 %v3865_v3 }
0x123e   : > { %3075 = vmatpush3.bf16.msra.mxu0 %v3863_v2 }
0x123f   : > { %3163 = vmatprep.subr.bf16.mxu0 %v3545_v59 }
0x12d9   : > { %v2080_v33 = vpop.f32.mrf.mxu1 }
0x12da   : > { %v2131_v30 = vmul.f32 %v2080_v33, %v4237_v40 }
0x12db   : > { %v2082_v36 = vpop.f32.mrf.mxu1 }
0x12dc   : > { %v2132_v5 = vmul.f32 %v2082_v36, %v4233_v41 }
0x12dd   : > { %v2084_v43 = vpop.f32.mrf.mxu1 }
0x12de   : > { %v2133_v17 = vmul.f32 %v2084_v43, %v4231_v13 }
0x12df   : > { %v2086_v58 = vpop.f32.mrf.mxu1 }
0x12e0   : > { %v2134_v12 = vmul.f32 %v2086_v58, %v4235_v7 }
0x12e1   : > { %v2123_v46 = vpop.f32.mrf.mxu0 }
0x12e3   : > { %v3155_v60 = vpop.f32.mrf.mxu0 }
0x12e5   : > { %v2126_v62 = vpop.f32.mrf.mxu0 }
0x12e6   : > { %v2130_v9 = vpack.c.bf16 %v2126_v62, %v2123_v46 }
0x12e7   : > { %v3156_v25 = vpop.f32.mrf.mxu0 }
0x12e8   : > { %2903 = vmatmul.mubr.msk.bf16.vlgmr.msra.gmra.mxu1 %vm724_vm2, %v2130_v9 }
0x13a8   : > { %v2172_v11 = vpop.f32.mrf.mxu1 }
0x13a9   : > { %v2173_v1 = vadd.f32 1e-06, %v2172_v11 }
0x13aa   : > { %v2174_v63 = vpop.f32.mrf.mxu1 }
0x13ab   : > { %v2175_v10 = vadd.f32 1e-06, %v2174_v63 }
0x13ac   : > { %v2176_v3 = vpop.f32.mrf.mxu1 }
0x13ad   : > { %v2177_v4 = vadd.f32 1e-06, %v2176_v3  ;;  %3411 = vrcp.f32 %v2175_v10 }
0x13ae   : > { %v2178_v2 = vpop.f32.mrf.mxu1 }
0x13af   : > { %3413 = vrcp.f32 %v2177_v4  ;;  %v2179_v42 = vadd.f32 1e-06, %v2178_v2 }
0x13b0   : > { %3415 = vrcp.f32 %v2173_v1 }
0x13b1   : > { %3417 = vrcp.f32 %v2179_v42 }
0x13ba   : > { %v3412_v44 = vpop.eup %3411 }
0x13bb   : > { %v4300_v54 = vmul.f32 %v3412_v44, %v2132_v5 }
0x13bc   : > { %v3414_v23 = vpop.eup %3413 }
0x13bd   : > { %v3416_v15 = vpop.eup %3415  ;;  %v4298_v8 = vmul.f32 %v3414_v23, %v2133_v17 }
0x13be   : > { %v3418_v31 = vpop.eup %3417  ;;  %v4304_v14 = vmul.f32 %v3416_v15, %v2131_v30 }
0x13bf   : > { %v4302_v61 = vmul.f32 %v3418_v31, %v2134_v12 }
0x13c0   : > { %v2189_v13 = vpack.c.bf16 %v4298_v8, %v4304_v14 }
0x13c1   : > { %v2190_v55 = vpack.c.bf16 %v4302_v61, %v4300_v54 }
0x13c3   : > { %2223 = vmatprep.mubr.bf16.mxu0 %v2190_v55  ;;  %2246 = vmatprep.subr.bf16.mxu1 %v2190_v55 }
0x13c4   : > { %2264 = vmatprep.mubr.bf16.mxu1 %v2190_v55  ;;  %2224 = vmatmul.mubr.bf16.vlgmr.msra.gmra.mxu0 %v2189_v13 }
0x13c5   : > { %2247 = vmatpush1.bf16.xpose.msra.mxu1 %v2189_v13  ;;  %3165 = vmatprep.mubr.msk.bf16.mxu0 %vm3546_vm1, %v3545_v59 }
0x13c6   : > { %3157 = vmatprep.subr.bf16.mxu1 %v3545_v59 }
0x13cc   : > { %2265 = vmatmul.mubr.bf16.vlgmr.msra.gmra.mxu1 %v2189_v13 }
0x13cd   : > { %3158 = vmatpush3.bf16.msra.mxu1 %v4267_v34  ;;  %3159 = vmatprep.mubr.msk.bf16.mxu1 %vm3546_vm1, %v3545_v59 }
0x13ce   : > { %2336 = vmatprep.subr.bf16.mxu1 %v3809_v48 }
0x1484   : > { %v3076_v48 = vpop.f32.mrf.mxu0 }
0x148c   : > { %v2266_v41 = vpop.f32.mrf.mxu1 }
0x148e   : > { %v2268_v7 = vpop.f32.mrf.mxu1 }
0x1490   : > { %v2269_v40 = vpop.f32.mrf.mxu1 }
0x1491   : > { %v2273_v53 = vpack.c.bf16 %v2269_v40, %v2266_v41 }
0x1492   : > { %v2271_v20 = vpop.f32.mrf.mxu1 }
0x1493   : > { %3160 = vmatmul.mubr.msk.bf16.vlgmr.msra.gmra.mxu1 %vm724_vm2, %v2273_v53 }
0x1494   : > { %2337 = vmatpush1.bf16.msra.mxu1 %v3811_v49  ;;  %2360 = vmatprep.mubr.bf16.mxu1 %v3544_v0  ;;  %v3077_v49 = vpop.f32.mrf.mxu0 }
0x1495   : > { %2338 = vmatprep.subr.bf16.mxu1 %v3814_v45 }
0x1498   : > { %2339 = vmatpush1.bf16.msra.mxu1 %v3819_v47  ;;  %v3079_v47 = vpop.f32.mrf.mxu0 }
0x1499   : > { %2340 = vmatprep.subr.bf16.mxu1 %v3821_v50  ;;  %v3078_v50 = vadd.f32 %v3077_v49, %v3076_v48  ;;  %v2593_v49 = vpop.permute.xlu1 %2592 }
0x149a   : > { %v3080_v19 = vpop.f32.mrf.mxu0 }
0x149b   : > { %v3081_v56 = vadd.f32 %v3080_v19, %v3079_v47 }
0x149c   : > { %2341 = vmatpush1.bf16.msra.mxu1 %v3828_v51 }
0x149d   : > { %2342 = vmatprep.subr.bf16.mxu1 %v3834_v52  ;;  %v2274_v52 = vmul.f32 %v3078_v50, %v4261_v28  ;;  %v3338_v28 = vld [vmem:[%s4451_s3 + $0x18] sm:$0xff]   ;;  %v3431_v50 = vld [vmem:[%s3688_s13] sm:$0xff] }
0x14a0   : > { %2343 = vmatpush1.bf16.msra.mxu1 %v3846_v57  ;;  %v2275_v57 = vmul.f32 %v3081_v56, %v4263_v32 }
0x14a1   : > { %2434 = vmatprep.subr.bf16.mxu1 %v2190_v55 }
0x1553   : > { %v2313_v59 = vpop.f32.mrf.mxu1 }
0x1554   : > { %v2314_v24 = vadd.f32 1e-06, %v2313_v59 }
0x1555   : > { %v3161_v6 = vpop.f32.mrf.mxu1 }
0x1556   : > { %3419 = vrcp.f32 %v2314_v24 }
0x1557   : > { %v2316_v18 = vpop.f32.mrf.mxu1 }
0x1558   : > { %v2317_v29 = vadd.f32 1e-06, %v2316_v18  ;;  %v2598_v18 = vpop.permute.xlu1 %2597 }
0x1559   : > { %v3162_v45 = vpop.f32.mrf.mxu1 }
0x155a   : > { %3421 = vrcp.f32 %v2317_v29 }
0x155c   : > { %v2603_v29 = vpop.permute.xlu1 %2602 }
0x1563   : > { %v3420_v51 = vpop.eup %3419 }
0x1564   : > { %v2322_v35 = vmul.f32 %v3420_v51, %v2274_v52  ;;  %v2608_v52 = vpop.permute.xlu1 %2607 }
0x1567   : > { %v3422_v27 = vpop.eup %3421 }
0x1568   : > { %v2323_v16 = vmul.f32 %v3422_v27, %v2275_v57 }
0x156a   : > { %v2324_v37 = vpack.c.bf16 %v2323_v16, %v2322_v35  ;;  %v3432_v35 = vld [vmem:[%s3688_s13 + $0x8] sm:$0xff] }
0x156c   : > { %2905 = vmatmul.mubr.msk.bf16.vlgmr.msra.gmra.mxu1 %vm391_vm0, %v2324_v37  ;;  %v2326_v26 = vsel %vm391_vm0, %v2324_v37, 0 }
0x156d   : > { %2435 = vmatpush1.bf16.msra.mxu1 %v2189_v13  ;;  %3164 = vmatpush3.bf16.xpose.msra.mxu0 %v2326_v26 }
0x156e   : > { %3179 = vmatprep.subr.msk.bf16.mxu0 %vm391_vm0, %v2324_v37  ;;  %2452 = vmatprep.mubr.bf16.mxu1 %v3544_v0 }
0x1574   : > { %3166 = vmatmul.mubr.msk.bf16.vlgmr.msra.gmra.mxu0 %vm391_vm0, %v2324_v37 }
0x1575   : > { %3170 = vmatpush3.bf16.xpose.msra.mxu0 %v2326_v26  ;;  %3171 = vmatprep.mubr.msk.bf16.mxu0 %vm391_vm0, %v3335_v38  ;;  %v3433_v38 = vld [vmem:[%s3688_s13 + $0x10] sm:$0xff] }
0x157c   : > { %3172 = vmatmul.mubr.msk.bf16.vlgmr.msra.gmra.mxu0 %vm391_vm0, %v3336_v22 }
0x157d   : > { %3175 = vmatprep.mubr.msk.bf16.mxu0 %vm391_vm0, %v3337_v39 }
0x1584   : > { %3176 = vmatmul.mubr.msk.bf16.gmra.mxu0 %vm391_vm0, %v3338_v28 }
0x162c   : > { %v2362_v62 = vpop.f32.mrf.mxu1 }
0x162d   : > { %v2413_v31 = vmul.f32 %v2362_v62, %v4304_v14 }
0x162e   : > { %v2364_v9 = vpop.f32.mrf.mxu1 }
0x162f   : > { %v2414_v15 = vmul.f32 %v2364_v9, %v4300_v54 }
0x1630   : > { %v2366_v25 = vpop.f32.mrf.mxu1 }
0x1631   : > { %v2415_v23 = vmul.f32 %v2366_v25, %v4298_v8  ;;  %v3435_v25 = vld [vmem:[%s3688_s13 + $0x20] sm:$0xff] }
0x1632   : > { %v2368_v33 = vpop.f32.mrf.mxu1 }
0x1633   : > { %v2416_v5 = vmul.f32 %v2368_v33, %v4302_v61 }
0x1634   : > { %v2405_v32 = vpop.f32.mrf.mxu0 }
0x1636   : > { %v3167_v34 = vpop.f32.mrf.mxu0 }
0x1637   : > { %v3434_v34 = vld [vmem:[%s3688_s13 + $0x18] sm:$0xff] }
0x1638   : > { %v2408_v21 = vpop.f32.mrf.mxu0 }
0x1639   : > { %v2412_v46 = vpack.c.bf16 %v2408_v21, %v2405_v32 }
0x163a   : > { %v3168_v60 = vpop.f32.mrf.mxu0 }
0x163b   : > { %2907 = vmatmul.mubr.msk.bf16.vlgmr.msra.gmra.mxu1 %vm724_vm2, %v2412_v46  ;;  %v2613_v60 = vpop.permute.xlu1 %2612 }
0x163c   : > { %2674 = vmatprep.mubr.bf16.mxu1 %v3544_v0  ;;  %v3173_v4 = vpop.f32.mrf.mxu0 }
0x163e   : > { %v2545_v2 = vpop.f32.mrf.mxu0 }
0x1640   : > { %v3174_v30 = vpop.f32.mrf.mxu0 }
0x1641   : > { %v2577_v61 = vpack.c.bf16 %v3174_v30, %v3173_v4  ;;  %v3437_v4 = vld [vmem:[%s3688_s13 + $0x30] sm:$0xff] }
0x1642   : > { %v2548_v53 = vpop.f32.mrf.mxu0 }
0x1643   : > { %v2576_v48 = vpack.c.bf16 %v2548_v53, %v2545_v2  ;;  %v3440_v53 = vld [vmem:[%s3688_s13 + $0x48] sm:$0xff] }
0x1644   : > { %v3177_v8 = vpop.f32.mrf.mxu0 }
0x1646   : > { %v2561_v54 = vpop.f32.mrf.mxu0 }
0x1648   : > { %v3178_v14 = vpop.f32.mrf.mxu0 }
0x1649   : > { %v2579_v6 = vpack.c.bf16 %v3178_v14, %v3177_v8  ;;  %v3441_v14 = vld [vmem:[%s3688_s13 + $0x50] sm:$0xff] }
0x164a   : > { %v2564_v59 = vpop.f32.mrf.mxu0 }
0x164b   : > { %v2578_v24 = vpack.c.bf16 %v2564_v59, %v2561_v54 }
0x16fb   : > { %v2454_v36 = vpop.f32.mrf.mxu1 }
0x16fc   : > { %v2455_v11 = vadd.f32 1e-06, %v2454_v36 }
0x16fd   : > { %v2456_v43 = vpop.f32.mrf.mxu1 }
0x16fe   : > { %v2457_v58 = vadd.f32 1e-06, %v2456_v43 }
0x16ff   : > { %v2458_v63 = vpop.f32.mrf.mxu1 }
0x1700   : > { %v2459_v10 = vadd.f32 1e-06, %v2458_v63  ;;  %3423 = vrcp.f32 %v2457_v58 }
0x1701   : > { %v2460_v1 = vpop.f32.mrf.mxu1 }
0x1702   : > { %3425 = vrcp.f32 %v2459_v10  ;;  %v2461_v3 = vadd.f32 1e-06, %v2460_v1 }
0x1703   : > { %3427 = vrcp.f32 %v2455_v11  ;;  %v3436_v11 = vld [vmem:[%s3688_s13 + $0x28] sm:$0xff] }
0x1704   : > { %3429 = vrcp.f32 %v2461_v3 }
0x170d   : > { %v3424_v42 = vpop.eup %3423 }
0x170e   : > { %v2468_v13 = vmul.f32 %v3424_v42, %v2414_v15  ;;  %v3438_v15 = vld [vmem:[%s3688_s13 + $0x38] sm:$0xff] }
0x170f   : > { %v3426_v44 = vpop.eup %3425 }
0x1710   : > { %v3428_v17 = vpop.eup %3427  ;;  %v2469_v55 = vmul.f32 %v3426_v44, %v2415_v23  ;;  %v2618_v44 = vpop.permute.xlu1 %2617 }
0x1711   : > { %v3430_v12 = vpop.eup %3429  ;;  %v2467_v7 = vmul.f32 %v3428_v17, %v2413_v31 }
0x1712   : > { %v2470_v41 = vmul.f32 %v3430_v12, %v2416_v5 }
0x1713   : > { %v2580_v20 = vpack.c.bf16 %v2469_v55, %v2467_v7  ;;  %v3439_v55 = vld [vmem:[%s3688_s13 + $0x40] sm:$0xff] }
0x1714   : > { %v2581_v40 = vpack.c.bf16 %v2470_v41, %v2468_v13  ;;  %v2623_v8 = vpop.permute.xlu1 %2622 }
0x1716   : > { %2656 = vmatprep.subr.bf16.mxu1 %v2581_v40 }
0x1717   : > { %2657 = vmatpush1.bf16.msra.mxu1 %v2580_v20 }
0x171a   : > { %2916 = vmatmul.mubr.msk.bf16.vlgmr.msra.gmra.mxu1 %vm724_vm2, %v2576_v48 }
0x171b   : > { %2684 = vmatprep.mubr.bf16.mxu1 %v3544_v0 }
0x1722   : > { %2917 = vmatmul.mubr.msk.bf16.gmra.mxu1 %vm724_vm2, %v2577_v61 }
0x1723   : > { %2694 = vmatprep.mubr.bf16.mxu1 %v3544_v0 }
0x172a   : > { %2918 = vmatmul.mubr.msk.bf16.gmra.mxu1 %vm724_vm2, %v2578_v24 }
0x172b   : > { %2704 = vmatprep.mubr.bf16.mxu1 %v3544_v0 }
0x1732   : > { %2919 = vmatmul.mubr.msk.bf16.gmra.mxu1 %vm724_vm2, %v2579_v6 }
0x17da   : > { %v2676_v45 = vpop.f32.mrf.mxu1 }
0x17db   : > { %v2677_v47 = vadd.f32 %v2676_v45, %v2593_v49 }
0x17dc   : > { %v2678_v19 = vpop.f32.mrf.mxu1 }
0x17dd   : > { %v2715_v56 = vadd.f32 %v3431_v50, %v2677_v47  ;;  %v2679_v51 = vadd.f32 %v2678_v19, %v2593_v49  ;;  %v3443_v50 = vld [vmem:[%s3688_s13 + $0x60] sm:$0xff] }
0x17de   : > { %v2680_v57 = vpop.f32.mrf.mxu1 }
0x17df   : > { %v2731_v27 = vmax.f32 %v2715_v56, 0.0  ;;  %v2716_v0 = vadd.f32 %v3432_v35, %v2679_v51  ;;  %v2681_v16 = vadd.f32 %v2680_v57, %v2598_v18  ;;  %v3444_v35 = vld [vmem:[%s3688_s13 + $0x68] sm:$0xff] }
0x17e0   : > { %v2682_v37 = vpop.f32.mrf.mxu1 }
0x17e1   : > { %2747 = vst [vmem:[%s4366_s11] sm:$0xff] %v2731_v27  ;;  %v2732_v26 = vmax.f32 %v2716_v0, 0.0  ;;  %v2717_v22 = vadd.f32 %v3433_v38, %v2681_v16  ;;  %v2683_v39 = vadd.f32 %v2682_v37, %v2598_v18  ;;  %v3442_v18 = vld [vmem:[%s3688_s13 + $0x58] sm:$0xff]  ;;  %v3445_v38 = vld [vmem:[%s3688_s13 + $0x70] sm:$0xff] }
0x17e2   : > { %v2686_v28 = vpop.f32.mrf.mxu1 }
0x17e3   : > { %2748 = vst [vmem:[%s4366_s11 + $0x8] sm:$0xff] %v2732_v26  ;;  %v2733_v32 = vmax.f32 %v2717_v22, 0.0  ;;  %v2718_v21 = vadd.f32 %v3434_v34, %v2683_v39  ;;  %v2687_v46 = vadd.f32 %v2686_v28, %v2603_v29 }
0x17e4   : > { %v2688_v62 = vpop.f32.mrf.mxu1 }
0x17e5   : > { %2749 = vst [vmem:[%s4366_s11 + $0x10] sm:$0xff] %v2733_v32  ;;  %v2734_v9 = vmax.f32 %v2718_v21, 0.0  ;;  %v2719_v33 = vadd.f32 %v3435_v25, %v2687_v46  ;;  %v2689_v36 = vadd.f32 %v2688_v62, %v2603_v29  ;;  %v3446_v32 = vld [vmem:[%s3688_s13 + $0x78] sm:$0xff]  ;;  %s3547_s13 = smov [#allocation5]  }
0x17e6   : > { %v2690_v43 = vpop.f32.mrf.mxu1  ;;  %s3479_s7 = sshll.u32 %s3547_s13, 4  ;;  %s3480_s7 = int_to_ptr.vmem [resolvable:$false] %s3479_s7 }
0x17e7   : > { %2750 = vst [vmem:[%s4366_s11 + $0x18] sm:$0xff] %v2734_v9  ;;  %v2735_v58 = vmax.f32 %v2719_v33, 0.0  ;;  %v2720_v63 = vadd.f32 %v3436_v11, %v2689_v36  ;;  %v2691_v10 = vadd.f32 %v2690_v43, %v2608_v52  ;;  %s3481_s8 = scalar_lea.vmem %s3480_s7, 4096  ;;  %p3482_p7 = scmp.lt.s32.totalorder %s4403_s14, %s3480_s7 }
0x17e8   : > { %v2692_v1 = vpop.f32.mrf.mxu1  ;;  %p3483_p8 = scmp.lt.s32.totalorder %s3481_s8, %s3475_s25 }
0x17e9   : > { %2751 = vst [vmem:[%s4366_s11 + $0x20] sm:$0xff] %v2735_v58  ;;  %v2736_v3 = vmax.f32 %v2720_v63, 0.0  ;;  %v2721_v2 = vadd.f32 %v3437_v4, %v2691_v10  ;;  %v2693_v42 = vadd.f32 %v2692_v1, %v2608_v52  ;;  %v2628_v52 = vpop.permute.xlu1 %2627 }
0x17ea   : > { %v2696_v23 = vpop.f32.mrf.mxu1  ;;  %p3484_p10 = por %p3483_p8, %p3482_p7 }
0x17eb   : > { %2752 = vst [vmem:[%s4366_s11 + $0x28] sm:$0xff] %v2736_v3  ;;  %v2737_v17 = vmax.f32 %v2721_v2, 0.0  ;;  %v2722_v5 = vadd.f32 %v3438_v15, %v2693_v42  ;;  %v2697_v12 = vadd.f32 %v2696_v23, %v2613_v60 }
0x17ec   : > { %v2698_v31 = vpop.f32.mrf.mxu1  ;;  %p3485_p0 = pnand %p3484_p10, %p3478_p5 }
0x17ed   : > { %2753 = vst [vmem:[%s4366_s11 + $0x30] sm:$0xff] %v2737_v17  ;;  %v2738_v30 = vmax.f32 %v2722_v5, 0.0  ;;  %v2723_v13 = vadd.f32 %v3439_v55, %v2697_v12  ;;  %v2699_v41 = vadd.f32 %v2698_v31, %v2613_v60 }
0x17ee   : > { %v2700_v7 = vpop.f32.mrf.mxu1 }
0x17ef   : > { %2754 = vst [vmem:[%s4366_s11 + $0x38] sm:$0xff] %v2738_v30  ;;  %v2739_v40 = vmax.f32 %v2723_v13, 0.0  ;;  %v2724_v20 = vadd.f32 %v3440_v53, %v2699_v41  ;;  %v2701_v48 = vadd.f32 %v2700_v7, %v2618_v44 }
0x17f0   : > { %v2702_v54 = vpop.f32.mrf.mxu1 }
0x17f1   : > { %2755 = vst [vmem:[%s4366_s11 + $0x40] sm:$0xff] %v2739_v40  ;;  %v2740_v61 = vmax.f32 %v2724_v20, 0.0  ;;  %v2725_v59 = vadd.f32 %v3441_v14, %v2701_v48  ;;  %v2703_v24 = vadd.f32 %v2702_v54, %v2618_v44 }
0x17f2   : > { %v2706_v6 = vpop.f32.mrf.mxu1 }
0x17f3   : > { %2756 = vst [vmem:[%s4366_s11 + $0x48] sm:$0xff] %v2740_v61  ;;  %v2741_v49 = vmax.f32 %v2725_v59, 0.0  ;;  %v2726_v29 = vadd.f32 %v3442_v18, %v2703_v24  ;;  %v2707_v45 = vadd.f32 %v2706_v6, %v2623_v8 }
0x17f4   : > { %v2708_v47 = vpop.f32.mrf.mxu1 }
0x17f5   : > { %2757 = vst [vmem:[%s4366_s11 + $0x50] sm:$0xff] %v2741_v49  ;;  %v2742_v19 = vmax.f32 %v2726_v29, 0.0  ;;  %v2727_v56 = vadd.f32 %v3443_v50, %v2707_v45  ;;  %v2709_v51 = vadd.f32 %v2708_v47, %v2623_v8 }
0x17f6   : > { %v2710_v57 = vpop.f32.mrf.mxu1 }
0x17f7   : > { %2758 = vst [vmem:[%s4366_s11 + $0x58] sm:$0xff] %v2742_v19  ;;  %v2743_v27 = vmax.f32 %v2727_v56, 0.0  ;;  %v2728_v0 = vadd.f32 %v3444_v35, %v2709_v51  ;;  %v2711_v16 = vadd.f32 %v2710_v57, %v2628_v52 }
0x17f8   : > { %v2712_v37 = vpop.f32.mrf.mxu1 }
0x17f9   : > { %2759 = vst [vmem:[%s4366_s11 + $0x60] sm:$0xff] %v2743_v27  ;;  %v2744_v26 = vmax.f32 %v2728_v0, 0.0  ;;  %v2729_v22 = vadd.f32 %v3445_v38, %v2711_v16  ;;  %v2713_v39 = vadd.f32 %v2712_v37, %v2628_v52 }
0x17fb   : > { %2760 = vst [vmem:[%s4366_s11 + $0x68] sm:$0xff] %v2744_v26  ;;  %v2745_v28 = vmax.f32 %v2729_v22, 0.0  ;;  %v2730_v34 = vadd.f32 %v3446_v32, %v2713_v39 }
0x17fd   : > { %2761 = vst [vmem:[%s4366_s11 + $0x70] sm:$0xff] %v2745_v28  ;;  %v2746_v21 = vmax.f32 %v2730_v34, 0.0 }
0x17ff   : > { %2762 = vst [vmem:[%s4366_s11 + $0x78] sm:$0xff] %v2746_v21 }
0x1800   : > { %3488 = shalt.err (!%p3485_p0)
}
0x1801   : > { %s3489_s16 = scalar_lea.hbm %s4401_s26, 2048  ;;  %s3493_s20 = scalar_lea.hbm %s4454_s6, 4096 }
0x1802   : > { %p3490_p2 = scmp.ne.s32.totalorder %s4401_s26, %s3489_s16  ;;  %p3494_p3 = scmp.lt.s32.totalorder %s4401_s26, %s4454_s6 }
0x1803   : > { %p3495_p6 = scmp.lt.s32.totalorder %s3493_s20, %s3489_s16 }
0x1804   : > { %p3491_p9 = pnand %p3490_p2, %p4463_p13 }
0x1805   : > { %p3496_p11 = por %p3495_p6, %p3494_p3 }
0x1806   : > { %p3492_p1 = pneg %p3491_p9 }
0x1808   : > { %p3497_p12 = pnand %p3496_p11, %p3492_p1 }
0x180a   : > { %3500 = shalt.err (!%p3497_p12)
}
0x180b   : > { %s3548_s15 = smov 256   ;;  %s3549_s17 = smov 16  }
0x180c   : > { %3182 = dma.vmem_to_hbm [thread:$0]  (%p4463_p13), %s4403_s14, 2048, %s4401_s26, %s2764_s28, %s3548_s15, %s3548_s15, %s3549_s17  }
0x180d PF: > { %s2792_s25 = sand.u32 1, %s3527_s21   ;;  %p4464_p4 = scmp.ne.s32.totalorder %s4460_s10, 0 }
0x180e   : > { %p4465_p5 = scmp.ge.s32.totalorder %s3539_s24, 2  ;;  %s2793_s13 = scalar_lea.sflag [#allocation4], %s2792_s25 }
0x1810   : > { %p3189_p7 = pnand %p4465_p5, %p4464_p4 }
0x1812   : > { %p3190_p8 = pneg %p3189_p7 }
0x1814   : > { %3522 = dma.done.wait (%p3190_p8), %s2793_s13, 2048  }
0x1815   : > { %3524 = vsyncadd (%p3190_p8), %s2793_s13, 4294965248  ;;  %p19_p10 = scmp.ge.s32.totalorder %s3610_s27, 4   ;;  %s4466_s21 = smov %s3531_s22 }
0x1816   : > { %s4467_s22 = smov %s3535_s23  ;;  %s4468_s23 = smov %s3622_s30 }
0x1817   : > { %s4469_s24 = smov %s3610_s27  ;;  %21 = sbr.rel (!%p19_p10) target bundleno = 5 (0x5), region = 92 }
0x181c   :  { %2798 = vsyncpa [#allocation3], 1 }
0x181d   :  { %2800 = vsyncpa [#allocation3 + $0x1], 1 }
0x181e   :  { %2801 = vsyncpa [#allocation4], 1 }
0x181f   :  { %2803 = vsyncpa [#allocation4 + $0x1], 1 }

</bundles_post_ra>
